<compile_context>
chip_gen: v5e
topology: v5e:2x2
jax: 0.10.0
libtpu: 0.0.40
codegen_flags: <defaults>
</compile_context>

<pallas_src>
import jax
import jax.numpy as jnp
from jax import lax
from jax.experimental import pallas as pl
from jax.experimental.pallas import tpu as pltpu

_LANE = 128     # lane width (last dim)
_SUBLANE = 8    # f32 sublane tile (second-to-last dim)


def _round_up(n, m):
    return ((n + m - 1) // m) * m


def _mlp_kernel(x_ref, w1_ref, b1_ref, w2_ref, b2_ref, o_ref):
    # Hot path: two MXU matmuls + bias add + ReLU, fully fused in VMEM.
    x = x_ref[...]
    h = jnp.dot(x, w1_ref[...], preferred_element_type=jnp.float32,
                precision=lax.Precision.HIGHEST) + b1_ref[...]
    h = jnp.maximum(h, 0.0)                              # ReLU (inplace=True in torch)
    out = jnp.dot(h, w2_ref[...], preferred_element_type=jnp.float32,
                  precision=lax.Precision.HIGHEST) + b2_ref[...]
    o_ref[...] = out.astype(o_ref.dtype)


def make_projection_head(w1, b1, w2, b2, *, tile_b=256,
                         vmem_budget_bytes=24 * 1024 * 1024):
    """Build a fused Projection_head forward.

    w1: [d0, d1], b1: [d1], w2: [d1, d2], b2: [d2]  (PyTorch weight.T layout).
    Padding of the feature dims happens here, once, outside the jitted hot path.
    """
    d0, d1 = w1.shape
    d2 = w2.shape[1]
    d1p = _round_up(d1, _LANE)
    d2p = _round_up(d2, _LANE)

    # Zero padding is exact: padded hidden cols get 0 from W1/b1 (relu(0)=0) and
    # are killed by zero rows of W2; padded output cols are exactly 0 and sliced off.
    w1_p = jnp.pad(w1, ((0, 0), (0, d1p - d1)))
    b1_p = jnp.pad(b1.reshape(1, d1), ((0, 0), (0, d1p - d1)))
    w2_p = jnp.pad(w2, ((0, d1p - d1), (0, d2p - d2)))
    b2_p = jnp.pad(b2.reshape(1, d2), ((0, 0), (0, d2p - d2)))
    w1_p, b1_p, w2_p, b2_p = jax.device_put((w1_p, b1_p, w2_p, b2_p))

    weight_bytes = 4 * (d0 * d1p + d1p + d1p * d2p + d2p)
    # TODO(synk): if this head is called repeatedly inside a larger model, prefetch
    # the padded weights into VMEM across pallas_calls (P10) instead of re-streaming.

    @jax.jit
    def forward(x):
        B = x.shape[0]
        x2d = x.reshape(B, -1)                           # nn.Flatten()
        assert x2d.shape[1] == d0, "flattened input size must equal dims[0]"

        act_bytes = 4 * (B * d0 + B * d1p + B * d2p)
        flops = 2 * B * (d0 * d1p + d1p * d2p)
        cost = pl.CostEstimate(flops=flops, transcendentals=0,
                               bytes_accessed=act_bytes + weight_bytes)
        vmem = pltpu.MemorySpace.VMEM

        if act_bytes + weight_bytes <= vmem_budget_bytes:
            # Gridless fast path: one invocation, everything resident in VMEM,
            # no grid-loop / double-buffer machinery, no hot-path copies.
            out_p = pl.pallas_call(
                _mlp_kernel,
                out_shape=jax.ShapeDtypeStruct((B, d2p), x.dtype),
                in_specs=[pl.BlockSpec(memory_space=vmem)] * 5,
                out_specs=pl.BlockSpec(memory_space=vmem),
                cost_estimate=cost,
            )(x2d, w1_p, b1_p, w2_p, b2_p)
        else:
            # Batch-tiled fallback (large B / small VMEM, e.g. v7x 64 MiB physical):
            # weights pinned with a constant index_map, batch axis parallel so the
            # grid shards across both TensorCores on v7x.
            tb = min(tile_b, _round_up(B, _SUBLANE))
            step_bytes = (4 * (2 * tb * d0 + tb * d1p + 2 * tb * d2p)
                          + 2 * weight_bytes)
            # TODO(synk): heads whose weights alone exceed VMEM would also need a
            # K/N reduction grid; not required for these dims.
            out_p = pl.pallas_call(
                _mlp_kernel,
                out_shape=jax.ShapeDtypeStruct((B, d2p), x.dtype),
                grid=(pl.cdiv(B, tb),),
                in_specs=[
                    pl.BlockSpec((tb, d0), lambda i: (i, 0)),    # x tile
                    pl.BlockSpec((d0, d1p), lambda i: (0, 0)),   # W1 (pinned)
                    pl.BlockSpec((1, d1p), lambda i: (0, 0)),    # b1 (pinned)
                    pl.BlockSpec((d1p, d2p), lambda i: (0, 0)),  # W2 (pinned)
                    pl.BlockSpec((1, d2p), lambda i: (0, 0)),    # b2 (pinned)
                ],
                out_specs=pl.BlockSpec((tb, d2p), lambda i: (i, 0)),
                compiler_params=pltpu.CompilerParams(
                    dimension_semantics=("parallel",),
                    vmem_limit_bytes=int(min(step_bytes + (4 << 20), 64 << 20))),
                cost_estimate=cost,
            )(x2d, w1_p, b1_p, w2_p, b2_p)

        return out_p if d2p == d2 else out_p[:, :d2]

    return forward


def _init_params(key, dims):
    """Deterministic init mimicking nn.Linear defaults (uniform +-1/sqrt(fan_in)).

    Weights stored as (in_features, out_features) = PyTorch weight.T.
    """
    d0, d1, d2 = dims
    k1, k2, k3, k4 = jax.random.split(key, 4)
    bound1 = 1.0 / jnp.sqrt(d0)
    bound2 = 1.0 / jnp.sqrt(d1)
    w1 = jax.random.uniform(k1, (d0, d1), jnp.float32, -bound1, bound1)
    b1 = jax.random.uniform(k2, (d1,), jnp.float32, -bound1, bound1)
    w2 = jax.random.uniform(k3, (d1, d2), jnp.float32, -bound2, bound2)
    b2 = jax.random.uniform(k4, (d2,), jnp.float32, -bound2, bound2)
    return w1, b1, w2, b2


if __name__ == "__main__":
    # x is NCHW (2, 4, 16, 16) -> flattened feature dim 1024; dims = (1024, 256, 64).
    # d2=64 exercises the (init-time) lane-padding path.
    dims = (1024, 256, 64)
    key = jax.random.PRNGKey(0)
    kx, kp, kx2 = jax.random.split(key, 3)
    w1, b1, w2, b2 = _init_params(kp, dims)

    # Pure-JAX reference (f32, HIGHEST precision == exact nn.Linear semantics).
    def ref_fn(x):
        x2d = x.reshape(x.shape[0], -1)
        hp = lax.Precision.HIGHEST
        h = jnp.maximum(jnp.dot(x2d, w1, precision=hp) + b1, 0.0)
        return jnp.dot(h, w2, precision=hp) + b2

    # 1) Gridless fully-VMEM-resident fast path (small batch).
    head = make_projection_head(w1, b1, w2, b2)
    x = jax.random.normal(kx, (2, 4, 16, 16), dtype=jnp.float32)
    out = jax.block_until_ready(head(x))
    assert out.shape == (2, dims[2])
    assert jnp.allclose(out, ref_fn(x), atol=1e-4, rtol=1e-4)

    # 2) Batch-tiled fallback path (forced via a tiny VMEM budget) - also verified.
    head_tiled = make_projection_head(w1, b1, w2, b2, tile_b=8, vmem_budget_bytes=1)
    x_big = jax.random.normal(kx2, (24, 4, 16, 16), dtype=jnp.float32)
    out_t = jax.block_until_ready(head_tiled(x_big))
    assert out_t.shape == (24, dims[2])
    assert jnp.allclose(out_t, ref_fn(x_big), atol=1e-4, rtol=1e-4)

    print("KERNEL_OK")
</pallas_src>

<mosaic_0001>
module attributes {stable_mosaic.version = 11 : i64} {
  func.func @_mlp_kernel(%arg0: memref<2x1024xf32, #tpu.memory_space<vmem>>, %arg1: memref<1024x256xf32, #tpu.memory_space<vmem>>, %arg2: memref<1x256xf32, #tpu.memory_space<vmem>>, %arg3: memref<256x128xf32, #tpu.memory_space<vmem>>, %arg4: memref<1x128xf32, #tpu.memory_space<vmem>>, %arg5: memref<2x128xf32, #tpu.memory_space<vmem>>) attributes {dimension_semantics = [], scalar_prefetch = 0 : i64, scratch_operands = 0 : i64, tpu.core_type = #tpu.core_type<tc>} {
    %c0 = arith.constant 0 : index
    %c0_0 = arith.constant 0 : index
    %0 = vector.load %arg0[%c0, %c0_0] : memref<2x1024xf32, #tpu.memory_space<vmem>>, vector<2x1024xf32>
    %c0_1 = arith.constant 0 : index
    %c0_2 = arith.constant 0 : index
    %1 = vector.load %arg1[%c0_1, %c0_2] : memref<1024x256xf32, #tpu.memory_space<vmem>>, vector<1024x256xf32>
    %cst = arith.constant dense<0.000000e+00> : vector<2x256xf32>
    %2 = tpu.matmul %0, %1, %cst {dimension_numbers = #tpu.dot_dimension_numbers<[1], [0], [0], [1], [0, 0, 1, 1], [], []>, precision = #tpu.contract_precision<fp32>} : vector<2x1024xf32>, vector<1024x256xf32>, vector<2x256xf32> -> vector<2x256xf32>
    %c0_3 = arith.constant 0 : index
    %c0_4 = arith.constant 0 : index
    %3 = vector.load %arg2[%c0_3, %c0_4] : memref<1x256xf32, #tpu.memory_space<vmem>>, vector<1x256xf32>
    %4 = vector.broadcast %3 : vector<1x256xf32> to vector<2x256xf32>
    %5 = arith.addf %2, %4 : vector<2x256xf32>
    %cst_5 = arith.constant 0.000000e+00 : f32
    %6 = vector.broadcast %cst_5 : f32 to vector<2x256xf32>
    %7 = arith.maximumf %5, %6 : vector<2x256xf32>
    %c0_6 = arith.constant 0 : index
    %c0_7 = arith.constant 0 : index
    %8 = vector.load %arg3[%c0_6, %c0_7] : memref<256x128xf32, #tpu.memory_space<vmem>>, vector<256x128xf32>
    %cst_8 = arith.constant dense<0.000000e+00> : vector<2x128xf32>
    %9 = tpu.matmul %7, %8, %cst_8 {dimension_numbers = #tpu.dot_dimension_numbers<[1], [0], [0], [1], [0, 0, 1, 1], [], []>, precision = #tpu.contract_precision<fp32>} : vector<2x256xf32>, vector<256x128xf32>, vector<2x128xf32> -> vector<2x128xf32>
    %c0_9 = arith.constant 0 : index
    %c0_10 = arith.constant 0 : index
    %10 = vector.load %arg4[%c0_9, %c0_10] : memref<1x128xf32, #tpu.memory_space<vmem>>, vector<1x128xf32>
    %11 = vector.broadcast %10 : vector<1x128xf32> to vector<2x128xf32>
    %12 = arith.addf %9, %11 : vector<2x128xf32>
    %c0_11 = arith.constant 0 : index
    %c0_12 = arith.constant 0 : index
    %13 = vector.load %arg5[%c0_11, %c0_12] : memref<2x128xf32, #tpu.memory_space<vmem>>, vector<2x128xf32>
    tpu.vector_store %arg5[%c0_11, %c0_12], %12 {strides = array<i32>} : memref<2x128xf32, #tpu.memory_space<vmem>>, vector<2x128xf32>,
    return
  }
}

</mosaic_0001>

<bundles_post_ra>
// kernel: forward.1
= control target key start
LH: loop header
LB: loop body
LE: loop exit
PB: predicated region body
PF: predicated region fallthrough
CT: control target
= control target key end

     0   :  { %10 = vsyncpa [#allocation3], 0  ;;  %s11210_s0 = inlined_call_operand.vmem [shape: f32[2,1024], index: 0, kind: input, shape index: {}]   ;;  %s11211_s1 = inlined_call_operand.hbm [shape: f32[1024,256], index: 1, kind: input, shape index: {}]   ;;  %s11212_s2 = inlined_call_operand.vmem [shape: f32[1,256], index: 2, kind: input, shape index: {}]   ;;  %s11213_s3 = inlined_call_operand.hbm [shape: f32[256,128], index: 3, kind: input, shape index: {}]   ;;  %s11214_s4 = inlined_call_operand.vmem [shape: f32[1,128], index: 4, kind: input, shape index: {}]   ;;  %s11215_s5 = inlined_call_operand.hbm [shape: f32[2,128], index: 5, kind: output, shape index: {}]  }
   0x1   :  { %11 = vsyncpa [#allocation6], 0 }
   0x2   :  { %12 = vsyncpa [#allocation4], 0  ;;  %s19_s20 = sshll.u32 %s11211_s1, 4  ;;  %s6620_s21 = smov [#allocation2]   ;;  %s20_s20 = int_to_ptr.hbm [resolvable:$true] %s19_s20 }
   0x3   :  { %s21_s22 = sshll.u32 %s6620_s21, 4  ;;  %s34_s25 = sshll.u32 %s11213_s3, 4  ;;  %s22_s22 = int_to_ptr.vmem [resolvable:$true] %s21_s22  ;;  %s35_s25 = int_to_ptr.hbm [resolvable:$true] %s34_s25 }
   0x4   :  { %s6621_s26 = smov 256   ;;  %s6622_s27 = smov 16  }
   0x5   :  { %27 = dma.hbm_to_vmem [thread:$0]  %s20_s20, 32768, %s22_s22, [#allocation3], %s6621_s26, %s6621_s26, %s6622_s27  }
   0x6   :  { %s6623_s28 = smov [#allocation5]   ;;  %s6624_s30 = smov 128  }
   0x7   :  { %s36_s29 = sshll.u32 %s6623_s28, 4  ;;  %s6625_s6 = smov 8   ;;  %s37_s29 = int_to_ptr.vmem [resolvable:$true] %s36_s29 }
   0x8   :  { %42 = dma.hbm_to_vmem [thread:$0]  %s35_s25, 4096, %s37_s29, [#allocation6], %s6624_s30, %s6624_s30, %s6625_s6  }
   0x9   :  { %6614 = dma.done.wait [#allocation3], 32768  }
   0xa   :  { %6615 = vsyncadd [#allocation3], 4294934528 }
   0xb   :  { %6616 = dma.done.wait [#allocation6], 4096  }
   0xc   :  { %6617 = vsyncadd [#allocation6], 4294963200  ;;  %v85_v0 = vld [vmem:[#allocation2 + $0xf0] sm:$0xff]  ;;  %v83_v1 = vld [vmem:[#allocation2 + $0xe0] sm:$0xff]  ;;  %s6522_s16 = sshll.u32 %s11215_s5, 4  ;;  %s6523_s16 = int_to_ptr.hbm [resolvable:$true] %s6522_s16 }
   0xd   :  { %v81_v2 = vld [vmem:[#allocation2 + $0xd0] sm:$0xff]  ;;  %v6663_v3 = vand.u32 4294901760, %v85_v0  ;;  %v6665_v4 = vand.u32 4294901760, %v83_v1  ;;  %v79_v6 = vld [vmem:[#allocation2 + $0xc0] sm:$0xff] }
   0xe   :  { %v6667_v5 = vand.u32 4294901760, %v81_v2  ;;  %v77_v7 = vld [vmem:[#allocation2 + $0xb0] sm:$0xff]  ;;  %v75_v8 = vld [vmem:[#allocation2 + $0xa0] sm:$0xff]  ;;  %v6669_v9 = vand.u32 4294901760, %v79_v6 }
   0xf   :  { %v6671_v10 = vand.u32 4294901760, %v77_v7  ;;  %v6673_v11 = vand.u32 4294901760, %v75_v8  ;;  %v73_v12 = vld [vmem:[#allocation2 + $0x90] sm:$0xff]  ;;  %v71_v13 = vld [vmem:[#allocation2 + $0x80] sm:$0xff]  ;;  %339 = vmatpush.msra.mxu0 %v6663_v3  ;;  %535 = vmatpush.msra.mxu3 %v6663_v3  ;;  %v6678_v14 = vsub.f32 %v85_v0, %v6663_v3  ;;  %v6681_v15 = vsub.f32 %v83_v1, %v6665_v4  ;;  %v53_v0 = vld [vmem:[%s11210_s0] sm:$0xff] }
  0x10   :  { %v6684_v16 = vsub.f32 %v81_v2, %v6667_v5  ;;  %v6686_v17 = vand.u32 4294901760, %v73_v12  ;;  %v69_v18 = vld [vmem:[#allocation2 + $0x70] sm:$0xff]  ;;  %v6689_v19 = vsub.f32 %v79_v6, %v6669_v9  ;;  %v6697_v22 = vand.u32 4294901760, %v71_v13  ;;  %v67_v29 = vld [vmem:[#allocation2 + $0x60] sm:$0xff]  ;;  %319 = vst [vmem:[#allocation1] ss:$4 sm:$0xff] %v53_v0 }
  0x11   :  { %v6692_v20 = vsub.f32 %v77_v7, %v6671_v10  ;;  %v6695_v21 = vsub.f32 %v75_v8, %v6673_v11  ;;  %341 = vmatpush.msra.mxu0 %v6665_v4  ;;  %482 = vmatpush.msra.mxu2 %v6678_v14  ;;  %v11230_v23 = vand.u32 4294901760, %v6678_v14  ;;  %v11228_v24 = vand.u32 4294901760, %v6681_v15  ;;  %v65_v36 = vld [vmem:[#allocation2 + $0x50] sm:$0xff]  ;;  %v63_v43 = vld [vmem:[#allocation2 + $0x40] sm:$0xff] }
  0x12   :  { %v11227_v25 = vand.u32 4294901760, %v6684_v16  ;;  %537 = vmatpush.msra.mxu3 %v6665_v4  ;;  %v11226_v26 = vand.u32 4294901760, %v6689_v19  ;;  %v6707_v27 = vsub.f32 %v73_v12, %v6686_v17  ;;  %v6709_v28 = vand.u32 4294901760, %v69_v18  ;;  %v61_v49 = vld [vmem:[#allocation2 + $0x30] sm:$0xff]  ;;  %v59_v55 = vld [vmem:[#allocation2 + $0x20] sm:$0xff] }
  0x13   :  { %343 = vmatpush.msra.mxu0 %v6667_v5  ;;  %485 = vmatpush.msra.mxu2 %v6681_v15  ;;  %v382_v30 = vsub.f32 %v6678_v14, %v11230_v23  ;;  %v388_v31 = vsub.f32 %v6681_v15, %v11228_v24  ;;  %v11225_v33 = vand.u32 4294901760, %v6692_v20  ;;  %v6725_v34 = vsub.f32 %v71_v13, %v6697_v22  ;;  %v117_v56 = vld [vmem:[#allocation2 + $0x1f0] sm:$0xff]  ;;  %v115_v60 = vld [vmem:[#allocation2 + $0x1e0] sm:$0xff] }
  0x14   :  { %v394_v32 = vsub.f32 %v6684_v16, %v11227_v25  ;;  %539 = vmatpush.msra.mxu3 %v6667_v5  ;;  %v11222_v35 = vand.u32 4294901760, %v6695_v21  ;;  %v400_v39 = vsub.f32 %v6689_v19, %v11226_v26  ;;  %v6733_v40 = vand.u32 4294901760, %v67_v29  ;;  %v57_v63 = vld [vmem:[#allocation2 + $0x10] sm:$0xff]  ;;  %v107_v0 = vld [vmem:[#allocation2 + $0x1a0] sm:$0xff] }
  0x15   :  { %345 = vmatpush.msra.mxu0 %v6669_v9  ;;  %488 = vmatpush.msra.mxu2 %v6684_v16  ;;  %v383_v37 = vand.u32 4294901760, %v382_v30  ;;  %v389_v38 = vand.u32 4294901760, %v388_v31  ;;  %v6737_v41 = vsub.f32 %v69_v18, %v6709_v28  ;;  %v11221_v42 = vand.u32 4294901760, %v6707_v27  ;;  %v113_v8 = vld [vmem:[#allocation2 + $0x1d0] sm:$0xff]  ;;  %v55_v18 = vld [vmem:[#allocation2] sm:$0xff] }
  0x16   :  { %541 = vmatpush.msra.mxu3 %v6669_v9  ;;  %v395_v44 = vand.u32 4294901760, %v394_v32  ;;  %v406_v45 = vsub.f32 %v6692_v20, %v11225_v33  ;;  %v6744_v46 = vand.u32 4294901760, %v65_v36  ;;  %v412_v47 = vsub.f32 %v6695_v21, %v11222_v35  ;;  %v103_v35 = vld [vmem:[#allocation2 + $0x180] sm:$0xff]  ;;  %v101_v26 = vld [vmem:[#allocation2 + $0x170] sm:$0xff] }
  0x17   :  { %347 = vmatpush.msra.mxu0 %v6671_v10  ;;  %384 = vmatpush.msra.mxu1 %v383_v37  ;;  %v11219_v48 = vand.u32 4294901760, %v6725_v34  ;;  %v401_v50 = vand.u32 4294901760, %v400_v39  ;;  %v6754_v51 = vsub.f32 %v67_v29, %v6733_v40  ;;  %v6756_v52 = vand.u32 4294901760, %v63_v43  ;;  %v111_v37 = vld [vmem:[#allocation2 + $0x1c0] sm:$0xff] }
  0x18   :  { %491 = vmatpush.msra.mxu2 %v6689_v19  ;;  %543 = vmatpush.msra.mxu3 %v6671_v10  ;;  %v418_v53 = vsub.f32 %v6707_v27, %v11221_v42  ;;  %v11218_v54 = vand.u32 4294901760, %v6737_v41  ;;  %v407_v57 = vand.u32 4294901760, %v406_v45  ;;  %v6766_v58 = vsub.f32 %v65_v36, %v6744_v46  ;;  %v99_v24 = vld [vmem:[#allocation2 + $0x160] sm:$0xff] }
  0x19   :  { %349 = vmatpush.msra.mxu0 %v6673_v11  ;;  %390 = vmatpush.msra.mxu1 %v389_v38  ;;  %v6768_v59 = vand.u32 4294901760, %v61_v49  ;;  %v413_v61 = vand.u32 4294901760, %v412_v47  ;;  %v424_v62 = vsub.f32 %v6725_v34, %v11219_v48  ;;  %v6780_v1 = vsub.f32 %v63_v43, %v6756_v52 }
  0x1a   :  { %494 = vmatpush.msra.mxu2 %v6692_v20  ;;  %545 = vmatpush.msra.mxu3 %v6673_v11  ;;  %v6782_v2 = vand.u32 4294901760, %v59_v55  ;;  %v11217_v6 = vand.u32 4294901760, %v6754_v51  ;;  %v6785_v7 = vand.u32 4294901760, %v117_v56  ;;  %v419_v12 = vand.u32 4294901760, %v418_v53 }
  0x1b   :  { %351 = vmatpush.msra.mxu0 %v6686_v17  ;;  %396 = vmatpush.msra.mxu1 %v395_v44  ;;  %11467 = vst [vmem:[#allocation11_spill] sm:$0xff] %v6768_v59  ;;  %v430_v13 = vsub.f32 %v6737_v41, %v11218_v54  ;;  %v6792_v29 = vand.u32 4294901760, %v115_v60  ;;  %v6796_v30 = vsub.f32 %v61_v49, %v6768_v59  ;;  %v6798_v31 = vand.u32 4294901760, %v57_v63  ;;  %v109_v49 = vld [vmem:[#allocation2 + $0x1b0] sm:$0xff] }
  0x1c   :  { %497 = vmatpush.msra.mxu2 %v6695_v21  ;;  %547 = vmatpush.msra.mxu3 %v6686_v17  ;;  %11468 = vst [vmem:[#allocation12_spill] sm:$0xff] %v6782_v2  ;;  %v11216_v32 = vand.u32 4294901760, %v6766_v58  ;;  %v6802_v36 = vsub.f32 %v117_v56, %v6785_v7  ;;  %v425_v38 = vand.u32 4294901760, %v424_v62  ;;  %v6806_v39 = vand.u32 4294901760, %v113_v8  ;;  %v105_v54 = vld [vmem:[#allocation2 + $0x190] sm:$0xff] }
  0x1d   :  { %353 = vmatpush.msra.mxu0 %v6697_v22  ;;  %402 = vmatpush.msra.mxu1 %v401_v50  ;;  %11469 = vst [vmem:[#allocation13_spill] sm:$0xff] %v6798_v31  ;;  %v436_v43 = vsub.f32 %v6754_v51, %v11217_v6  ;;  %v6813_v44 = vsub.f32 %v59_v55, %v6782_v2  ;;  %v6815_v45 = vand.u32 4294901760, %v55_v18  ;;  %v11220_v47 = vand.u32 4294901760, %v6780_v1 }
  0x1e   :  { %500 = vmatpush.msra.mxu2 %v6707_v27  ;;  %549 = vmatpush.msra.mxu3 %v6697_v22  ;;  %v431_v50 = vand.u32 4294901760, %v430_v13  ;;  %v6821_v53 = vsub.f32 %v115_v60, %v6792_v29  ;;  %v6823_v56 = vand.u32 4294901760, %v111_v37  ;;  %v442_v55 = vsub.f32 %v6766_v58, %v11216_v32 }
  0x1f   :  { %355 = vmatpush.msra.mxu0 %v6709_v28  ;;  %408 = vmatpush.msra.mxu1 %v407_v57  ;;  %11470 = vst [vmem:[#allocation14_spill] sm:$0xff] %v6815_v45  ;;  %v6830_v57 = vsub.f32 %v57_v63, %v6798_v31  ;;  %v11224_v62 = vand.u32 4294901760, %v6796_v30  ;;  %v6837_v60 = vsub.f32 %v113_v8, %v6806_v39  ;;  %v437_v13 = vand.u32 4294901760, %v436_v43 }
  0x20   :  { %503 = vmatpush.msra.mxu2 %v6725_v34  ;;  %551 = vmatpush.msra.mxu3 %v6709_v28  ;;  %11471 = vst [vmem:[#allocation15_spill] sm:$0xff] %v6821_v53  ;;  %v448_v63 = vsub.f32 %v6780_v1, %v11220_v47  ;;  %v6846_v32 = vsub.f32 %v55_v18, %v6815_v45  ;;  %v11229_v6 = vand.u32 4294901760, %v6813_v44  ;;  %v11231_v8 = vand.u32 4294901760, %v6821_v53 }
  0x21   :  { %357 = vmatpush.msra.mxu0 %v6733_v40  ;;  %414 = vmatpush.msra.mxu1 %v413_v61  ;;  %v11223_v61 = vand.u32 4294901760, %v6802_v36  ;;  %11472 = vst [vmem:[#allocation16_spill] sm:$0xff] %v6837_v60  ;;  %v6853_v48 = vsub.f32 %v111_v37, %v6823_v56  ;;  %v443_v43 = vand.u32 4294901760, %v442_v55  ;;  %v454_v47 = vsub.f32 %v6796_v30, %v11224_v62 }
  0x22   :  { %506 = vmatpush.msra.mxu2 %v6737_v41  ;;  %553 = vmatpush.msra.mxu3 %v6733_v40  ;;  %v11232_v42 = vand.u32 4294901760, %v6830_v57  ;;  %v11235_v37 = vand.u32 4294901760, %v6837_v60  ;;  %v6871_v55 = vand.u32 4294901760, %v105_v54  ;;  %v460_v62 = vsub.f32 %v6813_v44, %v11229_v6 }
  0x23   :  { %359 = vmatpush.msra.mxu0 %v6744_v46  ;;  %420 = vmatpush.msra.mxu1 %v419_v12  ;;  %v6839_v12 = vand.u32 4294901760, %v109_v49  ;;  %v723_v18 = vsub.f32 %v6802_v36, %v11223_v61  ;;  %v449_v61 = vand.u32 4294901760, %v448_v63  ;;  %v6887_v63 = vand.u32 4294901760, %v103_v35 }
  0x24   :  { %509 = vmatpush.msra.mxu2 %v6754_v51  ;;  %555 = vmatpush.msra.mxu3 %v6744_v46  ;;  %v455_v23 = vand.u32 4294901760, %v454_v47  ;;  %v466_v33 = vsub.f32 %v6830_v57, %v11232_v42  ;;  %v6900_v25 = vsub.f32 %v105_v54, %v6871_v55  ;;  %v97_v47 = vld [vmem:[#allocation2 + $0x150] sm:$0xff]  ;;  %v11473_v42 = vand.u32 4294901760, %v6846_v32 }
  0x25   :  { %361 = vmatpush.msra.mxu0 %v6756_v52  ;;  %426 = vmatpush.msra.mxu1 %v425_v38  ;;  %v6855_v38 = vand.u32 4294901760, %v107_v0  ;;  %v724_v6 = vand.u32 4294901760, %v723_v18  ;;  %v461_v18 = vand.u32 4294901760, %v460_v62  ;;  %v11474_v54 = vand.u32 4294901760, %v6853_v48 }
  0x26   :  { %512 = vmatpush.msra.mxu2 %v6766_v58  ;;  %557 = vmatpush.msra.mxu3 %v6756_v52  ;;  %v11475_v62 = vand.u32 4294901760, %v6678_v14  ;;  %v11477_v14 = vand.u32 4294901760, %v6681_v15  ;;  %v11479_v15 = vand.u32 4294901760, %v6684_v16  ;;  %v11481_v16 = vand.u32 4294901760, %v6689_v19 }
  0x27   :  { %363 = vmatpush.msra.mxu0 %v6768_v59  ;;  %432 = vmatpush.msra.mxu1 %v431_v50  ;;  %v6869_v50 = vsub.f32 %v109_v49, %v6839_v12  ;;  %v729_v49 = vsub.f32 %v6821_v53, %v11231_v8  ;;  %v741_v8 = vsub.f32 %v6853_v48, %v11474_v54  ;;  %v6921_v53 = vand.u32 4294901760, %v97_v47 }
  0x28   :  { %515 = vmatpush.msra.mxu2 %v6780_v1  ;;  %559 = vmatpush.msra.mxu3 %v6768_v59  ;;  %v95_v59 = vld [vmem:[#allocation2 + $0x140] sm:$0xff]  ;;  %v11482_v19 = vand.u32 4294901760, %v6692_v20  ;;  %v322_v20 = vld.sshfl [vmem:[#allocation1] sm:$0xff pattern:$0x73625140] }
  0x29   :  { %365 = vmatpush.msra.mxu0 %v6782_v2  ;;  %438 = vmatpush.msra.mxu1 %v437_v13  ;;  %v6885_v13 = vsub.f32 %v107_v0, %v6855_v38  ;;  %v735_v0 = vsub.f32 %v6837_v60, %v11235_v37  ;;  %v730_v37 = vand.u32 4294901760, %v729_v49  ;;  %v6941_v60 = vand.u32 4294901760, %v95_v59 }
  0x2a   :  { %518 = vmatpush.msra.mxu2 %v6796_v30  ;;  %561 = vmatpush.msra.mxu3 %v6782_v2  ;;  %v6908_v2 = vand.u32 4294901760, %v99_v24 }
  0x2b   :  { %367 = vmatpush.msra.mxu0 %v6798_v31  ;;  %444 = vmatpush.msra.mxu1 %v443_v43  ;;  %v6902_v43 = vand.u32 4294901760, %v101_v26  ;;  %v736_v49 = vand.u32 4294901760, %v735_v0  ;;  %v742_v0 = vand.u32 4294901760, %v741_v8 }
  0x2c   :  { %521 = vmatpush.msra.mxu2 %v6813_v44  ;;  %563 = vmatpush.msra.mxu3 %v6798_v31  ;;  %v472_v31 = vsub.f32 %v6846_v32, %v11473_v42  ;;  %v467_v42 = vand.u32 4294901760, %v466_v33 }
  0x2d   :  { %369 = vmatpush.msra.mxu0 %v6815_v45  ;;  %450 = vmatpush.msra.mxu1 %v449_v61  ;;  %v6917_v61 = vsub.f32 %v103_v35, %v6887_v63  ;;  %v6929_v35 = vsub.f32 %v101_v26, %v6902_v43 }
  0x2e   :  { %524 = vmatpush.msra.mxu2 %v6830_v57  ;;  %565 = vmatpush.msra.mxu3 %v6815_v45  ;;  %v11476_v45 = vand.u32 4294901760, %v6869_v50  ;;  %v473_v33 = vand.u32 4294901760, %v472_v31  ;;  %v91_v31 = vld [vmem:[#allocation2 + $0x120] sm:$0xff] }
  0x2f   :  { %576 = vmatpush.msrb.mxu0 %v11475_v62  ;;  %456 = vmatpush.msra.mxu1 %v455_v23  ;;  %v6935_v23 = vsub.f32 %v99_v24, %v6908_v2  ;;  %v11243_v26 = vand.u32 4294901760, %v6917_v61  ;;  %v6947_v24 = vsub.f32 %v97_v47, %v6921_v53  ;;  %v87_v47 = vld [vmem:[#allocation2 + $0x100] sm:$0xff] }
  0x30   :  { %725 = vmatpush.msrb.mxu3 %v724_v6  ;;  %527 = vmatpush.msra.mxu2 %v6846_v32  ;;  %v747_v54 = vsub.f32 %v6869_v50, %v11476_v45  ;;  %v93_v6 = vld [vmem:[#allocation2 + $0x130] sm:$0xff]  ;;  %v11478_v45 = vand.u32 4294901760, %v6885_v13 }
  0x31   :  { %580 = vmatpush.msrb.mxu0 %v11477_v14  ;;  %462 = vmatpush.msra.mxu1 %v461_v18  ;;  %v11242_v14 = vand.u32 4294901760, %v6929_v35 }
  0x32   :  { %680 = vmatpush.msrb.mxu2 %v6785_v7  ;;  %731 = vmatpush.msrb.mxu3 %v730_v37  ;;  %v753_v62 = vsub.f32 %v6885_v13, %v11478_v45  ;;  %v748_v8 = vand.u32 4294901760, %v747_v54  ;;  %v11480_v37 = vand.u32 4294901760, %v6900_v25  ;;  %v6953_v45 = vand.u32 4294901760, %v93_v6 }
  0x33   :  { %584 = vmatpush.msrb.mxu0 %v11479_v15  ;;  %468 = vmatpush.msra.mxu1 %v467_v42  ;;  %v89_v15 = vld [vmem:[#allocation2 + $0x110] sm:$0xff]  ;;  %v6963_v54 = vsub.f32 %v95_v59, %v6941_v60 }
  0x34   :  { %682 = vmatpush.msrb.mxu2 %v6792_v29  ;;  %737 = vmatpush.msrb.mxu3 %v736_v49  ;;  %v759_v18 = vsub.f32 %v6900_v25, %v11480_v37  ;;  %v754_v42 = vand.u32 4294901760, %v753_v62  ;;  %v765_v49 = vsub.f32 %v6917_v61, %v11243_v26  ;;  %v6965_v37 = vand.u32 4294901760, %v91_v31 }
  0x35   :  { %588 = vmatpush.msrb.mxu0 %v11481_v16  ;;  %474 = vmatpush.msra.mxu1 %v473_v33  ;;  %v782_v16 = vand.u32 4294901760, %v6947_v24  ;;  %v6976_v59 = vsub.f32 %v93_v6, %v6953_v45  ;;  %v6978_v62 = vand.u32 4294901760, %v89_v15  ;;  %v6991_v26 = vand.u32 4294901760, %v87_v47 }
  0x36   :  { %684 = vmatpush.msrb.mxu2 %v6806_v39  ;;  %743 = vmatpush.msrb.mxu3 %v742_v0  ;;  %v760_v33 = vand.u32 4294901760, %v759_v18  ;;  %v771_v0 = vsub.f32 %v6929_v35, %v11242_v14  ;;  %v766_v18 = vand.u32 4294901760, %v765_v49  ;;  %v788_v14 = vand.u32 4294901760, %v6963_v54 }
  0x37   :  { %592 = vmatpush.msrb.mxu0 %v11482_v19  ;;  %643 = vmatpush.msrb.mxu1 %v6663_v3  ;;  %v11483_v19 = vand.u32 4294901760, %v6695_v21  ;;  %v11484_v3 = vand.u32 4294901760, %v6935_v23  ;;  %v6989_v6 = vsub.f32 %v91_v31, %v6965_v37  ;;  %v11485_v21 = vand.u32 4294901760, %v6707_v27 }
  0x38   :  { %686 = vmatpush.msrb.mxu2 %v6823_v56  ;;  %749 = vmatpush.msrb.mxu3 %v748_v8  ;;  %v794_v31 = vand.u32 4294901760, %v6976_v59  ;;  %v7004_v49 = vsub.f32 %v89_v15, %v6978_v62  ;;  %v11487_v27 = vand.u32 4294901760, %v6725_v34  ;;  %v11488_v15 = vand.u32 4294901760, %v6737_v41 }
  0x39   :  { %596 = vmatpush.msrb.mxu0 %v11483_v19  ;;  %645 = vmatpush.msrb.mxu1 %v6665_v4  ;;  %v777_v8 = vsub.f32 %v6935_v23, %v11484_v3  ;;  %v6996_v4 = vand.u32 4294901760, %v322_v20  ;;  %v772_v19 = vand.u32 4294901760, %v771_v0  ;;  %v800_v0 = vand.u32 4294901760, %v6989_v6 }
  0x3a   :  { %688 = vmatpush.msrb.mxu2 %v6839_v12  ;;  %755 = vmatpush.msrb.mxu3 %v754_v42  ;;  %v783_v42 = vsub.f32 %v6947_v24, %v782_v16  ;;  %v7015_v3 = vsub.f32 %v87_v47, %v6991_v26  ;;  %v11490_v47 = vand.u32 4294901760, %v6754_v51 }
  0x3b   :  { %600 = vmatpush.msrb.mxu0 %v11485_v21  ;;  %647 = vmatpush.msrb.mxu1 %v6667_v5  ;;  %11486 = vst [vmem:[#allocation17_spill] sm:$0xff] %v6996_v4  ;;  %v778_v5 = vand.u32 4294901760, %v777_v8  ;;  %v795_v8 = vsub.f32 %v6976_v59, %v794_v31  ;;  %v801_v41 = vsub.f32 %v6989_v6, %v800_v0  ;;  %v11491_v21 = vand.u32 4294901760, %v6766_v58 }
  0x3c   :  { %690 = vmatpush.msrb.mxu2 %v6855_v38  ;;  %761 = vmatpush.msrb.mxu3 %v760_v33  ;;  %v789_v33 = vsub.f32 %v6963_v54, %v788_v14  ;;  %v784_v34 = vand.u32 4294901760, %v783_v42  ;;  %v11493_v42 = vand.u32 4294901760, %v6780_v1 }
  0x3d   :  { %604 = vmatpush.msrb.mxu0 %v11487_v27  ;;  %649 = vmatpush.msrb.mxu1 %v6669_v9  ;;  %v7021_v9 = vsub.f32 %v322_v20, %v6996_v4  ;;  %v812_v20 = vand.u32 4294901760, %v7015_v3  ;;  %v323_v27 = vld.sshfl [vmem:[#allocation1 + $0x8] sm:$0xff pattern:$0x73625140] }
  0x3e   :  { %692 = vmatpush.msrb.mxu2 %v6871_v55  ;;  %767 = vmatpush.msrb.mxu3 %v766_v18  ;;  %v806_v18 = vand.u32 4294901760, %v7004_v49 }
  0x3f   :  { %608 = vmatpush.msrb.mxu0 %v11488_v15  ;;  %651 = vmatpush.msrb.mxu1 %v6671_v10  ;;  %11489 = vst [vmem:[#allocation18_spill] sm:$0xff] %v7021_v9  ;;  %v790_v10 = vand.u32 4294901760, %v789_v33  ;;  %v7040_v51 = vand.u32 4294901760, %v7021_v9  ;;  %v813_v58 = vsub.f32 %v7015_v3, %v812_v20  ;;  %v11495_v33 = vand.u32 4294901760, %v6813_v44 }
  0x40   :  { %694 = vmatpush.msrb.mxu2 %v6887_v63  ;;  %773 = vmatpush.msrb.mxu3 %v772_v19  ;;  %v807_v19 = vsub.f32 %v7004_v49, %v806_v18  ;;  %v7062_v15 = vand.u32 4294901760, %v323_v27  ;;  %v11499_v44 = vand.u32 4294901760, %v6846_v32  ;;  %v11503_v32 = vld [vmem:[#allocation15_spill] sm:$0xff] }
  0x41   :  { %612 = vmatpush.msrb.mxu0 %v11490_v47  ;;  %653 = vmatpush.msrb.mxu1 %v6673_v11  ;;  %11492 = vst [vmem:[#allocation19_spill] sm:$0xff] %v7040_v51  ;;  %v796_v11 = vand.u32 4294901760, %v795_v8  ;;  %v373_v1 = vsub.f32 %v7021_v9, %v7040_v51  ;;  %v11505_v8 = vld [vmem:[#allocation12_spill] sm:$0xff] }
  0x42   :  { %696 = vmatpush.msrb.mxu2 %v6902_v43  ;;  %779 = vmatpush.msrb.mxu3 %v778_v5  ;;  %v11494_v5 = vand.u32 4294901760, %v6796_v30  ;;  %11496 = vst [vmem:[#allocation20_spill] sm:$0xff] %v7062_v15  ;;  %v814_v30 = vand.u32 4294901760, %v813_v58  ;;  %v11506_v47 = vld [vmem:[#allocation16_spill] sm:$0xff] }
  0x43   :  { %616 = vmatpush.msrb.mxu0 %v11491_v21  ;;  %655 = vmatpush.msrb.mxu1 %v6686_v17  ;;  %v802_v17 = vand.u32 4294901760, %v801_v41  ;;  %v11508_v21 = vld [vmem:[#allocation13_spill] sm:$0xff] }
  0x44   :  { %698 = vmatpush.msrb.mxu2 %v6908_v2  ;;  %785 = vmatpush.msrb.mxu3 %v784_v34  ;;  %v7068_v34 = vand.u32 4294901760, %v373_v1 }
  0x45   :  { %620 = vmatpush.msrb.mxu0 %v11493_v42  ;;  %657 = vmatpush.msrb.mxu1 %v6697_v22  ;;  %v808_v22 = vand.u32 4294901760, %v807_v19  ;;  %v11511_v19 = vand.u32 4294901760, %v6853_v48 }
  0x46   :  { %700 = vmatpush.msrb.mxu2 %v6921_v53  ;;  %791 = vmatpush.msrb.mxu3 %v790_v10  ;;  %11498 = vst [vmem:[#allocation21_spill] sm:$0xff] %v7068_v34  ;;  %v11507_v10 = vand.u32 4294901760, %v11503_v32 }
  0x47   :  { %624 = vmatpush.msrb.mxu0 %v11494_v5  ;;  %659 = vmatpush.msrb.mxu1 %v6709_v28  ;;  %v11497_v28 = vand.u32 4294901760, %v6830_v57  ;;  %v11504_v57 = vand.u32 4294901760, %v6802_v36  ;;  %v131_v5 = vld [vmem:[#allocation2 + $0x260] sm:$0xff] }
  0x48   :  { %702 = vmatpush.msrb.mxu2 %v6941_v60  ;;  %797 = vmatpush.msrb.mxu3 %v796_v11  ;;  %v11510_v11 = vld [vmem:[#allocation14_spill] sm:$0xff] }
  0x49   :  { %628 = vmatpush.msrb.mxu0 %v11495_v33  ;;  %661 = vmatpush.msrb.mxu1 %v6733_v40  ;;  %v7075_v40 = vsub.f32 %v323_v27, %v7062_v15 }
  0x4a   :  { %704 = vmatpush.msrb.mxu2 %v6953_v45  ;;  %803 = vmatpush.msrb.mxu3 %v802_v17  ;;  %v11513_v17 = vand.u32 4294901760, %v6869_v50 }
  0x4b   :  { %632 = vmatpush.msrb.mxu0 %v11497_v28  ;;  %663 = vmatpush.msrb.mxu1 %v6744_v46  ;;  %11500 = vst [vmem:[#allocation22_spill] sm:$0xff] %v7075_v40  ;;  %v11501_v46 = vld [vmem:[#allocation11_spill] sm:$0xff] }
  0x4c   :  { %706 = vmatpush.msrb.mxu2 %v6965_v37  ;;  %809 = vmatpush.msrb.mxu3 %v808_v22 }
  0x4d   :  { %636 = vmatpush.msrb.mxu0 %v11499_v44  ;;  %665 = vmatpush.msrb.mxu1 %v6756_v52  ;;  %v7085_v52 = vand.u32 4294901760, %v7075_v40  ;;  %v129_v44 = vld [vmem:[#allocation2 + $0x250] sm:$0xff] }
  0x4e   :  { %708 = vmatpush.msrb.mxu2 %v6978_v62  ;;  %815 = vmatpush.msrb.mxu3 %v814_v30 }
  0x4f   :  { %375 = vmatmul.f32.vlgmr.msra.gmra.mxu0 %v7068_v34  ;;  %569 = vmatmul.f32.vlgmr.msra.gmra.mxu3 %v7040_v51  ;;  %11502 = vst [vmem:[#allocation11_spill] sm:$0xff] %v7085_v52  ;;  %v714_v41 = vsub.f32 %v7075_v40, %v7085_v52 }
  0x50   :  { %823 = vmatpush.msra.mxu0 %v6802_v36  ;;  %984 = vmatpush.msra.mxu3 %v6785_v7  ;;  %v11509_v36 = vand.u32 4294901760, %v11506_v47 }
  0x51   :  { %667 = vmatpush.msrb.mxu1 %v11501_v46  ;;  %710 = vmatpush.msrb.mxu2 %v6991_v26  ;;  %v7109_v42 = vand.u32 4294901760, %v714_v41 }
  0x52   :  { %530 = vmatmul.f32.vlgmr.msra.gmra.mxu2 %v7021_v9  ;;  %826 = vmatpush.msra.mxu0 %v11503_v32  ;;  %v167_v9 = vld [vmem:[#allocation2 + $0x380] sm:$0xff] }
  0x53   :  { %917 = vmatpush.msra.mxu2 %v11504_v57  ;;  %986 = vmatpush.msra.mxu3 %v6792_v29  ;;  %11512 = vst [vmem:[#allocation15_spill] sm:$0xff] %v7109_v42  ;;  %v7253_v57 = vand.u32 4294901760, %v131_v5 }
  0x54   :  { %669 = vmatpush.msrb.mxu1 %v11505_v8  ;;  %829 = vmatpush.msra.mxu0 %v11506_v47  ;;  %v127_v47 = vld [vmem:[#allocation2 + $0x240] sm:$0xff] }
  0x55   :  { %921 = vmatpush.msra.mxu2 %v11507_v10  ;;  %988 = vmatpush.msra.mxu3 %v6806_v39  ;;  %v324_v10 = vld.sshfl [vmem:[#allocation1 + $0x10] sm:$0xff pattern:$0x73625140] }
  0x56   :  { %671 = vmatpush.msrb.mxu1 %v11508_v21  ;;  %832 = vmatpush.msra.mxu0 %v6853_v48  ;;  %v11514_v48 = vand.u32 4294901760, %v6885_v13  ;;  %v7264_v21 = vand.u32 4294901760, %v129_v44 }
  0x57   :  { %925 = vmatpush.msra.mxu2 %v11509_v36  ;;  %990 = vmatpush.msra.mxu3 %v6823_v56 }
  0x58   :  { %673 = vmatpush.msrb.mxu1 %v11510_v11  ;;  %835 = vmatpush.msra.mxu0 %v6869_v50  ;;  %v145_v50 = vld [vmem:[#allocation2 + $0x2d0] sm:$0xff] }
  0x59   :  { %476 = vmatmul.f32.vlgmr.msra.gmra.mxu1 %v6996_v4  ;;  %929 = vmatpush.msra.mxu2 %v11511_v19  ;;  %v181_v11 = vld [vmem:[#allocation2 + $0x3f0] sm:$0xff] }
  0x5a   :  { %876 = vmatpush.msra.mxu1 %v6785_v7  ;;  %992 = vmatpush.msra.mxu3 %v6839_v12  ;;  %v11515_v7 = vand.u32 4294901760, %v6900_v25 }
  0x5b   :  { %838 = vmatpush.msra.mxu0 %v6885_v13  ;;  %933 = vmatpush.msra.mxu2 %v11513_v17  ;;  %v143_v13 = vld [vmem:[#allocation2 + $0x2c0] sm:$0xff] }
  0x5c   :  { %878 = vmatpush.msra.mxu1 %v6792_v29  ;;  %994 = vmatpush.msra.mxu3 %v6855_v38  ;;  %v11516_v29 = vand.u32 4294901760, %v6917_v61 }
  0x5d   :  { %716 = vmatmul.f32.vlgmr.msrb.gmra.mxu2 %v7109_v42  ;;  %841 = vmatpush.msra.mxu0 %v6900_v25  ;;  %v11517_v25 = vand.u32 4294901760, %v6929_v35 }
  0x5e   :  { %880 = vmatpush.msra.mxu1 %v6806_v39  ;;  %937 = vmatpush.msra.mxu2 %v11514_v48  ;;  %v149_v39 = vld [vmem:[#allocation2 + $0x2f0] sm:$0xff] }
  0x5f   :  { %996 = vmatpush.msra.mxu3 %v6871_v55  ;;  %638 = vmatmul.f32.vlgmr.msrb.gmra.mxu0 %v6996_v4  ;;  %v125_v48 = vld [vmem:[#allocation2 + $0x230] sm:$0xff] }
  0x60   :  { %817 = vmatmul.f32.vlgmr.msrb.gmra.mxu3 %v7062_v15  ;;  %844 = vmatpush.msra.mxu0 %v6917_v61  ;;  %v141_v61 = vld [vmem:[#allocation2 + $0x2b0] sm:$0xff] }
  0x61   :  { %882 = vmatpush.msra.mxu1 %v6823_v56  ;;  %941 = vmatpush.msra.mxu2 %v11515_v7  ;;  %v11518_v56 = vand.u32 4294901760, %v6935_v23  ;;  %v7274_v7 = vsub.f32 %v131_v5, %v7253_v57 }
  0x62   :  { %998 = vmatpush.msra.mxu3 %v6887_v63  ;;  %675 = vmatmul.f32.vlgmr.msrb.gmra.mxu1 %v6996_v4 }
  0x63   :  { %847 = vmatpush.msra.mxu0 %v6929_v35  ;;  %884 = vmatpush.msra.mxu1 %v6839_v12  ;;  %v147_v12 = vld [vmem:[#allocation2 + $0x2e0] sm:$0xff]  ;;  %v7173_v35 = vand.u32 4294901760, %v143_v13 }
  0x64   :  { %945 = vmatpush.msra.mxu2 %v11516_v29  ;;  %1000 = vmatpush.msra.mxu3 %v6902_v43  ;;  %v7276_v29 = vand.u32 4294901760, %v127_v47 }
  0x65   :  { %850 = vmatpush.msra.mxu0 %v6935_v23  ;;  %886 = vmatpush.msra.mxu1 %v6855_v38  ;;  %v7152_v38 = vand.u32 4294901760, %v149_v39  ;;  %v139_v23 = vld [vmem:[#allocation2 + $0x2a0] sm:$0xff] }
  0x66   :  { %949 = vmatpush.msra.mxu2 %v11517_v25  ;;  %1002 = vmatpush.msra.mxu3 %v6908_v2  ;;  %v7304_v5 = vsub.f32 %v127_v47, %v7276_v29 }
  0x67   :  { %853 = vmatpush.msra.mxu0 %v6947_v24  ;;  %888 = vmatpush.msra.mxu1 %v6871_v55  ;;  %v7159_v55 = vand.u32 4294901760, %v147_v12  ;;  %v7183_v24 = vand.u32 4294901760, %v141_v61 }
  0x68   :  { %953 = vmatpush.msra.mxu2 %v11518_v56  ;;  %1004 = vmatpush.msra.mxu3 %v6921_v53  ;;  %v179_v56 = vld [vmem:[#allocation2 + $0x3e0] sm:$0xff] }
  0x69   :  { %856 = vmatpush.msra.mxu0 %v6963_v54  ;;  %890 = vmatpush.msra.mxu1 %v6887_v63  ;;  %v7167_v63 = vsub.f32 %v149_v39, %v7152_v38  ;;  %v7195_v54 = vsub.f32 %v143_v13, %v7173_v35  ;;  %v7279_v39 = vand.u32 4294901760, %v324_v10 }
  0x6a   :  { %957 = vmatpush.msra.mxu2 %v782_v16  ;;  %1006 = vmatpush.msra.mxu3 %v6941_v60  ;;  %v137_v16 = vld [vmem:[#allocation2 + $0x290] sm:$0xff] }
  0x6b   :  { %859 = vmatpush.msra.mxu0 %v6976_v59  ;;  %892 = vmatpush.msra.mxu1 %v6902_v43  ;;  %v7169_v43 = vand.u32 4294901760, %v145_v50  ;;  %11519 = vst [vmem:[#allocation12_spill] sm:$0xff] %v7279_v39 }
  0x6c   :  { %961 = vmatpush.msra.mxu2 %v788_v14  ;;  %1008 = vmatpush.msra.mxu3 %v6953_v45  ;;  %v11253_v14 = vand.u32 4294901760, %v7167_v63 }
  0x6d   :  { %862 = vmatpush.msra.mxu0 %v6989_v6  ;;  %894 = vmatpush.msra.mxu1 %v6908_v2  ;;  %v7179_v2 = vsub.f32 %v147_v12, %v7159_v55  ;;  %v7206_v6 = vsub.f32 %v141_v61, %v7183_v24  ;;  %v7290_v61 = vsub.f32 %v129_v44, %v7264_v21  ;;  %v177_v44 = vld [vmem:[#allocation2 + $0x3d0] sm:$0xff] }
  0x6e   :  { %965 = vmatpush.msra.mxu2 %v794_v31  ;;  %1010 = vmatpush.msra.mxu3 %v6965_v37  ;;  %v135_v31 = vld [vmem:[#allocation2 + $0x280] sm:$0xff] }
  0x6f   :  { %865 = vmatpush.msra.mxu0 %v7004_v49  ;;  %896 = vmatpush.msra.mxu1 %v6921_v53  ;;  %v7189_v53 = vsub.f32 %v145_v50, %v7169_v43  ;;  %v11252_v59 = vand.u32 4294901760, %v7179_v2  ;;  %v1064_v49 = vsub.f32 %v7167_v63, %v11253_v14  ;;  %v7227_v27 = vand.u32 4294901760, %v135_v31 }
  0x70   :  { %969 = vmatpush.msra.mxu2 %v800_v0  ;;  %1012 = vmatpush.msra.mxu3 %v6978_v62  ;;  %v7283_v50 = vand.u32 4294901760, %v181_v11 }
  0x71   :  { %868 = vmatpush.msra.mxu0 %v7015_v3  ;;  %898 = vmatpush.msra.mxu1 %v6941_v60  ;;  %v7197_v60 = vand.u32 4294901760, %v139_v23  ;;  %v11251_v0 = vand.u32 4294901760, %v7189_v53  ;;  %v1070_v58 = vsub.f32 %v7179_v2, %v11252_v59  ;;  %v1065_v1 = vand.u32 4294901760, %v1064_v49 }
  0x72   :  { %973 = vmatpush.msra.mxu2 %v806_v18  ;;  %1014 = vmatpush.msra.mxu3 %v6991_v26  ;;  %v11250_v18 = vand.u32 4294901760, %v7195_v54  ;;  %v7251_v32 = vsub.f32 %v135_v31, %v7227_v27  ;;  %v123_v31 = vld [vmem:[#allocation2 + $0x220] sm:$0xff] }
  0x73   :  { %871 = vmatmul.f32.vlgmr.msra.gmra.mxu0 %v7075_v40  ;;  %900 = vmatpush.msra.mxu1 %v6953_v45  ;;  %v7213_v45 = vand.u32 4294901760, %v137_v16  ;;  %v7219_v3 = vsub.f32 %v139_v23, %v7197_v60  ;;  %v1076_v22 = vsub.f32 %v7189_v53, %v11251_v0  ;;  %v1071_v46 = vand.u32 4294901760, %v1070_v58 }
  0x74   :  { %1217 = vmatpush.msrb.mxu3 %v7152_v38  ;;  %1021 = vmatpush.msrb.mxu0 %v7152_v38  ;;  %v11244_v25 = vand.u32 4294901760, %v7251_v32  ;;  %v7292_v23 = vand.u32 4294901760, %v125_v48 }
  0x75   :  { %977 = vmatpush.msra.mxu2 %v812_v20  ;;  %902 = vmatpush.msra.mxu1 %v6965_v37  ;;  %v133_v20 = vld [vmem:[#allocation2 + $0x270] sm:$0xff]  ;;  %v11248_v37 = vand.u32 4294901760, %v7206_v6  ;;  %v7238_v33 = vsub.f32 %v137_v16, %v7213_v45  ;;  %v11247_v28 = vand.u32 4294901760, %v7219_v3 }
  0x76   :  { %1219 = vmatpush.msrb.mxu3 %v7159_v55  ;;  %1023 = vmatpush.msrb.mxu0 %v7159_v55  ;;  %v7240_v30 = vand.u32 4294901760, %v133_v20  ;;  %v1106_v58 = vsub.f32 %v7251_v32, %v11244_v25 }
  0x77   :  { %1164 = vmatpush.msrb.mxu2 %v7167_v63  ;;  %904 = vmatpush.msra.mxu1 %v6978_v62  ;;  %v1082_v62 = vsub.f32 %v7195_v54, %v11250_v18  ;;  %v1088_v8 = vsub.f32 %v7206_v6, %v11248_v37  ;;  %v11246_v36 = vand.u32 4294901760, %v7238_v33  ;;  %v1094_v17 = vsub.f32 %v7219_v3, %v11247_v28 }
  0x78   :  { %979 = vmatmul.f32.vlgmr.msra.gmra.mxu2 %v7062_v15  ;;  %1025 = vmatpush.msrb.mxu0 %v7169_v43  ;;  %v7262_v41 = vsub.f32 %v133_v20, %v7240_v30  ;;  %v7297_v20 = vand.u32 4294901760, %v179_v56 }
  0x79   :  { %1167 = vmatpush.msrb.mxu2 %v7179_v2  ;;  %1221 = vmatpush.msrb.mxu3 %v7169_v43  ;;  %v1083_v19 = vand.u32 4294901760, %v1082_v62  ;;  %v1089_v12 = vand.u32 4294901760, %v1088_v8  ;;  %v1100_v13 = vsub.f32 %v7238_v33, %v11246_v36  ;;  %v1095_v49 = vand.u32 4294901760, %v1094_v17  ;;  %v175_v17 = vld [vmem:[#allocation2 + $0x3c0] sm:$0xff] }
  0x7a   :  { %1016 = vmatmul.f32.vlgmr.msra.gmra.mxu3 %v7062_v15  ;;  %1027 = vmatpush.msrb.mxu0 %v7173_v35  ;;  %v11245_v16 = vand.u32 4294901760, %v7262_v41  ;;  %v7308_v62 = vsub.f32 %v324_v10, %v7279_v39  ;;  %v7315_v8 = vsub.f32 %v181_v11, %v7283_v50  ;;  %v7322_v10 = vsub.f32 %v125_v48, %v7292_v23 }
  0x7b   :  { %1170 = vmatpush.msrb.mxu2 %v7189_v53  ;;  %1223 = vmatpush.msrb.mxu3 %v7173_v35  ;;  %v1101_v47 = vand.u32 4294901760, %v1100_v13  ;;  %v7330_v25 = vsub.f32 %v179_v56, %v7297_v20  ;;  %v7332_v13 = vand.u32 4294901760, %v177_v44  ;;  %v1107_v48 = vand.u32 4294901760, %v1106_v58  ;;  %v173_v58 = vld [vmem:[#allocation2 + $0x3b0] sm:$0xff] }
  0x7c   :  { %906 = vmatpush.msra.mxu1 %v6991_v26  ;;  %1029 = vmatpush.msrb.mxu0 %v7183_v24  ;;  %v1077_v26 = vand.u32 4294901760, %v1076_v22  ;;  %v121_v22 = vld [vmem:[#allocation2 + $0x210] sm:$0xff]  ;;  %11520 = vst [vmem:[#allocation16_spill] sm:$0xff] %v7308_v62  ;;  %v11256_v36 = vand.u32 4294901760, %v7304_v5  ;;  %v7340_v28 = vand.u32 4294901760, %v7308_v62  ;;  %v7348_v37 = vand.u32 4294901760, %v175_v17 }
  0x7d   :  { %910 = vmatmul.f32.vlgmr.msra.gmra.mxu1 %v7085_v52  ;;  %1173 = vmatpush.msrb.mxu2 %v7195_v54  ;;  %v7327_v11 = vand.u32 4294901760, %v121_v22  ;;  %11523 = vst [vmem:[#allocation23_spill] sm:$0xff] %v7330_v25  ;;  %v7364_v14 = vsub.f32 %v177_v44, %v7332_v13  ;;  %v7372_v52 = vand.u32 4294901760, %v173_v58  ;;  %v11527_v44 = vand.u32 4294901760, %v7315_v8 }
  0x7e   :  { %1066 = vmatpush.msrb.mxu1 %v1065_v1  ;;  %1225 = vmatpush.msrb.mxu3 %v7183_v24  ;;  %v11249_v1 = vand.u32 4294901760, %v7274_v7  ;;  %11524 = vst [vmem:[#allocation24_spill] sm:$0xff] %v7340_v28  ;;  %v1130_v59 = vsub.f32 %v7304_v5, %v11256_v36  ;;  %v11529_v40 = vand.u32 4294901760, %v7322_v10 }
  0x7f   :  { %1031 = vmatpush.msrb.mxu0 %v7197_v60  ;;  %1176 = vmatpush.msrb.mxu2 %v7206_v6  ;;  %11522 = vst [vmem:[#allocation14_spill] sm:$0xff] %v7327_v11  ;;  %v7405_v51 = vsub.f32 %v173_v58, %v7372_v52 }
  0x80   :  { %1072 = vmatpush.msrb.mxu1 %v1071_v46  ;;  %1227 = vmatpush.msrb.mxu3 %v7197_v60  ;;  %v7312_v46 = vand.u32 4294901760, %v123_v31  ;;  %11526 = vst [vmem:[#allocation26_spill] sm:$0xff] %v7364_v14  ;;  %v1136_v15 = vsub.f32 %v7322_v10, %v11529_v40  ;;  %v1131_v40 = vand.u32 4294901760, %v1130_v59 }
  0x81   :  { %1033 = vmatpush.msrb.mxu0 %v7213_v45  ;;  %1179 = vmatpush.msrb.mxu2 %v7219_v3 }
  0x82   :  { %1078 = vmatpush.msrb.mxu1 %v1077_v26  ;;  %1229 = vmatpush.msrb.mxu3 %v7213_v45  ;;  %11521 = vst [vmem:[#allocation13_spill] sm:$0xff] %v7312_v46  ;;  %v1112_v26 = vsub.f32 %v7262_v41, %v11245_v16  ;;  %v1118_v16 = vsub.f32 %v7274_v7, %v11249_v1  ;;  %v1137_v59 = vand.u32 4294901760, %v1136_v15 }
  0x83   :  { %1035 = vmatpush.msrb.mxu0 %v7227_v27  ;;  %1182 = vmatpush.msrb.mxu2 %v7238_v33  ;;  %v7345_v56 = vsub.f32 %v123_v31, %v7312_v46  ;;  %v7360_v31 = vsub.f32 %v121_v22, %v7327_v11  ;;  %v169_v22 = vld [vmem:[#allocation2 + $0x390] sm:$0xff] }
  0x84   :  { %1084 = vmatpush.msrb.mxu1 %v1083_v19  ;;  %1231 = vmatpush.msrb.mxu3 %v7227_v27  ;;  %v11254_v19 = vand.u32 4294901760, %v7290_v61  ;;  %v1113_v1 = vand.u32 4294901760, %v1112_v26  ;;  %v171_v26 = vld [vmem:[#allocation2 + $0x3a0] sm:$0xff] }
  0x85   :  { %1037 = vmatpush.msrb.mxu0 %v7240_v30  ;;  %1185 = vmatpush.msrb.mxu2 %v7251_v32  ;;  %v7390_v4 = vand.u32 4294901760, %v171_v26 }
  0x86   :  { %1090 = vmatpush.msrb.mxu1 %v1089_v12  ;;  %1233 = vmatpush.msrb.mxu3 %v7240_v30  ;;  %v119_v12 = vld [vmem:[#allocation2 + $0x200] sm:$0xff]  ;;  %v1124_v18 = vsub.f32 %v7290_v61, %v11254_v19  ;;  %v1119_v19 = vand.u32 4294901760, %v1118_v16  ;;  %v7399_v16 = vand.u32 4294901760, %v169_v22 }
  0x87   :  { %1039 = vmatpush.msrb.mxu0 %v7253_v57  ;;  %1188 = vmatpush.msrb.mxu2 %v7262_v41  ;;  %v7354_v0 = vand.u32 4294901760, %v119_v12  ;;  %v7418_v58 = vsub.f32 %v171_v26, %v7390_v4 }
  0x88   :  { %1096 = vmatpush.msrb.mxu1 %v1095_v49  ;;  %1235 = vmatpush.msrb.mxu3 %v7253_v57  ;;  %v1055_v49 = vsub.f32 %v7308_v62, %v7340_v28  ;;  %v1125_v36 = vand.u32 4294901760, %v1124_v18  ;;  %v11532_v18 = vand.u32 4294901760, %v7345_v56  ;;  %v7429_v15 = vsub.f32 %v169_v22, %v7399_v16  ;;  %v161_v22 = vld [vmem:[#allocation2 + $0x350] sm:$0xff] }
  0x89   :  { %1041 = vmatpush.msrb.mxu0 %v7264_v21  ;;  %1191 = vmatpush.msrb.mxu2 %v7274_v7  ;;  %11525 = vst [vmem:[#allocation25_spill] sm:$0xff] %v7354_v0  ;;  %v7388_v42 = vsub.f32 %v119_v12, %v7354_v0 }
  0x8a   :  { %1102 = vmatpush.msrb.mxu1 %v1101_v47  ;;  %1237 = vmatpush.msrb.mxu3 %v7264_v21  ;;  %v7381_v47 = vsub.f32 %v175_v17, %v7348_v37  ;;  %v11530_v17 = vand.u32 4294901760, %v7330_v25  ;;  %v7402_v12 = vand.u32 4294901760, %v1055_v49  ;;  %v163_v49 = vld [vmem:[#allocation2 + $0x360] sm:$0xff] }
  0x8b   :  { %1043 = vmatpush.msrb.mxu0 %v7276_v29  ;;  %1194 = vmatpush.msrb.mxu2 %v7290_v61  ;;  %v11537_v26 = vand.u32 4294901760, %v7388_v42 }
  0x8c   :  { %1108 = vmatpush.msrb.mxu1 %v1107_v48  ;;  %1239 = vmatpush.msrb.mxu3 %v7276_v29  ;;  %v1405_v48 = vsub.f32 %v7315_v8, %v11527_v44  ;;  %11528 = vst [vmem:[#allocation27_spill] sm:$0xff] %v7381_v47  ;;  %v1142_v44 = vsub.f32 %v7345_v56, %v11532_v18  ;;  %v11533_v18 = vand.u32 4294901760, %v7364_v14 }
  0x8d   :  { %1045 = vmatpush.msrb.mxu0 %v7292_v23  ;;  %1197 = vmatpush.msrb.mxu2 %v7304_v5  ;;  %11531 = vst [vmem:[#allocation28_spill] sm:$0xff] %v7402_v12 }
  0x8e   :  { %1114 = vmatpush.msrb.mxu1 %v1113_v1  ;;  %1241 = vmatpush.msrb.mxu3 %v7292_v23  ;;  %v1411_v1 = vsub.f32 %v7330_v25, %v11530_v17  ;;  %v1406_v17 = vand.u32 4294901760, %v1405_v48  ;;  %v1417_v34 = vsub.f32 %v7364_v14, %v11533_v18  ;;  %v11534_v25 = vand.u32 4294901760, %v7360_v31 }
  0x8f   :  { %1047 = vmatpush.msrb.mxu0 %v7312_v46  ;;  %1200 = vmatpush.msrb.mxu2 %v7322_v10  ;;  %v11535_v18 = vand.u32 4294901760, %v7381_v47 }
  0x90   :  { %1120 = vmatpush.msrb.mxu1 %v1119_v19  ;;  %1243 = vmatpush.msrb.mxu3 %v7312_v46  ;;  %v7413_v19 = vand.u32 4294901760, %v167_v9  ;;  %v165_v46 = vld [vmem:[#allocation2 + $0x370] sm:$0xff]  ;;  %v1412_v48 = vand.u32 4294901760, %v1411_v1  ;;  %v1143_v1 = vand.u32 4294901760, %v1142_v44  ;;  %v1418_v44 = vand.u32 4294901760, %v1417_v34 }
  0x91   :  { %1049 = vmatpush.msrb.mxu0 %v7327_v11  ;;  %1203 = vmatpush.msrb.mxu2 %v7345_v56  ;;  %v1423_v14 = vsub.f32 %v7381_v47, %v11535_v18  ;;  %v159_v47 = vld [vmem:[#allocation2 + $0x340] sm:$0xff] }
  0x92   :  { %1126 = vmatpush.msrb.mxu1 %v1125_v36  ;;  %1245 = vmatpush.msrb.mxu3 %v7327_v11  ;;  %v1148_v36 = vsub.f32 %v7360_v31, %v11534_v25  ;;  %v7433_v11 = vand.u32 4294901760, %v165_v46  ;;  %v7440_v25 = vsub.f32 %v167_v9, %v7413_v19 }
  0x93   :  { %1051 = vmatpush.msrb.mxu0 %v7354_v0  ;;  %1206 = vmatpush.msrb.mxu2 %v7360_v31  ;;  %v1424_v34 = vand.u32 4294901760, %v1423_v14  ;;  %v11542_v14 = vand.u32 4294901760, %v7429_v15 }
  0x94   :  { %1132 = vmatpush.msrb.mxu1 %v1131_v40  ;;  %1247 = vmatpush.msrb.mxu3 %v7354_v0  ;;  %v11536_v40 = vand.u32 4294901760, %v7167_v63  ;;  %v1154_v0 = vsub.f32 %v7388_v42, %v11537_v26  ;;  %v1149_v18 = vand.u32 4294901760, %v1148_v36  ;;  %v11538_v63 = vand.u32 4294901760, %v7179_v2  ;;  %v157_v36 = vld [vmem:[#allocation2 + $0x330] sm:$0xff] }
  0x95   :  { %1057 = vmatmul.f32.vlgmr.msrb.gmra.mxu0 %v7402_v12  ;;  %1209 = vmatpush.msrb.mxu2 %v7388_v42  ;;  %v7461_v12 = vand.u32 4294901760, %v161_v22  ;;  %v11540_v2 = vand.u32 4294901760, %v7189_v53  ;;  %v155_v53 = vld [vmem:[#allocation2 + $0x320] sm:$0xff] }
  0x96   :  { %1407 = vmatpush.msra.mxu3 %v1406_v17  ;;  %1258 = vmatpush.msra.mxu0 %v11536_v40  ;;  %v7448_v17 = vand.u32 4294901760, %v163_v49  ;;  %v7459_v40 = vsub.f32 %v165_v46, %v7433_v11 }
  0x97   :  { %1138 = vmatpush.msrb.mxu1 %v1137_v59  ;;  %1362 = vmatpush.msra.mxu2 %v7283_v50  ;;  %v11539_v59 = vand.u32 4294901760, %v7405_v51 }
  0x98   :  { %1413 = vmatpush.msra.mxu3 %v1412_v48  ;;  %1262 = vmatpush.msra.mxu0 %v11538_v63  ;;  %v1155_v63 = vand.u32 4294901760, %v1154_v0  ;;  %v7472_v9 = vsub.f32 %v163_v49, %v7448_v17  ;;  %v1441_v48 = vsub.f32 %v7429_v15, %v11542_v14  ;;  %v11543_v0 = vand.u32 4294901760, %v7195_v54  ;;  %v153_v14 = vld [vmem:[#allocation2 + $0x310] sm:$0xff] }
  0x99   :  { %v1429_v26 = vsub.f32 %v7405_v51, %v11539_v59  ;;  %1144 = vmatpush.msrb.mxu1 %v1143_v1  ;;  %1212 = vmatmul.f32.vlgmr.msrb.gmra.mxu2 %v7308_v62  ;;  %v11541_v59 = vand.u32 4294901760, %v7418_v58  ;;  %v7474_v1 = vand.u32 4294901760, %v159_v47  ;;  %v7484_v49 = vsub.f32 %v161_v22, %v7461_v12 }
  0x9a   :  { %1266 = vmatpush.msra.mxu0 %v11540_v2  ;;  %1364 = vmatpush.msra.mxu2 %v7297_v20  ;;  %v7486_v62 = vand.u32 4294901760, %v157_v36  ;;  %v11545_v54 = vand.u32 4294901760, %v7206_v6  ;;  %v11546_v6 = vand.u32 4294901760, %v7459_v40 }
  0x9b   :  { %v1435_v46 = vsub.f32 %v7418_v58, %v11541_v59  ;;  %1419 = vmatpush.msra.mxu3 %v1418_v44  ;;  %1150 = vmatpush.msrb.mxu1 %v1149_v18  ;;  %v1430_v2 = vand.u32 4294901760, %v1429_v26  ;;  %v11544_v44 = vand.u32 4294901760, %v7440_v25  ;;  %v7496_v22 = vsub.f32 %v159_v47, %v7474_v1 }
  0x9c   :  { %1251 = vmatmul.f32.vlgmr.msrb.gmra.mxu3 %v7340_v28  ;;  %1270 = vmatpush.msra.mxu0 %v11543_v0  ;;  %v11278_v0 = vand.u32 4294901760, %v7472_v9  ;;  %v7498_v59 = vand.u32 4294901760, %v155_v53  ;;  %v151_v28 = vld [vmem:[#allocation2 + $0x300] sm:$0xff]  ;;  %v7508_v47 = vsub.f32 %v157_v36, %v7486_v62 }
  0x9d   :  { %1366 = vmatpush.msra.mxu2 %v7332_v13  ;;  %1425 = vmatpush.msra.mxu3 %v1424_v34  ;;  %v1447_v18 = vsub.f32 %v7440_v25, %v11544_v44  ;;  %v1436_v26 = vand.u32 4294901760, %v1435_v46  ;;  %v1442_v34 = vand.u32 4294901760, %v1441_v48  ;;  %v1464_v46 = vand.u32 4294901760, %v7484_v49 }
  0x9e   :  { %1156 = vmatpush.msrb.mxu1 %v1155_v63  ;;  %1274 = vmatpush.msra.mxu0 %v11545_v54  ;;  %v1453_v63 = vsub.f32 %v7459_v40, %v11546_v6  ;;  %v7510_v44 = vand.u32 4294901760, %v153_v14  ;;  %v11547_v54 = vand.u32 4294901760, %v7219_v3  ;;  %v7521_v36 = vsub.f32 %v155_v53, %v7498_v59 }
  0x9f   :  { %1158 = vmatmul.f32.vlgmr.msrb.gmra.mxu1 %v7279_v39  ;;  %1368 = vmatpush.msra.mxu2 %v7348_v37  ;;  %v1448_v48 = vand.u32 4294901760, %v1447_v18  ;;  %v7523_v6 = vand.u32 4294901760, %v151_v28  ;;  %v11548_v3 = vand.u32 4294901760, %v7238_v33  ;;  %v1465_v18 = vsub.f32 %v7484_v49, %v1464_v46 }
  0xa0   :  { %1325 = vmatpush.msra.mxu1 %v7152_v38  ;;  %1431 = vmatpush.msra.mxu3 %v1430_v2  ;;  %v1459_v38 = vsub.f32 %v7472_v9, %v11278_v0  ;;  %v1470_v2 = vand.u32 4294901760, %v7496_v22  ;;  %v7534_v53 = vsub.f32 %v153_v14, %v7510_v44  ;;  %v11549_v0 = vand.u32 4294901760, %v7251_v32 }
  0xa1   :  { %1278 = vmatpush.msra.mxu0 %v11547_v54  ;;  %1370 = vmatpush.msra.mxu2 %v7372_v52  ;;  %v325_v54 = vld.sshfl [vmem:[#allocation1 + $0x18] sm:$0xff pattern:$0x73625140]  ;;  %v11550_v14 = vand.u32 4294901760, %v7262_v41 }
  0xa2   :  { %1327 = vmatpush.msra.mxu1 %v7159_v55  ;;  %1437 = vmatpush.msra.mxu3 %v1436_v26  ;;  %v1454_v55 = vand.u32 4294901760, %v1453_v63  ;;  %v1476_v26 = vand.u32 4294901760, %v7508_v47  ;;  %v1471_v33 = vsub.f32 %v7496_v22, %v1470_v2  ;;  %v7545_v63 = vsub.f32 %v151_v28, %v7523_v6 }
  0xa3   :  { %1282 = vmatpush.msra.mxu0 %v11548_v3  ;;  %1372 = vmatpush.msra.mxu2 %v7390_v4  ;;  %v7550_v32 = vand.u32 4294901760, %v325_v54  ;;  %v11552_v28 = vand.u32 4294901760, %v7274_v7  ;;  %v11553_v3 = vand.u32 4294901760, %v7290_v61 }
  0xa4   :  { %1329 = vmatpush.msra.mxu1 %v7169_v43  ;;  %1443 = vmatpush.msra.mxu3 %v1442_v34  ;;  %v1460_v43 = vand.u32 4294901760, %v1459_v38  ;;  %v1482_v34 = vand.u32 4294901760, %v7521_v36  ;;  %v1472_v41 = vand.u32 4294901760, %v1471_v33  ;;  %v1494_v38 = vand.u32 4294901760, %v7545_v63 }
  0xa5   :  { %1286 = vmatpush.msra.mxu0 %v11549_v0  ;;  %1374 = vmatpush.msra.mxu2 %v7399_v16  ;;  %11551 = vst [vmem:[#allocation29_spill] sm:$0xff] %v7550_v32  ;;  %v1477_v0 = vsub.f32 %v7508_v47, %v1476_v26  ;;  %v7569_v7 = vsub.f32 %v325_v54, %v7550_v32 }
  0xa6   :  { %1331 = vmatpush.msra.mxu1 %v7173_v35  ;;  %1449 = vmatpush.msra.mxu3 %v1448_v48  ;;  %v1466_v35 = vand.u32 4294901760, %v1465_v18  ;;  %v1488_v48 = vand.u32 4294901760, %v7534_v53  ;;  %v11555_v18 = vand.u32 4294901760, %v7304_v5  ;;  %v1495_v54 = vsub.f32 %v7545_v63, %v1494_v38 }
  0xa7   :  { %1290 = vmatpush.msra.mxu0 %v11550_v14  ;;  %1376 = vmatpush.msra.mxu2 %v7413_v19  ;;  %11554 = vst [vmem:[#allocation30_spill] sm:$0xff] %v7569_v7 }
  0xa8   :  { %1333 = vmatpush.msra.mxu1 %v7183_v24  ;;  %1455 = vmatpush.msra.mxu3 %v1454_v55  ;;  %v1483_v24 = vsub.f32 %v7521_v36, %v1482_v34  ;;  %v1489_v55 = vsub.f32 %v7534_v53, %v1488_v48  ;;  %v1496_v33 = vand.u32 4294901760, %v1495_v54 }
  0xa9   :  { %1294 = vmatpush.msra.mxu0 %v11552_v28  ;;  %1378 = vmatpush.msra.mxu2 %v7433_v11 }
  0xaa   :  { %1335 = vmatpush.msra.mxu1 %v7197_v60  ;;  %1461 = vmatpush.msra.mxu3 %v1460_v43  ;;  %v1478_v60 = vand.u32 4294901760, %v1477_v0  ;;  %v1484_v61 = vand.u32 4294901760, %v1483_v24  ;;  %v7586_v43 = vand.u32 4294901760, %v7569_v7  ;;  %v1490_v5 = vand.u32 4294901760, %v1489_v55  ;;  %v11570_v0 = vld [vmem:[#allocation25_spill] sm:$0xff] }
  0xab   :  { %1298 = vmatpush.msra.mxu0 %v11553_v3  ;;  %1380 = vmatpush.msra.mxu2 %v7448_v17  ;;  %v11573_v24 = vand.u32 4294901760, %v7418_v58  ;;  %v197_v3 = vld [vmem:[#allocation2 + $0x470] sm:$0xff] }
  0xac   :  { %1337 = vmatpush.msra.mxu1 %v7213_v45  ;;  %1467 = vmatpush.msra.mxu3 %v1466_v35  ;;  %v11556_v45 = vand.u32 4294901760, %v7322_v10  ;;  %11557 = vst [vmem:[#allocation31_spill] sm:$0xff] %v7586_v43  ;;  %v11559_v10 = vand.u32 4294901760, %v7360_v31  ;;  %v1396_v14 = vsub.f32 %v7569_v7, %v7586_v43  ;;  %v11568_v35 = vld [vmem:[#allocation27_spill] sm:$0xff] }
  0xad   :  { %1302 = vmatpush.msra.mxu0 %v11555_v18  ;;  %1382 = vmatpush.msra.mxu2 %v7461_v12  ;;  %v11571_v28 = vand.u32 4294901760, %v11568_v35  ;;  %v195_v18 = vld [vmem:[#allocation2 + $0x460] sm:$0xff] }
  0xae   :  { %1339 = vmatpush.msra.mxu1 %v7227_v27  ;;  %1473 = vmatpush.msra.mxu3 %v1472_v41  ;;  %v11558_v27 = vand.u32 4294901760, %v7345_v56  ;;  %v11565_v56 = vld [vmem:[#allocation26_spill] sm:$0xff]  ;;  %v11572_v41 = vand.u32 4294901760, %v7405_v51 }
  0xaf   :  { %1306 = vmatpush.msra.mxu0 %v11556_v45  ;;  %1384 = vmatpush.msra.mxu2 %v7474_v1 }
  0xb0   :  { %1341 = vmatpush.msra.mxu1 %v7240_v30  ;;  %1479 = vmatpush.msra.mxu3 %v1478_v60  ;;  %v11560_v30 = vand.u32 4294901760, %v7388_v42  ;;  %v11562_v42 = vld [vmem:[#allocation23_spill] sm:$0xff] }
  0xb1   :  { %1310 = vmatpush.msra.mxu0 %v11558_v27  ;;  %1386 = vmatpush.msra.mxu2 %v7486_v62  ;;  %v11566_v31 = vand.u32 4294901760, %v11562_v42 }
  0xb2   :  { %1343 = vmatpush.msra.mxu1 %v7253_v57  ;;  %1485 = vmatpush.msra.mxu3 %v1484_v61  ;;  %v7605_v57 = vand.u32 4294901760, %v1396_v14 }
  0xb3   :  { %1314 = vmatpush.msra.mxu0 %v11559_v10  ;;  %1388 = vmatpush.msra.mxu2 %v7498_v59 }
  0xb4   :  { %1345 = vmatpush.msra.mxu1 %v7264_v21  ;;  %1491 = vmatpush.msra.mxu3 %v1490_v5  ;;  %11561 = vst [vmem:[#allocation32_spill] sm:$0xff] %v7605_v57  ;;  %v11563_v21 = vand.u32 4294901760, %v7315_v8  ;;  %v7759_v5 = vand.u32 4294901760, %v197_v3 }
  0xb5   :  { %1318 = vmatpush.msra.mxu0 %v11560_v30  ;;  %1390 = vmatpush.msra.mxu2 %v7510_v44  ;;  %v7772_v30 = vand.u32 4294901760, %v195_v18 }
  0xb6   :  { %1347 = vmatpush.msra.mxu1 %v7276_v29  ;;  %1497 = vmatpush.msra.mxu3 %v1496_v33  ;;  %v11564_v29 = vld [vmem:[#allocation13_spill] sm:$0xff] }
  0xb7   :  { %1320 = vmatmul.f32.vlgmr.msra.gmra.mxu0 %v7279_v39  ;;  %1392 = vmatpush.msra.mxu2 %v7523_v6  ;;  %v193_v33 = vld [vmem:[#allocation2 + $0x450] sm:$0xff] }
  0xb8   :  { %1666 = vmatpush.msrb.mxu3 %v7283_v50  ;;  %1505 = vmatpush.msrb.mxu0 %v7315_v8  ;;  %v11569_v8 = vand.u32 4294901760, %v11565_v56 }
  0xb9   :  { %1349 = vmatpush.msra.mxu1 %v7292_v23  ;;  %1599 = vmatpush.msrb.mxu2 %v11563_v21  ;;  %v11567_v23 = vld [vmem:[#allocation14_spill] sm:$0xff] }
  0xba   :  { %1668 = vmatpush.msrb.mxu3 %v7297_v20  ;;  %1508 = vmatpush.msrb.mxu0 %v11562_v42  ;;  %v191_v21 = vld [vmem:[#allocation2 + $0x440] sm:$0xff] }
  0xbb   :  { %1351 = vmatpush.msra.mxu1 %v11564_v29  ;;  %1398 = vmatmul.f32.vlgmr.msra.gmra.mxu2 %v7605_v57 }
  0xbc   :  { %1511 = vmatpush.msrb.mxu0 %v11565_v56  ;;  %1603 = vmatpush.msrb.mxu2 %v11566_v31  ;;  %v7781_v56 = vsub.f32 %v197_v3, %v7759_v5  ;;  %v7783_v31 = vand.u32 4294901760, %v193_v33 }
  0xbd   :  { %1670 = vmatpush.msrb.mxu3 %v7332_v13  ;;  %1353 = vmatpush.msra.mxu1 %v11567_v23 }
  0xbe   :  { %1499 = vmatmul.f32.vlgmr.msra.gmra.mxu3 %v7550_v32  ;;  %1514 = vmatpush.msrb.mxu0 %v11568_v35  ;;  %v245_v35 = vld [vmem:[#allocation2 + $0x5f0] sm:$0xff] }
  0xbf   :  { %1607 = vmatpush.msrb.mxu2 %v11569_v8  ;;  %1672 = vmatpush.msrb.mxu3 %v7348_v37 }
  0xc0   :  { %1355 = vmatpush.msra.mxu1 %v11570_v0  ;;  %1517 = vmatpush.msrb.mxu0 %v7405_v51  ;;  %v54_v51 = vld [vmem:[%s11210_s0 + $0x8] sm:$0xff] }
  0xc1   :  { %1357 = vmatmul.f32.vlgmr.msra.gmra.mxu1 %v7279_v39  ;;  %1611 = vmatpush.msrb.mxu2 %v11571_v28  ;;  %321 = vst [vmem:[#allocation1 + $0x20] ss:$4 sm:$0xff] %v54_v51  ;;  %v189_v28 = vld [vmem:[#allocation2 + $0x430] sm:$0xff] }
  0xc2   :  { %1558 = vmatpush.msrb.mxu1 %v7283_v50  ;;  %1674 = vmatpush.msrb.mxu3 %v7372_v52  ;;  %v11574_v50 = vand.u32 4294901760, %v7429_v15 }
  0xc3   :  { %1520 = vmatpush.msrb.mxu0 %v7418_v58  ;;  %1615 = vmatpush.msrb.mxu2 %v11572_v41  ;;  %v213_v58 = vld [vmem:[#allocation2 + $0x4f0] sm:$0xff]  ;;  %v7793_v41 = vsub.f32 %v195_v18, %v7772_v30 }
  0xc4   :  { %1560 = vmatpush.msrb.mxu1 %v7297_v20  ;;  %1676 = vmatpush.msrb.mxu3 %v7390_v4  ;;  %v11575_v20 = vand.u32 4294901760, %v7440_v25 }
  0xc5   :  { %1523 = vmatpush.msrb.mxu0 %v7429_v15  ;;  %1619 = vmatpush.msrb.mxu2 %v11573_v24  ;;  %v7795_v24 = vand.u32 4294901760, %v191_v21  ;;  %v11281_v3 = vand.u32 4294901760, %v7793_v41 }
  0xc6   :  { %1562 = vmatpush.msrb.mxu1 %v7332_v13  ;;  %1678 = vmatpush.msrb.mxu3 %v7399_v16  ;;  %v11577_v13 = vand.u32 4294901760, %v7472_v9 }
  0xc7   :  { %1526 = vmatpush.msrb.mxu0 %v7440_v25  ;;  %1623 = vmatpush.msrb.mxu2 %v11574_v50  ;;  %v207_v25 = vld [vmem:[#allocation2 + $0x4c0] sm:$0xff] }
  0xc8   :  { %1564 = vmatpush.msrb.mxu1 %v7348_v37  ;;  %1680 = vmatpush.msrb.mxu3 %v7413_v19  ;;  %v11576_v37 = vand.u32 4294901760, %v7459_v40  ;;  %v326_v29 = vld.sshfl [vmem:[#allocation1 + $0x20] sm:$0xff pattern:$0x73625140] }
  0xc9   :  { %1529 = vmatpush.msrb.mxu0 %v7459_v40  ;;  %1627 = vmatpush.msrb.mxu2 %v11575_v20  ;;  %v7693_v40 = vand.u32 4294901760, %v207_v25  ;;  %v7798_v51 = vand.u32 4294901760, %v326_v29  ;;  %v243_v20 = vld [vmem:[#allocation2 + $0x5e0] sm:$0xff] }
  0xca   :  { %1566 = vmatpush.msrb.mxu1 %v7372_v52  ;;  %1682 = vmatpush.msrb.mxu3 %v7433_v11  ;;  %v211_v52 = vld [vmem:[#allocation2 + $0x4e0] sm:$0xff] }
  0xcb   :  { %1532 = vmatpush.msrb.mxu0 %v7472_v9  ;;  %1631 = vmatpush.msrb.mxu2 %v11576_v37  ;;  %v7678_v15 = vand.u32 4294901760, %v211_v52  ;;  %11578 = vst [vmem:[#allocation23_spill] sm:$0xff] %v7798_v51  ;;  %v7827_v18 = vsub.f32 %v326_v29, %v7798_v51  ;;  %v239_v29 = vld [vmem:[#allocation2 + $0x5c0] sm:$0xff] }
  0xcc   :  { %1568 = vmatpush.msrb.mxu1 %v7390_v4  ;;  %1684 = vmatpush.msrb.mxu3 %v7448_v17  ;;  %v7671_v4 = vand.u32 4294901760, %v213_v58 }
  0xcd   :  { %1535 = vmatpush.msrb.mxu0 %v7484_v49  ;;  %1635 = vmatpush.msrb.mxu2 %v11577_v13  ;;  %v203_v49 = vld [vmem:[#allocation2 + $0x4a0] sm:$0xff]  ;;  %v7802_v13 = vand.u32 4294901760, %v245_v35  ;;  %11579 = vst [vmem:[#allocation13_spill] sm:$0xff] %v7827_v18 }
  0xce   :  { %1570 = vmatpush.msrb.mxu1 %v7399_v16  ;;  %1686 = vmatpush.msrb.mxu3 %v7461_v12  ;;  %v209_v16 = vld [vmem:[#allocation2 + $0x4d0] sm:$0xff] }
  0xcf   :  { %1538 = vmatpush.msrb.mxu0 %v7496_v22  ;;  %1639 = vmatpush.msrb.mxu2 %v1464_v46  ;;  %v7688_v9 = vand.u32 4294901760, %v209_v16 }
  0xd0   :  { %1572 = vmatpush.msrb.mxu1 %v7413_v19  ;;  %1688 = vmatpush.msrb.mxu3 %v7474_v1  ;;  %v7686_v19 = vsub.f32 %v213_v58, %v7671_v4 }
  0xd1   :  { %1541 = vmatpush.msrb.mxu0 %v7508_v47  ;;  %1643 = vmatpush.msrb.mxu2 %v1470_v2  ;;  %v7708_v46 = vsub.f32 %v209_v16, %v7688_v9  ;;  %v7714_v47 = vsub.f32 %v207_v25, %v7693_v40  ;;  %v7716_v2 = vand.u32 4294901760, %v203_v49  ;;  %v7811_v16 = vand.u32 4294901760, %v189_v28 }
  0xd2   :  { %1574 = vmatpush.msrb.mxu1 %v7433_v11  ;;  %1690 = vmatpush.msrb.mxu3 %v7486_v62  ;;  %v205_v11 = vld [vmem:[#allocation2 + $0x4b0] sm:$0xff]  ;;  %v11279_v25 = vand.u32 4294901760, %v7781_v56 }
  0xd3   :  { %1544 = vmatpush.msrb.mxu0 %v7521_v36  ;;  %1647 = vmatpush.msrb.mxu2 %v1476_v26  ;;  %v7703_v22 = vand.u32 4294901760, %v205_v11  ;;  %v201_v36 = vld [vmem:[#allocation2 + $0x490] sm:$0xff] }
  0xd4   :  { %1576 = vmatpush.msrb.mxu1 %v7448_v17  ;;  %1692 = vmatpush.msrb.mxu3 %v7498_v59  ;;  %v7698_v17 = vsub.f32 %v211_v52, %v7678_v15  ;;  %v7809_v52 = vsub.f32 %v193_v33, %v7783_v31 }
  0xd5   :  { %1547 = vmatpush.msrb.mxu0 %v7534_v53  ;;  %1651 = vmatpush.msrb.mxu2 %v1482_v34  ;;  %v7725_v26 = vsub.f32 %v205_v11, %v7703_v22  ;;  %v199_v53 = vld [vmem:[#allocation2 + $0x480] sm:$0xff] }
  0xd6   :  { %1578 = vmatpush.msrb.mxu1 %v7461_v12  ;;  %1694 = vmatpush.msrb.mxu3 %v7510_v44  ;;  %v11289_v12 = vand.u32 4294901760, %v7686_v19  ;;  %v7746_v55 = vand.u32 4294901760, %v199_v53  ;;  %v187_v11 = vld [vmem:[#allocation2 + $0x420] sm:$0xff] }
  0xd7   :  { %1550 = vmatpush.msrb.mxu0 %v7545_v63  ;;  %1655 = vmatpush.msrb.mxu2 %v1488_v48  ;;  %v11287_v48 = vand.u32 4294901760, %v7708_v46  ;;  %v7738_v63 = vsub.f32 %v203_v49, %v7716_v2 }
  0xd8   :  { %1580 = vmatpush.msrb.mxu1 %v7474_v1  ;;  %1696 = vmatpush.msrb.mxu3 %v7523_v6  ;;  %v11288_v1 = vand.u32 4294901760, %v7698_v17  ;;  %v1746_v34 = vsub.f32 %v7686_v19, %v11289_v12  ;;  %v7770_v14 = vsub.f32 %v199_v53, %v7746_v55 }
  0xd9   :  { %1553 = vmatmul.f32.vlgmr.msrb.gmra.mxu0 %v7569_v7  ;;  %1659 = vmatpush.msrb.mxu2 %v1494_v38  ;;  %v11285_v38 = vand.u32 4294901760, %v7714_v47  ;;  %v1758_v54 = vsub.f32 %v7708_v46, %v11287_v48  ;;  %v11283_v27 = vand.u32 4294901760, %v7738_v63 }
  0xda   :  { %1899 = vmatpush.msra.mxu3 %v7671_v4  ;;  %1703 = vmatpush.msra.mxu0 %v7671_v4  ;;  %v1752_v60 = vsub.f32 %v7698_v17, %v11288_v1  ;;  %v1747_v61 = vand.u32 4294901760, %v1746_v34  ;;  %v11280_v50 = vand.u32 4294901760, %v7770_v14  ;;  %v7823_v34 = vsub.f32 %v191_v21, %v7795_v24 }
  0xdb   :  { %1582 = vmatpush.msrb.mxu1 %v7486_v62  ;;  %1846 = vmatpush.msra.mxu2 %v7686_v19  ;;  %v7732_v62 = vand.u32 4294901760, %v201_v36  ;;  %v1776_v0 = vsub.f32 %v7738_v63, %v11283_v27  ;;  %v11286_v21 = vand.u32 4294901760, %v7809_v52 }
  0xdc   :  { %1901 = vmatpush.msra.mxu3 %v7678_v15  ;;  %1705 = vmatpush.msra.mxu0 %v7678_v15  ;;  %v1753_v10 = vand.u32 4294901760, %v1752_v60  ;;  %v1788_v53 = vsub.f32 %v7770_v14, %v11280_v50  ;;  %v185_v60 = vld [vmem:[#allocation2 + $0x410] sm:$0xff]  ;;  %v7867_v50 = vand.u32 4294901760, %v239_v29 }
  0xdd   :  { %1584 = vmatpush.msrb.mxu1 %v7498_v59  ;;  %1661 = vmatmul.f32.vlgmr.msrb.gmra.mxu2 %v7550_v32  ;;  %v11284_v59 = vand.u32 4294901760, %v7725_v26  ;;  %v7757_v45 = vsub.f32 %v201_v36, %v7732_v62  ;;  %v1777_v49 = vand.u32 4294901760, %v1776_v0  ;;  %v7816_v36 = vand.u32 4294901760, %v243_v20 }
  0xde   :  { %1707 = vmatpush.msra.mxu0 %v7688_v9  ;;  %1849 = vmatpush.msra.mxu2 %v7698_v17 }
  0xdf   :  { %1903 = vmatpush.msra.mxu3 %v7688_v9  ;;  %1586 = vmatpush.msrb.mxu1 %v7510_v44  ;;  %v1764_v44 = vsub.f32 %v7714_v47, %v11285_v38  ;;  %v1770_v42 = vsub.f32 %v7725_v26, %v11284_v59  ;;  %v11282_v23 = vand.u32 4294901760, %v7757_v45 }
  0xe0   :  { %1698 = vmatmul.f32.vlgmr.msrb.gmra.mxu3 %v7550_v32  ;;  %1709 = vmatpush.msra.mxu0 %v7693_v40  ;;  %v231_v32 = vld [vmem:[#allocation2 + $0x580] sm:$0xff] }
  0xe1   :  { %1852 = vmatpush.msra.mxu2 %v7708_v46  ;;  %1905 = vmatpush.msra.mxu3 %v7693_v40  ;;  %v1765_v8 = vand.u32 4294901760, %v1764_v44  ;;  %v1771_v37 = vand.u32 4294901760, %v1770_v42  ;;  %v1782_v58 = vsub.f32 %v7757_v45, %v11282_v23  ;;  %v7834_v44 = vsub.f32 %v245_v35, %v7802_v13  ;;  %v183_v35 = vld [vmem:[#allocation2 + $0x400] sm:$0xff] }
  0xe2   :  { %1588 = vmatpush.msrb.mxu1 %v7523_v6  ;;  %1711 = vmatpush.msra.mxu0 %v7703_v22  ;;  %v1759_v6 = vand.u32 4294901760, %v1758_v54  ;;  %v7831_v54 = vand.u32 4294901760, %v187_v11  ;;  %v7841_v42 = vsub.f32 %v189_v28, %v7811_v16  ;;  %v1789_v28 = vand.u32 4294901760, %v1788_v53  ;;  %v237_v53 = vld [vmem:[#allocation2 + $0x5b0] sm:$0xff] }
  0xe3   :  { %1592 = vmatmul.f32.vlgmr.msrb.gmra.mxu1 %v7586_v43  ;;  %1855 = vmatpush.msra.mxu2 %v7714_v47  ;;  %v1783_v33 = vand.u32 4294901760, %v1782_v58  ;;  %v11290_v58 = vand.u32 4294901760, %v7823_v34  ;;  %v1806_v23 = vsub.f32 %v7809_v52, %v11286_v21  ;;  %v7873_v27 = vand.u32 4294901760, %v183_v35 }
  0xe4   :  { %1748 = vmatpush.msra.mxu1 %v1747_v61  ;;  %1907 = vmatpush.msra.mxu3 %v7703_v22  ;;  %v241_v61 = vld [vmem:[#allocation2 + $0x5d0] sm:$0xff]  ;;  %11580 = vst [vmem:[#allocation26_spill] sm:$0xff] %v7831_v54  ;;  %v11296_v59 = vand.u32 4294901760, %v7841_v42  ;;  %v7891_v12 = vand.u32 4294901760, %v237_v53 }
  0xe5   :  { %1713 = vmatpush.msra.mxu0 %v7716_v2  ;;  %1858 = vmatpush.msra.mxu2 %v7725_v26  ;;  %v7851_v0 = vand.u32 4294901760, %v241_v61  ;;  %11584 = vst [vmem:[#allocation33_spill] sm:$0xff] %v7873_v27  ;;  %v1812_v48 = vsub.f32 %v7823_v34, %v11290_v58  ;;  %v1807_v58 = vand.u32 4294901760, %v1806_v23  ;;  %v7907_v43 = vsub.f32 %v183_v35, %v7873_v27 }
  0xe6   :  { %1754 = vmatpush.msra.mxu1 %v1753_v10  ;;  %1909 = vmatpush.msra.mxu3 %v7716_v2  ;;  %v1794_v10 = vsub.f32 %v7781_v56, %v11279_v25  ;;  %v7859_v25 = vand.u32 4294901760, %v7827_v18  ;;  %v7924_v57 = vsub.f32 %v237_v53, %v7891_v12 }
  0xe7   :  { %1715 = vmatpush.msra.mxu0 %v7732_v62  ;;  %1861 = vmatpush.msra.mxu2 %v7738_v63  ;;  %v7883_v38 = vsub.f32 %v241_v61, %v7851_v0  ;;  %v1813_v35 = vand.u32 4294901760, %v1812_v48  ;;  %v227_v48 = vld [vmem:[#allocation2 + $0x560] sm:$0xff] }
  0xe8   :  { %1760 = vmatpush.msra.mxu1 %v1759_v6  ;;  %1911 = vmatpush.msra.mxu3 %v7732_v62  ;;  %v7846_v6 = vand.u32 4294901760, %v185_v60  ;;  %11583 = vst [vmem:[#allocation25_spill] sm:$0xff] %v7859_v25  ;;  %v1737_v1 = vsub.f32 %v7827_v18, %v7859_v25 }
  0xe9   :  { %1717 = vmatpush.msra.mxu0 %v7746_v55  ;;  %1864 = vmatpush.msra.mxu2 %v7757_v45  ;;  %11585 = vst [vmem:[#allocation34_spill] sm:$0xff] %v7883_v38 }
  0xea   :  { %1766 = vmatpush.msra.mxu1 %v1765_v8  ;;  %1913 = vmatpush.msra.mxu3 %v7746_v55  ;;  %11581 = vst [vmem:[#allocation14_spill] sm:$0xff] %v7846_v6  ;;  %v7849_v8 = vsub.f32 %v243_v20, %v7816_v36  ;;  %v7864_v20 = vsub.f32 %v187_v11, %v7831_v54 }
  0xeb   :  { %1719 = vmatpush.msra.mxu0 %v7759_v5  ;;  %1867 = vmatpush.msra.mxu2 %v7770_v14  ;;  %v7879_v11 = vsub.f32 %v185_v60, %v7846_v6  ;;  %v233_v60 = vld [vmem:[#allocation2 + $0x590] sm:$0xff] }
  0xec   :  { %1772 = vmatpush.msra.mxu1 %v1771_v37  ;;  %1915 = vmatpush.msra.mxu3 %v7759_v5  ;;  %11582 = vst [vmem:[#allocation27_spill] sm:$0xff] %v7849_v8  ;;  %v1800_v37 = vsub.f32 %v7793_v41, %v11281_v3  ;;  %v1795_v3 = vand.u32 4294901760, %v1794_v10  ;;  %v235_v10 = vld [vmem:[#allocation2 + $0x5a0] sm:$0xff]  ;;  %v11589_v23 = vand.u32 4294901760, %v7864_v20 }
  0xed   :  { %1721 = vmatpush.msra.mxu0 %v7772_v30  ;;  %1870 = vmatpush.msra.mxu2 %v7781_v56  ;;  %v7909_v7 = vand.u32 4294901760, %v235_v10 }
  0xee   :  { %1778 = vmatpush.msra.mxu1 %v1777_v49  ;;  %1917 = vmatpush.msra.mxu3 %v7772_v30  ;;  %v11295_v49 = vand.u32 4294901760, %v7834_v44  ;;  %v1801_v21 = vand.u32 4294901760, %v1800_v37  ;;  %v7900_v37 = vsub.f32 %v239_v29, %v7867_v50  ;;  %v11587_v29 = vand.u32 4294901760, %v7849_v8 }
  0xef   :  { %1723 = vmatpush.msra.mxu0 %v7783_v31  ;;  %1873 = vmatpush.msra.mxu2 %v7793_v41  ;;  %v7937_v53 = vsub.f32 %v235_v10, %v7909_v7  ;;  %v11594_v10 = vand.u32 4294901760, %v7907_v43 }
  0xf0   :  { %1784 = vmatpush.msra.mxu1 %v1783_v33  ;;  %1919 = vmatpush.msra.mxu3 %v7783_v31  ;;  %v2087_v61 = vsub.f32 %v7834_v44, %v11295_v49  ;;  %11586 = vst [vmem:[#allocation35_spill] sm:$0xff] %v7900_v37  ;;  %v1818_v33 = vsub.f32 %v7841_v42, %v11296_v59  ;;  %v7921_v59 = vand.u32 4294901760, %v1737_v1 }
  0xf1   :  { %1725 = vmatpush.msra.mxu0 %v7795_v24  ;;  %1876 = vmatpush.msra.mxu2 %v7809_v52  ;;  %v1824_v49 = vsub.f32 %v7864_v20, %v11589_v23  ;;  %v11590_v23 = vand.u32 4294901760, %v7883_v38 }
  0xf2   :  { %1790 = vmatpush.msra.mxu1 %v1789_v28  ;;  %1921 = vmatpush.msra.mxu3 %v7795_v24  ;;  %v7918_v28 = vand.u32 4294901760, %v233_v60  ;;  %11588 = vst [vmem:[#allocation36_spill] sm:$0xff] %v7921_v59  ;;  %v1819_v1 = vand.u32 4294901760, %v1818_v33 }
  0xf3   :  { %1727 = vmatpush.msra.mxu0 %v7811_v16  ;;  %1879 = vmatpush.msra.mxu2 %v7823_v34  ;;  %v2099_v39 = vsub.f32 %v7883_v38, %v11590_v23  ;;  %v11592_v23 = vand.u32 4294901760, %v7900_v37 }
  0xf4   :  { %1796 = vmatpush.msra.mxu1 %v1795_v3  ;;  %1923 = vmatpush.msra.mxu3 %v7811_v16  ;;  %v2093_v3 = vsub.f32 %v7849_v8, %v11587_v29  ;;  %v2088_v29 = vand.u32 4294901760, %v2087_v61  ;;  %v11591_v8 = vand.u32 4294901760, %v7879_v11  ;;  %v7948_v33 = vsub.f32 %v233_v60, %v7918_v28  ;;  %v225_v60 = vld [vmem:[#allocation2 + $0x550] sm:$0xff] }
  0xf5   :  { %1729 = vmatpush.msra.mxu0 %v7831_v54  ;;  %1882 = vmatpush.msra.mxu2 %v7841_v42  ;;  %v2105_v38 = vsub.f32 %v7900_v37, %v11592_v23  ;;  %v223_v37 = vld [vmem:[#allocation2 + $0x540] sm:$0xff] }
  0xf6   :  { %1802 = vmatpush.msra.mxu1 %v1801_v21  ;;  %1925 = vmatpush.msra.mxu3 %v7831_v54  ;;  %v7932_v21 = vand.u32 4294901760, %v231_v32  ;;  %v229_v54 = vld [vmem:[#allocation2 + $0x570] sm:$0xff]  ;;  %v2094_v61 = vand.u32 4294901760, %v2093_v3  ;;  %v1825_v3 = vand.u32 4294901760, %v1824_v49  ;;  %v2100_v49 = vand.u32 4294901760, %v2099_v39 }
  0xf7   :  { %1731 = vmatpush.msra.mxu0 %v7846_v6  ;;  %1885 = vmatpush.msra.mxu2 %v7864_v20  ;;  %v2106_v39 = vand.u32 4294901760, %v2105_v38  ;;  %v11599_v38 = vand.u32 4294901760, %v7948_v33 }
  0xf8   :  { %1808 = vmatpush.msra.mxu1 %v1807_v58  ;;  %1927 = vmatpush.msra.mxu3 %v7846_v6  ;;  %v1830_v58 = vsub.f32 %v7879_v11, %v11591_v8  ;;  %v7952_v6 = vand.u32 4294901760, %v229_v54  ;;  %v7959_v8 = vsub.f32 %v231_v32, %v7932_v21 }
  0xf9   :  { %1733 = vmatpush.msra.mxu0 %v7873_v27  ;;  %1888 = vmatpush.msra.mxu2 %v7879_v11 }
  0xfa   :  { %1814 = vmatpush.msra.mxu1 %v1813_v35  ;;  %1929 = vmatpush.msra.mxu3 %v7873_v27  ;;  %v11593_v35 = vand.u32 4294901760, %v7686_v19  ;;  %v1836_v27 = vsub.f32 %v7907_v43, %v11594_v10  ;;  %v1831_v23 = vand.u32 4294901760, %v1830_v58  ;;  %v11595_v19 = vand.u32 4294901760, %v7698_v17  ;;  %v221_v58 = vld [vmem:[#allocation2 + $0x530] sm:$0xff] }
  0xfb   :  { %1739 = vmatmul.f32.vlgmr.msra.gmra.mxu0 %v7921_v59  ;;  %1891 = vmatpush.msra.mxu2 %v7907_v43  ;;  %v7980_v59 = vand.u32 4294901760, %v225_v60  ;;  %v11597_v17 = vand.u32 4294901760, %v7708_v46  ;;  %v219_v46 = vld [vmem:[#allocation2 + $0x520] sm:$0xff] }
  0xfc   :  { %2089 = vmatpush.msrb.mxu3 %v2088_v29  ;;  %1940 = vmatpush.msrb.mxu0 %v11593_v35  ;;  %v7967_v29 = vand.u32 4294901760, %v227_v48  ;;  %v7978_v35 = vsub.f32 %v229_v54, %v7952_v6 }
  0xfd   :  { %1820 = vmatpush.msra.mxu1 %v1819_v1  ;;  %2044 = vmatpush.msrb.mxu2 %v7802_v13  ;;  %v11596_v1 = vand.u32 4294901760, %v7924_v57 }
  0xfe   :  { %2095 = vmatpush.msrb.mxu3 %v2094_v61  ;;  %1944 = vmatpush.msrb.mxu0 %v11595_v19  ;;  %v1837_v19 = vand.u32 4294901760, %v1836_v27  ;;  %v7991_v32 = vsub.f32 %v227_v48, %v7967_v29  ;;  %v2123_v61 = vsub.f32 %v7948_v33, %v11599_v38  ;;  %v11600_v27 = vand.u32 4294901760, %v7714_v47  ;;  %v217_v38 = vld [vmem:[#allocation2 + $0x510] sm:$0xff] }
  0xff   :  { %v2111_v10 = vsub.f32 %v7924_v57, %v11596_v1  ;;  %1826 = vmatpush.msra.mxu1 %v1825_v3  ;;  %1894 = vmatmul.f32.vlgmr.msra.gmra.mxu2 %v7827_v18  ;;  %v11598_v1 = vand.u32 4294901760, %v7937_v53  ;;  %v7993_v3 = vand.u32 4294901760, %v223_v37  ;;  %v8003_v48 = vsub.f32 %v225_v60, %v7980_v59 }
 0x100   :  { %1948 = vmatpush.msrb.mxu0 %v11597_v17  ;;  %2046 = vmatpush.msrb.mxu2 %v7816_v36  ;;  %v8005_v18 = vand.u32 4294901760, %v221_v58  ;;  %v11602_v47 = vand.u32 4294901760, %v7725_v26  ;;  %v11603_v26 = vand.u32 4294901760, %v7978_v35 }
 0x101   :  { %v2117_v54 = vsub.f32 %v7937_v53, %v11598_v1  ;;  %2101 = vmatpush.msrb.mxu3 %v2100_v49  ;;  %1832 = vmatpush.msra.mxu1 %v1831_v23  ;;  %v2112_v17 = vand.u32 4294901760, %v2111_v10  ;;  %v11601_v49 = vand.u32 4294901760, %v7959_v8  ;;  %v8015_v60 = vsub.f32 %v223_v37, %v7993_v3 }
 0x102   :  { %1933 = vmatmul.f32.vlgmr.msra.gmra.mxu3 %v7859_v25  ;;  %1952 = vmatpush.msrb.mxu0 %v11600_v27  ;;  %v11312_v27 = vand.u32 4294901760, %v7991_v32  ;;  %v8017_v1 = vand.u32 4294901760, %v219_v46  ;;  %v215_v25 = vld [vmem:[#allocation2 + $0x500] sm:$0xff]  ;;  %v8027_v37 = vsub.f32 %v221_v58, %v8005_v18 }
 0x103   :  { %2048 = vmatpush.msrb.mxu2 %v7851_v0  ;;  %2107 = vmatpush.msrb.mxu3 %v2106_v39  ;;  %v2129_v23 = vsub.f32 %v7959_v8, %v11601_v49  ;;  %v2118_v10 = vand.u32 4294901760, %v2117_v54  ;;  %v2124_v39 = vand.u32 4294901760, %v2123_v61  ;;  %v2146_v54 = vand.u32 4294901760, %v8003_v48 }
 0x104   :  { %1838 = vmatpush.msra.mxu1 %v1837_v19  ;;  %1956 = vmatpush.msrb.mxu0 %v11602_v47  ;;  %v2135_v19 = vsub.f32 %v7978_v35, %v11603_v26  ;;  %v8029_v49 = vand.u32 4294901760, %v217_v38  ;;  %v11604_v47 = vand.u32 4294901760, %v7738_v63  ;;  %v8040_v58 = vsub.f32 %v219_v46, %v8017_v1 }
 0x105   :  { %1840 = vmatmul.f32.vlgmr.msra.gmra.mxu1 %v7798_v51  ;;  %2050 = vmatpush.msrb.mxu2 %v7867_v50  ;;  %v2130_v61 = vand.u32 4294901760, %v2129_v23  ;;  %v8042_v26 = vand.u32 4294901760, %v215_v25  ;;  %v11605_v63 = vand.u32 4294901760, %v7757_v45  ;;  %v2147_v23 = vsub.f32 %v8003_v48, %v2146_v54 }
 0x106   :  { %2007 = vmatpush.msrb.mxu1 %v7671_v4  ;;  %2113 = vmatpush.msrb.mxu3 %v2112_v17  ;;  %v2141_v4 = vsub.f32 %v7991_v32, %v11312_v27  ;;  %v2152_v17 = vand.u32 4294901760, %v8015_v60  ;;  %v8053_v46 = vsub.f32 %v217_v38, %v8029_v49  ;;  %v11606_v27 = vand.u32 4294901760, %v7770_v14 }
 0x107   :  { %1960 = vmatpush.msrb.mxu0 %v11604_v47  ;;  %2052 = vmatpush.msrb.mxu2 %v7891_v12  ;;  %v327_v47 = vld.sshfl [vmem:[#allocation1 + $0x28] sm:$0xff pattern:$0x73625140]  ;;  %v11607_v38 = vand.u32 4294901760, %v7781_v56 }
 0x108   :  { %2009 = vmatpush.msrb.mxu1 %v7678_v15  ;;  %2119 = vmatpush.msrb.mxu3 %v2118_v10  ;;  %v2136_v15 = vand.u32 4294901760, %v2135_v19  ;;  %v2158_v10 = vand.u32 4294901760, %v8027_v37  ;;  %v2153_v45 = vsub.f32 %v8015_v60, %v2152_v17  ;;  %v8064_v19 = vsub.f32 %v215_v25, %v8042_v26 }
 0x109   :  { %1964 = vmatpush.msrb.mxu0 %v11605_v63  ;;  %2054 = vmatpush.msrb.mxu2 %v7909_v7  ;;  %v8069_v14 = vand.u32 4294901760, %v327_v47  ;;  %v11609_v25 = vand.u32 4294901760, %v7793_v41  ;;  %v11610_v63 = vand.u32 4294901760, %v7809_v52 }
 0x10a   :  { %2011 = vmatpush.msrb.mxu1 %v7688_v9  ;;  %2125 = vmatpush.msrb.mxu3 %v2124_v39  ;;  %v2142_v9 = vand.u32 4294901760, %v2141_v4  ;;  %v2164_v39 = vand.u32 4294901760, %v8040_v58  ;;  %v2154_v56 = vand.u32 4294901760, %v2153_v45  ;;  %v2176_v4 = vand.u32 4294901760, %v8064_v19 }
 0x10b   :  { %1968 = vmatpush.msrb.mxu0 %v11606_v27  ;;  %2056 = vmatpush.msrb.mxu2 %v7918_v28  ;;  %11608 = vst [vmem:[#allocation37_spill] sm:$0xff] %v8069_v14  ;;  %v2159_v27 = vsub.f32 %v8027_v37, %v2158_v10  ;;  %v8088_v41 = vsub.f32 %v327_v47, %v8069_v14 }
 0x10c   :  { %2013 = vmatpush.msrb.mxu1 %v7693_v40  ;;  %2131 = vmatpush.msrb.mxu3 %v2130_v61  ;;  %v2148_v40 = vand.u32 4294901760, %v2147_v23  ;;  %v2170_v61 = vand.u32 4294901760, %v8053_v46  ;;  %v11612_v23 = vand.u32 4294901760, %v7823_v34  ;;  %v2177_v47 = vsub.f32 %v8064_v19, %v2176_v4 }
 0x10d   :  { %1972 = vmatpush.msrb.mxu0 %v11607_v38  ;;  %2058 = vmatpush.msrb.mxu2 %v7932_v21  ;;  %11611 = vst [vmem:[#allocation38_spill] sm:$0xff] %v8088_v41 }
 0x10e   :  { %2015 = vmatpush.msrb.mxu1 %v7703_v22  ;;  %2137 = vmatpush.msrb.mxu3 %v2136_v15  ;;  %v2165_v22 = vsub.f32 %v8040_v58, %v2164_v39  ;;  %v2171_v15 = vsub.f32 %v8053_v46, %v2170_v61  ;;  %v2178_v45 = vand.u32 4294901760, %v2177_v47 }
 0x10f   :  { %1976 = vmatpush.msrb.mxu0 %v11609_v25  ;;  %2060 = vmatpush.msrb.mxu2 %v7952_v6 }
 0x110   :  { %2017 = vmatpush.msrb.mxu1 %v7716_v2  ;;  %2143 = vmatpush.msrb.mxu3 %v2142_v9  ;;  %v2160_v2 = vand.u32 4294901760, %v2159_v27  ;;  %v2166_v52 = vand.u32 4294901760, %v2165_v22  ;;  %v8105_v9 = vand.u32 4294901760, %v8088_v41  ;;  %v2172_v34 = vand.u32 4294901760, %v2171_v15  ;;  %v11627_v27 = vld [vmem:[#allocation33_spill] sm:$0xff]  ;;  %v259_v15 = vld [vmem:[#allocation2 + $0x660] sm:$0xff] }
 0x111   :  { %1980 = vmatpush.msrb.mxu0 %v11610_v63  ;;  %2062 = vmatpush.msrb.mxu2 %v7967_v29  ;;  %v11630_v22 = vand.u32 4294901760, %v7937_v53 }
 0x112   :  { %2019 = vmatpush.msrb.mxu1 %v7732_v62  ;;  %2149 = vmatpush.msrb.mxu3 %v2148_v40  ;;  %v11613_v62 = vand.u32 4294901760, %v7841_v42  ;;  %11614 = vst [vmem:[#allocation39_spill] sm:$0xff] %v8105_v9  ;;  %v11616_v42 = vand.u32 4294901760, %v7879_v11  ;;  %v2078_v38 = vsub.f32 %v8088_v41, %v8105_v9  ;;  %v11625_v40 = vld [vmem:[#allocation35_spill] sm:$0xff] }
 0x113   :  { %1984 = vmatpush.msrb.mxu0 %v11612_v23  ;;  %2064 = vmatpush.msrb.mxu2 %v7980_v59  ;;  %v11628_v25 = vand.u32 4294901760, %v11625_v40 }
 0x114   :  { %2021 = vmatpush.msrb.mxu1 %v7746_v55  ;;  %2155 = vmatpush.msrb.mxu3 %v2154_v56  ;;  %v11615_v55 = vand.u32 4294901760, %v7864_v20  ;;  %v11622_v20 = vld [vmem:[#allocation34_spill] sm:$0xff]  ;;  %v11629_v56 = vand.u32 4294901760, %v7924_v57 }
 0x115   :  { %1988 = vmatpush.msrb.mxu0 %v11613_v62  ;;  %2066 = vmatpush.msrb.mxu2 %v7993_v3 }
 0x116   :  { %2023 = vmatpush.msrb.mxu1 %v7759_v5  ;;  %2161 = vmatpush.msrb.mxu3 %v2160_v2  ;;  %v11617_v5 = vand.u32 4294901760, %v7907_v43  ;;  %v11619_v43 = vld [vmem:[#allocation27_spill] sm:$0xff] }
 0x117   :  { %1992 = vmatpush.msrb.mxu0 %v11615_v55  ;;  %2068 = vmatpush.msrb.mxu2 %v8005_v18  ;;  %v11623_v11 = vand.u32 4294901760, %v11619_v43  ;;  %v257_v55 = vld [vmem:[#allocation2 + $0x650] sm:$0xff] }
 0x118   :  { %2025 = vmatpush.msrb.mxu1 %v7772_v30  ;;  %2167 = vmatpush.msrb.mxu3 %v2166_v52  ;;  %v8124_v30 = vand.u32 4294901760, %v2078_v38  ;;  %v8288_v38 = vand.u32 4294901760, %v259_v15 }
 0x119   :  { %1996 = vmatpush.msrb.mxu0 %v11616_v42  ;;  %2070 = vmatpush.msrb.mxu2 %v8017_v1 }
 0x11a   :  { %2027 = vmatpush.msrb.mxu1 %v7783_v31  ;;  %2173 = vmatpush.msrb.mxu3 %v2172_v34  ;;  %11618 = vst [vmem:[#allocation40_spill] sm:$0xff] %v8124_v30  ;;  %v11620_v31 = vand.u32 4294901760, %v7834_v44 }
 0x11b   :  { %2000 = vmatpush.msrb.mxu0 %v11617_v5  ;;  %2072 = vmatpush.msrb.mxu2 %v8029_v49 }
 0x11c   :  { %2029 = vmatpush.msrb.mxu1 %v7795_v24  ;;  %2179 = vmatpush.msrb.mxu3 %v2178_v45  ;;  %v11621_v24 = vld [vmem:[#allocation26_spill] sm:$0xff] }
 0x11d   :  { %2002 = vmatmul.f32.vlgmr.msrb.gmra.mxu0 %v7798_v51  ;;  %2074 = vmatpush.msrb.mxu2 %v8042_v26 }
 0x11e   :  { %2348 = vmatpush.msra.mxu3 %v7802_v13  ;;  %2187 = vmatpush.msra.mxu0 %v7834_v44  ;;  %v11626_v44 = vand.u32 4294901760, %v11622_v20 }
 0x11f   :  { %2031 = vmatpush.msrb.mxu1 %v7811_v16  ;;  %2281 = vmatpush.msra.mxu2 %v11620_v31  ;;  %v11624_v16 = vld [vmem:[#allocation14_spill] sm:$0xff]  ;;  %v328_v31 = vld.sshfl [vmem:[#allocation1 + $0x30] sm:$0xff pattern:$0x73625140] }
 0x120   :  { %2350 = vmatpush.msra.mxu3 %v7816_v36  ;;  %2190 = vmatpush.msra.mxu0 %v11619_v43  ;;  %v255_v43 = vld [vmem:[#allocation2 + $0x640] sm:$0xff] }
 0x121   :  { %2033 = vmatpush.msrb.mxu1 %v11621_v24  ;;  %2080 = vmatmul.f32.vlgmr.msrb.gmra.mxu2 %v8124_v30 }
 0x122   :  { %2193 = vmatpush.msra.mxu0 %v11622_v20  ;;  %2285 = vmatpush.msra.mxu2 %v11623_v11  ;;  %v8299_v20 = vand.u32 4294901760, %v257_v55 }
 0x123   :  { %2352 = vmatpush.msra.mxu3 %v7851_v0  ;;  %2035 = vmatpush.msrb.mxu1 %v11624_v16  ;;  %v309_v16 = vld [vmem:[#allocation2 + $0x7f0] sm:$0xff] }
 0x124   :  { %2181 = vmatmul.f32.vlgmr.msrb.gmra.mxu3 %v8069_v14  ;;  %2196 = vmatpush.msra.mxu0 %v11625_v40 }
 0x125   :  { %2289 = vmatpush.msra.mxu2 %v11626_v44  ;;  %2354 = vmatpush.msra.mxu3 %v7867_v50 }
 0x126   :  { %2037 = vmatpush.msrb.mxu1 %v11627_v27  ;;  %2199 = vmatpush.msra.mxu0 %v7924_v57  ;;  %v11632_v57 = vand.u32 4294901760, %v7959_v8  ;;  %v253_v27 = vld [vmem:[#allocation2 + $0x630] sm:$0xff] }
 0x127   :  { %2039 = vmatmul.f32.vlgmr.msrb.gmra.mxu1 %v7798_v51  ;;  %2293 = vmatpush.msra.mxu2 %v11628_v25  ;;  %v8309_v25 = vsub.f32 %v259_v15, %v8288_v38 }
 0x128   :  { %2240 = vmatpush.msra.mxu1 %v7802_v13  ;;  %2356 = vmatpush.msra.mxu3 %v7891_v12  ;;  %v11631_v13 = vand.u32 4294901760, %v7948_v33 }
 0x129   :  { %2202 = vmatpush.msra.mxu0 %v7937_v53  ;;  %2297 = vmatpush.msra.mxu2 %v11629_v56  ;;  %v8311_v56 = vand.u32 4294901760, %v255_v43 }
 0x12a   :  { %2242 = vmatpush.msra.mxu1 %v7816_v36  ;;  %2358 = vmatpush.msra.mxu3 %v7909_v7  ;;  %v11633_v36 = vand.u32 4294901760, %v7978_v35 }
 0x12b   :  { %2205 = vmatpush.msra.mxu0 %v7948_v33  ;;  %2301 = vmatpush.msra.mxu2 %v11630_v22  ;;  %v271_v33 = vld [vmem:[#allocation2 + $0x6c0] sm:$0xff] }
 0x12c   :  { %2244 = vmatpush.msra.mxu1 %v7851_v0  ;;  %2360 = vmatpush.msra.mxu3 %v7918_v28  ;;  %v277_v0 = vld [vmem:[#allocation2 + $0x6f0] sm:$0xff] }
 0x12d   :  { %2208 = vmatpush.msra.mxu0 %v7959_v8  ;;  %2305 = vmatpush.msra.mxu2 %v11631_v13  ;;  %v8314_v13 = vand.u32 4294901760, %v328_v31 }
 0x12e   :  { %2246 = vmatpush.msra.mxu1 %v7867_v50  ;;  %2362 = vmatpush.msra.mxu3 %v7932_v21  ;;  %v11634_v50 = vand.u32 4294901760, %v7991_v32 }
 0x12f   :  { %2211 = vmatpush.msra.mxu0 %v7978_v35  ;;  %2309 = vmatpush.msra.mxu2 %v11632_v57  ;;  %v267_v35 = vld [vmem:[#allocation2 + $0x6a0] sm:$0xff]  ;;  %11635 = vst [vmem:[#allocation27_spill] sm:$0xff] %v8314_v13  ;;  %v8343_v15 = vsub.f32 %v328_v31, %v8314_v13 }
 0x130   :  { %2248 = vmatpush.msra.mxu1 %v7891_v12  ;;  %2364 = vmatpush.msra.mxu3 %v7952_v6  ;;  %v275_v12 = vld [vmem:[#allocation2 + $0x6e0] sm:$0xff] }
 0x131   :  { %2214 = vmatpush.msra.mxu0 %v7991_v32  ;;  %2313 = vmatpush.msra.mxu2 %v11633_v36  ;;  %v8194_v53 = vand.u32 4294901760, %v275_v12  ;;  %v8209_v32 = vand.u32 4294901760, %v271_v33  ;;  %v307_v57 = vld [vmem:[#allocation2 + $0x7e0] sm:$0xff]  ;;  %11636 = vst [vmem:[#allocation26_spill] sm:$0xff] %v8343_v15 }
 0x132   :  { %2250 = vmatpush.msra.mxu1 %v7909_v7  ;;  %2366 = vmatpush.msra.mxu3 %v7967_v29  ;;  %v8187_v7 = vand.u32 4294901760, %v277_v0  ;;  %v303_v31 = vld [vmem:[#allocation2 + $0x7c0] sm:$0xff] }
 0x133   :  { %2217 = vmatpush.msra.mxu0 %v8003_v48  ;;  %2317 = vmatpush.msra.mxu2 %v11634_v50  ;;  %v8318_v50 = vand.u32 4294901760, %v309_v16 }
 0x134   :  { %2252 = vmatpush.msra.mxu1 %v7918_v28  ;;  %2368 = vmatpush.msra.mxu3 %v7980_v59  ;;  %v273_v28 = vld [vmem:[#allocation2 + $0x6d0] sm:$0xff] }
 0x135   :  { %2220 = vmatpush.msra.mxu0 %v8015_v60  ;;  %2321 = vmatpush.msra.mxu2 %v2146_v54  ;;  %v8204_v8 = vand.u32 4294901760, %v273_v28  ;;  %v8230_v54 = vsub.f32 %v271_v33, %v8209_v32 }
 0x136   :  { %2254 = vmatpush.msra.mxu1 %v7932_v21  ;;  %2370 = vmatpush.msra.mxu3 %v7993_v3  ;;  %v8202_v21 = vsub.f32 %v277_v0, %v8187_v7 }
 0x137   :  { %2223 = vmatpush.msra.mxu0 %v8027_v37  ;;  %2325 = vmatpush.msra.mxu2 %v2152_v17  ;;  %v8224_v60 = vsub.f32 %v273_v28, %v8204_v8  ;;  %v8232_v37 = vand.u32 4294901760, %v267_v35  ;;  %v265_v17 = vld [vmem:[#allocation2 + $0x690] sm:$0xff]  ;;  %v8327_v28 = vand.u32 4294901760, %v253_v27 }
 0x138   :  { %2256 = vmatpush.msra.mxu1 %v7952_v6  ;;  %2372 = vmatpush.msra.mxu3 %v8005_v18  ;;  %v269_v6 = vld [vmem:[#allocation2 + $0x6b0] sm:$0xff] }
 0x139   :  { %2226 = vmatpush.msra.mxu0 %v8040_v58  ;;  %2329 = vmatpush.msra.mxu2 %v2158_v10  ;;  %v8219_v48 = vand.u32 4294901760, %v269_v6  ;;  %v263_v10 = vld [vmem:[#allocation2 + $0x680] sm:$0xff] }
 0x13a   :  { %2258 = vmatpush.msra.mxu1 %v7967_v29  ;;  %2374 = vmatpush.msra.mxu3 %v8017_v1  ;;  %v8214_v29 = vsub.f32 %v275_v12, %v8194_v53  ;;  %v8262_v2 = vand.u32 4294901760, %v263_v10  ;;  %v8325_v12 = vsub.f32 %v257_v55, %v8299_v20 }
 0x13b   :  { %2229 = vmatpush.msra.mxu0 %v8053_v46  ;;  %2333 = vmatpush.msra.mxu2 %v2164_v39  ;;  %v8241_v58 = vsub.f32 %v269_v6, %v8219_v48  ;;  %v11321_v39 = vand.u32 4294901760, %v8224_v60  ;;  %v251_v6 = vld [vmem:[#allocation2 + $0x620] sm:$0xff] }
 0x13c   :  { %2260 = vmatpush.msra.mxu1 %v7980_v59  ;;  %2376 = vmatpush.msra.mxu3 %v8029_v49  ;;  %v11323_v59 = vand.u32 4294901760, %v8202_v21  ;;  %v8286_v42 = vsub.f32 %v263_v10, %v8262_v2 }
 0x13d   :  { %2232 = vmatpush.msra.mxu0 %v8064_v19  ;;  %2337 = vmatpush.msra.mxu2 %v2170_v61  ;;  %v8254_v19 = vsub.f32 %v267_v35, %v8232_v37  ;;  %v11319_v61 = vand.u32 4294901760, %v8230_v54  ;;  %v2440_v52 = vsub.f32 %v8224_v60, %v11321_v39 }
 0x13e   :  { %2262 = vmatpush.msra.mxu1 %v7993_v3  ;;  %2378 = vmatpush.msra.mxu3 %v8042_v26  ;;  %v11322_v3 = vand.u32 4294901760, %v8214_v29  ;;  %v2428_v46 = vsub.f32 %v8202_v21, %v11323_v59  ;;  %v11314_v22 = vand.u32 4294901760, %v8286_v42 }
 0x13f   :  { %2235 = vmatmul.f32.vlgmr.msra.gmra.mxu0 %v8088_v41  ;;  %2341 = vmatpush.msra.mxu2 %v2176_v4  ;;  %v261_v4 = vld [vmem:[#allocation2 + $0x670] sm:$0xff]  ;;  %v11317_v34 = vand.u32 4294901760, %v8254_v19 }
 0x140   :  { %2581 = vmatpush.msrb.mxu3 %v8187_v7  ;;  %2385 = vmatpush.msrb.mxu0 %v8187_v7  ;;  %v2434_v63 = vsub.f32 %v8214_v29, %v11322_v3  ;;  %v2429_v23 = vand.u32 4294901760, %v2428_v46  ;;  %v8275_v62 = vand.u32 4294901760, %v261_v4  ;;  %v2470_v10 = vsub.f32 %v8286_v42, %v11314_v22 }
 0x141   :  { %2264 = vmatpush.msra.mxu1 %v8005_v18  ;;  %2528 = vmatpush.msrb.mxu2 %v8202_v21  ;;  %v8248_v18 = vand.u32 4294901760, %v265_v17  ;;  %v2458_v44 = vsub.f32 %v8254_v19, %v11317_v34  ;;  %v8339_v46 = vsub.f32 %v255_v43, %v8311_v56  ;;  %v11320_v43 = vand.u32 4294901760, %v8325_v12 }
 0x142   :  { %2583 = vmatpush.msrb.mxu3 %v8194_v53  ;;  %2387 = vmatpush.msrb.mxu0 %v8194_v53  ;;  %v2435_v45 = vand.u32 4294901760, %v2434_v63  ;;  %v8297_v24 = vsub.f32 %v261_v4, %v8275_v62  ;;  %v11315_v4 = vand.u32 4294901760, %v8309_v25  ;;  %v249_v63 = vld [vmem:[#allocation2 + $0x610] sm:$0xff]  ;;  %v8383_v22 = vand.u32 4294901760, %v303_v31 }
 0x143   :  { %2266 = vmatpush.msra.mxu1 %v8017_v1  ;;  %2343 = vmatmul.f32.vlgmr.msra.gmra.mxu2 %v8069_v14  ;;  %v11318_v1 = vand.u32 4294901760, %v8241_v58  ;;  %v8273_v47 = vsub.f32 %v265_v17, %v8248_v18  ;;  %v2459_v35 = vand.u32 4294901760, %v2458_v44  ;;  %v8332_v17 = vand.u32 4294901760, %v307_v57 }
 0x144   :  { %2389 = vmatpush.msrb.mxu0 %v8204_v8  ;;  %2531 = vmatpush.msrb.mxu2 %v8214_v29  ;;  %v11313_v33 = vand.u32 4294901760, %v8297_v24 }
 0x145   :  { %2585 = vmatpush.msrb.mxu3 %v8204_v8  ;;  %2268 = vmatpush.msra.mxu1 %v8029_v49  ;;  %v2446_v49 = vsub.f32 %v8230_v54, %v11319_v61  ;;  %v2452_v5 = vsub.f32 %v8241_v58, %v11318_v1  ;;  %v11316_v11 = vand.u32 4294901760, %v8273_v47 }
 0x146   :  { %2380 = vmatmul.f32.vlgmr.msra.gmra.mxu3 %v8069_v14  ;;  %2391 = vmatpush.msrb.mxu0 %v8209_v32  ;;  %v295_v14 = vld [vmem:[#allocation2 + $0x780] sm:$0xff] }
 0x147   :  { %2534 = vmatpush.msrb.mxu2 %v8224_v60  ;;  %2587 = vmatpush.msrb.mxu3 %v8209_v32  ;;  %v2447_v40 = vand.u32 4294901760, %v2446_v49  ;;  %v2453_v36 = vand.u32 4294901760, %v2452_v5  ;;  %v2464_v0 = vsub.f32 %v8273_v47, %v11316_v11  ;;  %v8350_v49 = vsub.f32 %v309_v16, %v8318_v50  ;;  %v247_v16 = vld [vmem:[#allocation2 + $0x600] sm:$0xff] }
 0x148   :  { %2270 = vmatpush.msra.mxu1 %v8042_v26  ;;  %2393 = vmatpush.msrb.mxu0 %v8219_v48  ;;  %v2441_v26 = vand.u32 4294901760, %v2440_v52  ;;  %v8347_v52 = vand.u32 4294901760, %v251_v6  ;;  %v8357_v5 = vsub.f32 %v253_v27, %v8327_v28  ;;  %v2471_v27 = vand.u32 4294901760, %v2470_v10  ;;  %v301_v10 = vld [vmem:[#allocation2 + $0x7b0] sm:$0xff] }
 0x149   :  { %2274 = vmatmul.f32.vlgmr.msra.gmra.mxu1 %v8105_v9  ;;  %2537 = vmatpush.msrb.mxu2 %v8230_v54  ;;  %v2465_v55 = vand.u32 4294901760, %v2464_v0  ;;  %v11324_v0 = vand.u32 4294901760, %v8339_v46  ;;  %v2488_v11 = vsub.f32 %v8325_v12, %v11320_v43  ;;  %v8389_v34 = vand.u32 4294901760, %v247_v16 }
 0x14a   :  { %2430 = vmatpush.msrb.mxu1 %v2429_v23  ;;  %2589 = vmatpush.msrb.mxu3 %v8219_v48  ;;  %v305_v23 = vld [vmem:[#allocation2 + $0x7d0] sm:$0xff]  ;;  %11637 = vst [vmem:[#allocation34_spill] sm:$0xff] %v8347_v52  ;;  %v11330_v1 = vand.u32 4294901760, %v8357_v5  ;;  %v8407_v59 = vand.u32 4294901760, %v301_v10 }
 0x14b   :  { %2395 = vmatpush.msrb.mxu0 %v8232_v37  ;;  %2540 = vmatpush.msrb.mxu2 %v8241_v58  ;;  %v8367_v44 = vand.u32 4294901760, %v305_v23  ;;  %11641 = vst [vmem:[#allocation41_spill] sm:$0xff] %v8389_v34  ;;  %v2494_v39 = vsub.f32 %v8339_v46, %v11324_v0  ;;  %v2489_v0 = vand.u32 4294901760, %v2488_v11  ;;  %v8423_v9 = vsub.f32 %v247_v16, %v8389_v34 }
 0x14c   :  { %2436 = vmatpush.msrb.mxu1 %v2435_v45  ;;  %2591 = vmatpush.msrb.mxu3 %v8232_v37  ;;  %v2476_v45 = vsub.f32 %v8297_v24, %v11313_v33  ;;  %v8375_v33 = vand.u32 4294901760, %v8343_v15  ;;  %v8440_v30 = vsub.f32 %v301_v10, %v8407_v59 }
 0x14d   :  { %2397 = vmatpush.msrb.mxu0 %v8248_v18  ;;  %2543 = vmatpush.msrb.mxu2 %v8254_v19  ;;  %v8399_v61 = vsub.f32 %v305_v23, %v8367_v44  ;;  %v2495_v16 = vand.u32 4294901760, %v2494_v39  ;;  %v291_v39 = vld [vmem:[#allocation2 + $0x760] sm:$0xff] }
 0x14e   :  { %2442 = vmatpush.msrb.mxu1 %v2441_v26  ;;  %2593 = vmatpush.msrb.mxu3 %v8248_v18  ;;  %v8362_v26 = vand.u32 4294901760, %v249_v63  ;;  %11640 = vst [vmem:[#allocation33_spill] sm:$0xff] %v8375_v33  ;;  %v2419_v3 = vsub.f32 %v8343_v15, %v8375_v33 }
 0x14f   :  { %2399 = vmatpush.msrb.mxu0 %v8262_v2  ;;  %2546 = vmatpush.msrb.mxu2 %v8273_v47  ;;  %11642 = vst [vmem:[#allocation42_spill] sm:$0xff] %v8399_v61 }
 0x150   :  { %2448 = vmatpush.msrb.mxu1 %v2447_v40  ;;  %2595 = vmatpush.msrb.mxu3 %v8262_v2  ;;  %11638 = vst [vmem:[#allocation14_spill] sm:$0xff] %v8362_v26  ;;  %v8365_v40 = vsub.f32 %v307_v57, %v8332_v17  ;;  %v8380_v57 = vsub.f32 %v251_v6, %v8347_v52 }
 0x151   :  { %2401 = vmatpush.msrb.mxu0 %v8275_v62  ;;  %2549 = vmatpush.msrb.mxu2 %v8286_v42  ;;  %v8395_v6 = vsub.f32 %v249_v63, %v8362_v26  ;;  %v297_v63 = vld [vmem:[#allocation2 + $0x790] sm:$0xff] }
 0x152   :  { %2454 = vmatpush.msrb.mxu1 %v2453_v36  ;;  %2597 = vmatpush.msrb.mxu3 %v8275_v62  ;;  %11639 = vst [vmem:[#allocation35_spill] sm:$0xff] %v8365_v40  ;;  %v2482_v36 = vsub.f32 %v8309_v25, %v11315_v4  ;;  %v2477_v4 = vand.u32 4294901760, %v2476_v45  ;;  %v299_v45 = vld [vmem:[#allocation2 + $0x7a0] sm:$0xff]  ;;  %v11646_v11 = vand.u32 4294901760, %v8380_v57 }
 0x153   :  { %2403 = vmatpush.msrb.mxu0 %v8288_v38  ;;  %2552 = vmatpush.msrb.mxu2 %v8297_v24  ;;  %v8425_v41 = vand.u32 4294901760, %v299_v45 }
 0x154   :  { %2460 = vmatpush.msrb.mxu1 %v2459_v35  ;;  %2599 = vmatpush.msrb.mxu3 %v8288_v38  ;;  %v11329_v35 = vand.u32 4294901760, %v8350_v49  ;;  %v2483_v43 = vand.u32 4294901760, %v2482_v36  ;;  %v8416_v36 = vsub.f32 %v303_v31, %v8383_v22  ;;  %v11644_v31 = vand.u32 4294901760, %v8365_v40 }
 0x155   :  { %2405 = vmatpush.msrb.mxu0 %v8299_v20  ;;  %2555 = vmatpush.msrb.mxu2 %v8309_v25  ;;  %v8453_v10 = vsub.f32 %v299_v45, %v8425_v41  ;;  %v11651_v45 = vand.u32 4294901760, %v8423_v9 }
 0x156   :  { %2466 = vmatpush.msrb.mxu1 %v2465_v55  ;;  %2601 = vmatpush.msrb.mxu3 %v8299_v20  ;;  %v2769_v23 = vsub.f32 %v8350_v49, %v11329_v35  ;;  %11643 = vst [vmem:[#allocation43_spill] sm:$0xff] %v8416_v36  ;;  %v2500_v55 = vsub.f32 %v8357_v5, %v11330_v1  ;;  %v8437_v1 = vand.u32 4294901760, %v2419_v3 }
 0x157   :  { %2407 = vmatpush.msrb.mxu0 %v8311_v56  ;;  %2558 = vmatpush.msrb.mxu2 %v8325_v12  ;;  %v2506_v35 = vsub.f32 %v8380_v57, %v11646_v11  ;;  %v11647_v11 = vand.u32 4294901760, %v8399_v61 }
 0x158   :  { %2472 = vmatpush.msrb.mxu1 %v2471_v27  ;;  %2603 = vmatpush.msrb.mxu3 %v8311_v56  ;;  %v8434_v27 = vand.u32 4294901760, %v297_v63  ;;  %11645 = vst [vmem:[#allocation44_spill] sm:$0xff] %v8437_v1  ;;  %v2501_v3 = vand.u32 4294901760, %v2500_v55 }
 0x159   :  { %2409 = vmatpush.msrb.mxu0 %v8327_v28  ;;  %2561 = vmatpush.msrb.mxu2 %v8339_v46  ;;  %v2781_v51 = vsub.f32 %v8399_v61, %v11647_v11  ;;  %v11649_v11 = vand.u32 4294901760, %v8416_v36 }
 0x15a   :  { %2478 = vmatpush.msrb.mxu1 %v2477_v4  ;;  %2605 = vmatpush.msrb.mxu3 %v8327_v28  ;;  %v2775_v4 = vsub.f32 %v8365_v40, %v11644_v31  ;;  %v2770_v31 = vand.u32 4294901760, %v2769_v23  ;;  %v11648_v40 = vand.u32 4294901760, %v8395_v6  ;;  %v8464_v55 = vsub.f32 %v297_v63, %v8434_v27  ;;  %v289_v63 = vld [vmem:[#allocation2 + $0x750] sm:$0xff] }
 0x15b   :  { %2411 = vmatpush.msrb.mxu0 %v8347_v52  ;;  %2564 = vmatpush.msrb.mxu2 %v8357_v5  ;;  %v2787_v61 = vsub.f32 %v8416_v36, %v11649_v11  ;;  %v287_v36 = vld [vmem:[#allocation2 + $0x740] sm:$0xff] }
 0x15c   :  { %2484 = vmatpush.msrb.mxu1 %v2483_v43  ;;  %2607 = vmatpush.msrb.mxu3 %v8347_v52  ;;  %v8448_v43 = vand.u32 4294901760, %v295_v14  ;;  %v293_v52 = vld [vmem:[#allocation2 + $0x770] sm:$0xff]  ;;  %v2776_v23 = vand.u32 4294901760, %v2775_v4  ;;  %v2507_v4 = vand.u32 4294901760, %v2506_v35  ;;  %v2782_v35 = vand.u32 4294901760, %v2781_v51 }
 0x15d   :  { %2413 = vmatpush.msrb.mxu0 %v8362_v26  ;;  %2567 = vmatpush.msrb.mxu2 %v8380_v57  ;;  %v2788_v51 = vand.u32 4294901760, %v2787_v61  ;;  %v11656_v61 = vand.u32 4294901760, %v8464_v55 }
 0x15e   :  { %2490 = vmatpush.msrb.mxu1 %v2489_v0  ;;  %2609 = vmatpush.msrb.mxu3 %v8362_v26  ;;  %v2512_v0 = vsub.f32 %v8395_v6, %v11648_v40  ;;  %v8468_v26 = vand.u32 4294901760, %v293_v52  ;;  %v8475_v40 = vsub.f32 %v295_v14, %v8448_v43 }
 0x15f   :  { %2415 = vmatpush.msrb.mxu0 %v8389_v34  ;;  %2570 = vmatpush.msrb.mxu2 %v8395_v6 }
 0x160   :  { %2496 = vmatpush.msrb.mxu1 %v2495_v16  ;;  %2611 = vmatpush.msrb.mxu3 %v8389_v34  ;;  %v11650_v16 = vand.u32 4294901760, %v8202_v21  ;;  %v2518_v34 = vsub.f32 %v8423_v9, %v11651_v45  ;;  %v2513_v11 = vand.u32 4294901760, %v2512_v0  ;;  %v11652_v21 = vand.u32 4294901760, %v8214_v29  ;;  %v285_v0 = vld [vmem:[#allocation2 + $0x730] sm:$0xff] }
 0x161   :  { %2421 = vmatmul.f32.vlgmr.msrb.gmra.mxu0 %v8437_v1  ;;  %2573 = vmatpush.msrb.mxu2 %v8423_v9  ;;  %v8496_v1 = vand.u32 4294901760, %v289_v63  ;;  %v11654_v29 = vand.u32 4294901760, %v8224_v60  ;;  %v283_v60 = vld [vmem:[#allocation2 + $0x720] sm:$0xff] }
 0x162   :  { %2771 = vmatpush.msra.mxu3 %v2770_v31  ;;  %2622 = vmatpush.msra.mxu0 %v11650_v16  ;;  %v8483_v31 = vand.u32 4294901760, %v291_v39  ;;  %v8494_v16 = vsub.f32 %v293_v52, %v8468_v26 }
 0x163   :  { %2502 = vmatpush.msrb.mxu1 %v2501_v3  ;;  %2726 = vmatpush.msra.mxu2 %v8318_v50  ;;  %v11653_v3 = vand.u32 4294901760, %v8440_v30 }
 0x164   :  { %2777 = vmatpush.msra.mxu3 %v2776_v23  ;;  %2626 = vmatpush.msra.mxu0 %v11652_v21  ;;  %v2519_v21 = vand.u32 4294901760, %v2518_v34  ;;  %v8507_v14 = vsub.f32 %v291_v39, %v8483_v31  ;;  %v2805_v23 = vsub.f32 %v8464_v55, %v11656_v61  ;;  %v11657_v34 = vand.u32 4294901760, %v8230_v54  ;;  %v281_v61 = vld [vmem:[#allocation2 + $0x710] sm:$0xff] }
 0x165   :  { %v2793_v45 = vsub.f32 %v8440_v30, %v11653_v3  ;;  %2508 = vmatpush.msrb.mxu1 %v2507_v4  ;;  %2576 = vmatmul.f32.vlgmr.msrb.gmra.mxu2 %v8343_v15  ;;  %v11655_v3 = vand.u32 4294901760, %v8453_v10  ;;  %v8509_v4 = vand.u32 4294901760, %v287_v36  ;;  %v8519_v39 = vsub.f32 %v289_v63, %v8496_v1 }
 0x166   :  { %2630 = vmatpush.msra.mxu0 %v11654_v29  ;;  %2728 = vmatpush.msra.mxu2 %v8332_v17  ;;  %v8521_v15 = vand.u32 4294901760, %v285_v0  ;;  %v11659_v54 = vand.u32 4294901760, %v8241_v58  ;;  %v11660_v58 = vand.u32 4294901760, %v8494_v16 }
 0x167   :  { %v2799_v52 = vsub.f32 %v8453_v10, %v11655_v3  ;;  %2783 = vmatpush.msra.mxu3 %v2782_v35  ;;  %2514 = vmatpush.msrb.mxu1 %v2513_v11  ;;  %v2794_v29 = vand.u32 4294901760, %v2793_v45  ;;  %v11658_v35 = vand.u32 4294901760, %v8475_v40  ;;  %v8531_v63 = vsub.f32 %v287_v36, %v8509_v4 }
 0x168   :  { %2615 = vmatmul.f32.vlgmr.msrb.gmra.mxu3 %v8375_v33  ;;  %2634 = vmatpush.msra.mxu0 %v11657_v34  ;;  %v11346_v34 = vand.u32 4294901760, %v8507_v14  ;;  %v8533_v3 = vand.u32 4294901760, %v283_v60  ;;  %v279_v33 = vld [vmem:[#allocation2 + $0x700] sm:$0xff]  ;;  %v8543_v36 = vsub.f32 %v285_v0, %v8521_v15 }
 0x169   :  { %2730 = vmatpush.msra.mxu2 %v8367_v44  ;;  %2789 = vmatpush.msra.mxu3 %v2788_v51  ;;  %v2811_v11 = vsub.f32 %v8475_v40, %v11658_v35  ;;  %v2800_v45 = vand.u32 4294901760, %v2799_v52  ;;  %v2806_v51 = vand.u32 4294901760, %v2805_v23  ;;  %v2828_v52 = vand.u32 4294901760, %v8519_v39 }
 0x16a   :  { %2520 = vmatpush.msrb.mxu1 %v2519_v21  ;;  %2638 = vmatpush.msra.mxu0 %v11659_v54  ;;  %v2817_v21 = vsub.f32 %v8494_v16, %v11660_v58  ;;  %v8545_v35 = vand.u32 4294901760, %v281_v61  ;;  %v11661_v54 = vand.u32 4294901760, %v8254_v19  ;;  %v8556_v0 = vsub.f32 %v283_v60, %v8533_v3 }
 0x16b   :  { %2522 = vmatmul.f32.vlgmr.msrb.gmra.mxu1 %v8314_v13  ;;  %2732 = vmatpush.msra.mxu2 %v8383_v22  ;;  %v2812_v23 = vand.u32 4294901760, %v2811_v11  ;;  %v8558_v58 = vand.u32 4294901760, %v279_v33  ;;  %v11662_v19 = vand.u32 4294901760, %v8273_v47  ;;  %v2829_v11 = vsub.f32 %v8519_v39, %v2828_v52 }
 0x16c   :  { %2689 = vmatpush.msra.mxu1 %v8187_v7  ;;  %2795 = vmatpush.msra.mxu3 %v2794_v29  ;;  %v2823_v7 = vsub.f32 %v8507_v14, %v11346_v34  ;;  %v2834_v29 = vand.u32 4294901760, %v8531_v63  ;;  %v8569_v60 = vsub.f32 %v281_v61, %v8545_v35  ;;  %v11663_v34 = vand.u32 4294901760, %v8286_v42 }
 0x16d   :  { %2642 = vmatpush.msra.mxu0 %v11661_v54  ;;  %2734 = vmatpush.msra.mxu2 %v8407_v59  ;;  %v329_v54 = vld.sshfl [vmem:[#allocation1 + $0x38] sm:$0xff pattern:$0x73625140]  ;;  %v11664_v61 = vand.u32 4294901760, %v8297_v24 }
 0x16e   :  { %2691 = vmatpush.msra.mxu1 %v8194_v53  ;;  %2801 = vmatpush.msra.mxu3 %v2800_v45  ;;  %v2818_v53 = vand.u32 4294901760, %v2817_v21  ;;  %v2840_v45 = vand.u32 4294901760, %v8543_v36  ;;  %v2835_v47 = vsub.f32 %v8531_v63, %v2834_v29  ;;  %v8580_v21 = vsub.f32 %v279_v33, %v8558_v58 }
 0x16f   :  { %2646 = vmatpush.msra.mxu0 %v11662_v19  ;;  %2736 = vmatpush.msra.mxu2 %v8425_v41  ;;  %v8585_v42 = vand.u32 4294901760, %v329_v54  ;;  %v11666_v33 = vand.u32 4294901760, %v8309_v25  ;;  %v11667_v19 = vand.u32 4294901760, %v8325_v12 }
 0x170   :  { %2693 = vmatpush.msra.mxu1 %v8204_v8  ;;  %2807 = vmatpush.msra.mxu3 %v2806_v51  ;;  %v2824_v8 = vand.u32 4294901760, %v2823_v7  ;;  %v2846_v51 = vand.u32 4294901760, %v8556_v0  ;;  %v2836_v24 = vand.u32 4294901760, %v2835_v47  ;;  %v2858_v7 = vand.u32 4294901760, %v8580_v21 }
 0x171   :  { %2650 = vmatpush.msra.mxu0 %v11663_v34  ;;  %2738 = vmatpush.msra.mxu2 %v8434_v27  ;;  %11665 = vst [vmem:[#allocation45_spill] sm:$0xff] %v8585_v42  ;;  %v2841_v34 = vsub.f32 %v8543_v36, %v2840_v45  ;;  %v8604_v25 = vsub.f32 %v329_v54, %v8585_v42 }
 0x172   :  { %2695 = vmatpush.msra.mxu1 %v8209_v32  ;;  %2813 = vmatpush.msra.mxu3 %v2812_v23  ;;  %v2830_v32 = vand.u32 4294901760, %v2829_v11  ;;  %v2852_v23 = vand.u32 4294901760, %v8569_v60  ;;  %v11669_v11 = vand.u32 4294901760, %v8339_v46  ;;  %v2859_v54 = vsub.f32 %v8580_v21, %v2858_v7 }
 0x173   :  { %2654 = vmatpush.msra.mxu0 %v11664_v61  ;;  %2740 = vmatpush.msra.mxu2 %v8448_v43  ;;  %11668 = vst [vmem:[#allocation46_spill] sm:$0xff] %v8604_v25 }
 0x174   :  { %2697 = vmatpush.msra.mxu1 %v8219_v48  ;;  %2819 = vmatpush.msra.mxu3 %v2818_v53  ;;  %v2847_v48 = vsub.f32 %v8556_v0, %v2846_v51  ;;  %v2853_v53 = vsub.f32 %v8569_v60, %v2852_v23  ;;  %v2860_v47 = vand.u32 4294901760, %v2859_v54 }
 0x175   :  { %2658 = vmatpush.msra.mxu0 %v11666_v33  ;;  %2742 = vmatpush.msra.mxu2 %v8468_v26 }
 0x176   :  { %2699 = vmatpush.msra.mxu1 %v8232_v37  ;;  %2825 = vmatpush.msra.mxu3 %v2824_v8  ;;  %v2842_v37 = vand.u32 4294901760, %v2841_v34  ;;  %v2848_v12 = vand.u32 4294901760, %v2847_v48  ;;  %v8621_v8 = vand.u32 4294901760, %v8604_v25  ;;  %v2854_v46 = vand.u32 4294901760, %v2853_v53  ;;  %v11684_v34 = vld [vmem:[#allocation41_spill] sm:$0xff]  ;;  %v68_v53 = vld [vmem:[#allocation2 + $0x68] sm:$0xff] }
 0x177   :  { %2662 = vmatpush.msra.mxu0 %v11667_v19  ;;  %2744 = vmatpush.msra.mxu2 %v8483_v31  ;;  %v11687_v48 = vand.u32 4294901760, %v8453_v10 }
 0x178   :  { %2701 = vmatpush.msra.mxu1 %v8248_v18  ;;  %2831 = vmatpush.msra.mxu3 %v2830_v32  ;;  %v11670_v18 = vand.u32 4294901760, %v8357_v5  ;;  %11671 = vst [vmem:[#allocation47_spill] sm:$0xff] %v8621_v8  ;;  %v11673_v5 = vand.u32 4294901760, %v8395_v6  ;;  %v2760_v61 = vsub.f32 %v8604_v25, %v8621_v8  ;;  %v11682_v32 = vld [vmem:[#allocation43_spill] sm:$0xff] }
 0x179   :  { %2666 = vmatpush.msra.mxu0 %v11669_v11  ;;  %2746 = vmatpush.msra.mxu2 %v8496_v1  ;;  %v11685_v33 = vand.u32 4294901760, %v11682_v32 }
 0x17a   :  { %2703 = vmatpush.msra.mxu1 %v8262_v2  ;;  %2837 = vmatpush.msra.mxu3 %v2836_v24  ;;  %v11672_v2 = vand.u32 4294901760, %v8380_v57  ;;  %v11679_v57 = vld [vmem:[#allocation42_spill] sm:$0xff]  ;;  %v11686_v24 = vand.u32 4294901760, %v8440_v30 }
 0x17b   :  { %2670 = vmatpush.msra.mxu0 %v11670_v18  ;;  %2748 = vmatpush.msra.mxu2 %v8509_v4 }
 0x17c   :  { %2705 = vmatpush.msra.mxu1 %v8275_v62  ;;  %2843 = vmatpush.msra.mxu3 %v2842_v37  ;;  %v11674_v62 = vand.u32 4294901760, %v8423_v9  ;;  %v11676_v9 = vld [vmem:[#allocation35_spill] sm:$0xff] }
 0x17d   :  { %2674 = vmatpush.msra.mxu0 %v11672_v2  ;;  %2750 = vmatpush.msra.mxu2 %v8521_v15  ;;  %v11680_v6 = vand.u32 4294901760, %v11676_v9 }
 0x17e   :  { %2707 = vmatpush.msra.mxu1 %v8288_v38  ;;  %2849 = vmatpush.msra.mxu3 %v2848_v12  ;;  %v8640_v38 = vand.u32 4294901760, %v2760_v61 }
 0x17f   :  { %2678 = vmatpush.msra.mxu0 %v11673_v5  ;;  %2752 = vmatpush.msra.mxu2 %v8533_v3 }
 0x180   :  { %2709 = vmatpush.msra.mxu1 %v8299_v20  ;;  %2855 = vmatpush.msra.mxu3 %v2854_v46  ;;  %11675 = vst [vmem:[#allocation48_spill] sm:$0xff] %v8640_v38  ;;  %v11677_v20 = vand.u32 4294901760, %v8350_v49  ;;  %v66_v46 = vld [vmem:[#allocation2 + $0x58] sm:$0xff] }
 0x181   :  { %2682 = vmatpush.msra.mxu0 %v11674_v62  ;;  %2754 = vmatpush.msra.mxu2 %v8545_v35 }
 0x182   :  { %2711 = vmatpush.msra.mxu1 %v8311_v56  ;;  %2861 = vmatpush.msra.mxu3 %v2860_v47  ;;  %v11678_v56 = vld [vmem:[#allocation34_spill] sm:$0xff] }
 0x183   :  { %2684 = vmatmul.f32.vlgmr.msra.gmra.mxu0 %v8314_v13  ;;  %2756 = vmatpush.msra.mxu2 %v8558_v58 }
 0x184   :  { %3030 = vmatpush.msrb.mxu3 %v8318_v50  ;;  %2869 = vmatpush.msrb.mxu0 %v8350_v49  ;;  %v11683_v49 = vand.u32 4294901760, %v11679_v57 }
 0x185   :  { %2713 = vmatpush.msra.mxu1 %v8327_v28  ;;  %2963 = vmatpush.msrb.mxu2 %v11677_v20  ;;  %v11681_v28 = vld [vmem:[#allocation14_spill] sm:$0xff] }
 0x186   :  { %3032 = vmatpush.msrb.mxu3 %v8332_v17  ;;  %2872 = vmatpush.msrb.mxu0 %v11676_v9 }
 0x187   :  { %2715 = vmatpush.msra.mxu1 %v11678_v56  ;;  %2762 = vmatmul.f32.vlgmr.msra.gmra.mxu2 %v8640_v38  ;;  %v8815_v56 = vand.u32 4294901760, %v66_v46  ;;  %v100_v38 = vld [vmem:[#allocation2 + $0x168] sm:$0xff] }
 0x188   :  { %2875 = vmatpush.msrb.mxu0 %v11679_v57  ;;  %2967 = vmatpush.msrb.mxu2 %v11680_v6  ;;  %v118_v6 = vld [vmem:[#allocation2 + $0x1f8] sm:$0xff] }
 0x189   :  { %3034 = vmatpush.msrb.mxu3 %v8367_v44  ;;  %2717 = vmatpush.msra.mxu1 %v11681_v28 }
 0x18a   :  { %2863 = vmatmul.f32.vlgmr.msra.gmra.mxu3 %v8585_v42  ;;  %2878 = vmatpush.msrb.mxu0 %v11682_v32  ;;  %v62_v32 = vld [vmem:[#allocation2 + $0x38] sm:$0xff] }
 0x18b   :  { %2971 = vmatpush.msrb.mxu2 %v11683_v49  ;;  %3036 = vmatpush.msrb.mxu3 %v8383_v22 }
 0x18c   :  { %2719 = vmatpush.msra.mxu1 %v11684_v34  ;;  %2881 = vmatpush.msrb.mxu0 %v8440_v30  ;;  %v11689_v30 = vand.u32 4294901760, %v8475_v40 }
 0x18d   :  { %2721 = vmatmul.f32.vlgmr.msra.gmra.mxu1 %v8314_v13  ;;  %2975 = vmatpush.msrb.mxu2 %v11685_v33 }
 0x18e   :  { %2922 = vmatpush.msrb.mxu1 %v8318_v50  ;;  %3038 = vmatpush.msrb.mxu3 %v8407_v59  ;;  %v11688_v50 = vand.u32 4294901760, %v8464_v55 }
 0x18f   :  { %2884 = vmatpush.msrb.mxu0 %v8453_v10  ;;  %2979 = vmatpush.msrb.mxu2 %v11686_v24 }
 0x190   :  { %2924 = vmatpush.msrb.mxu1 %v8332_v17  ;;  %3040 = vmatpush.msrb.mxu3 %v8425_v41  ;;  %v11690_v17 = vand.u32 4294901760, %v8494_v16 }
 0x191   :  { %2887 = vmatpush.msrb.mxu0 %v8464_v55  ;;  %2983 = vmatpush.msrb.mxu2 %v11687_v48  ;;  %v116_v48 = vld [vmem:[#allocation2 + $0x1e8] sm:$0xff] }
 0x192   :  { %2926 = vmatpush.msrb.mxu1 %v8367_v44  ;;  %3042 = vmatpush.msrb.mxu3 %v8434_v27  ;;  %v86_v44 = vld [vmem:[#allocation2 + $0xf8] sm:$0xff] }
 0x193   :  { %2890 = vmatpush.msrb.mxu0 %v8475_v40  ;;  %2987 = vmatpush.msrb.mxu2 %v11688_v50 }
 0x194   :  { %2928 = vmatpush.msrb.mxu1 %v8383_v22  ;;  %3044 = vmatpush.msrb.mxu3 %v8448_v43  ;;  %v11691_v22 = vand.u32 4294901760, %v8507_v14 }
 0x195   :  { %2893 = vmatpush.msrb.mxu0 %v8494_v16  ;;  %2991 = vmatpush.msrb.mxu2 %v11689_v30  ;;  %v76_v16 = vld [vmem:[#allocation2 + $0xa8] sm:$0xff] }
 0x196   :  { %2930 = vmatpush.msrb.mxu1 %v8407_v59  ;;  %3046 = vmatpush.msrb.mxu3 %v8468_v26  ;;  %v84_v59 = vld [vmem:[#allocation2 + $0xe8] sm:$0xff] }
 0x197   :  { %2896 = vmatpush.msrb.mxu0 %v8507_v14  ;;  %2995 = vmatpush.msrb.mxu2 %v11690_v17  ;;  %v8710_v10 = vand.u32 4294901760, %v84_v59  ;;  %v60_v30 = vld [vmem:[#allocation2 + $0x28] sm:$0xff]  ;;  %v8833_v17 = vand.u32 4294901760, %v118_v6 }
 0x198   :  { %2932 = vmatpush.msrb.mxu1 %v8425_v41  ;;  %3048 = vmatpush.msrb.mxu3 %v8483_v31  ;;  %v8703_v41 = vand.u32 4294901760, %v86_v44 }
 0x199   :  { %2899 = vmatpush.msrb.mxu0 %v8519_v39  ;;  %2999 = vmatpush.msrb.mxu2 %v11691_v22  ;;  %v8728_v14 = vsub.f32 %v84_v59, %v8710_v10  ;;  %v8840_v59 = vsub.f32 %v66_v46, %v8815_v56  ;;  %v56_v46 = vld [vmem:[#allocation2 + $0x8] sm:$0xff] }
 0x19a   :  { %2934 = vmatpush.msrb.mxu1 %v8434_v27  ;;  %3050 = vmatpush.msrb.mxu3 %v8496_v1  ;;  %v82_v27 = vld [vmem:[#allocation2 + $0xd8] sm:$0xff]  ;;  %v8718_v55 = vsub.f32 %v86_v44, %v8703_v41 }
 0x19b   :  { %2902 = vmatpush.msrb.mxu0 %v8531_v63  ;;  %3003 = vmatpush.msrb.mxu2 %v2828_v52  ;;  %v8720_v40 = vand.u32 4294901760, %v82_v27  ;;  %v74_v52 = vld [vmem:[#allocation2 + $0x98] sm:$0xff] }
 0x19c   :  { %2936 = vmatpush.msrb.mxu1 %v8448_v43  ;;  %3052 = vmatpush.msrb.mxu3 %v8509_v4  ;;  %v80_v43 = vld [vmem:[#allocation2 + $0xc8] sm:$0xff]  ;;  %v11357_v63 = vand.u32 4294901760, %v8718_v55 }
 0x19d   :  { %2905 = vmatpush.msrb.mxu0 %v8543_v36  ;;  %3007 = vmatpush.msrb.mxu2 %v2834_v29  ;;  %v8738_v39 = vsub.f32 %v82_v27, %v8720_v40  ;;  %v8750_v36 = vand.u32 4294901760, %v76_v16  ;;  %v11356_v29 = vand.u32 4294901760, %v8728_v14  ;;  %v8842_v27 = vand.u32 4294901760, %v62_v32 }
 0x19e   :  { %2938 = vmatpush.msrb.mxu1 %v8468_v26  ;;  %3054 = vmatpush.msrb.mxu3 %v8521_v15  ;;  %v78_v26 = vld [vmem:[#allocation2 + $0xb8] sm:$0xff] }
 0x19f   :  { %2908 = vmatpush.msrb.mxu0 %v8556_v0  ;;  %3011 = vmatpush.msrb.mxu2 %v2840_v45  ;;  %v72_v0 = vld [vmem:[#allocation2 + $0x88] sm:$0xff] }
 0x1a0   :  { %2940 = vmatpush.msrb.mxu1 %v8483_v31  ;;  %3056 = vmatpush.msrb.mxu3 %v8533_v3  ;;  %v8730_v31 = vand.u32 4294901760, %v80_v43  ;;  %v8777_v19 = vand.u32 4294901760, %v72_v0 }
 0x1a1   :  { %2911 = vmatpush.msrb.mxu0 %v8569_v60  ;;  %3015 = vmatpush.msrb.mxu2 %v2846_v51  ;;  %v8764_v60 = vand.u32 4294901760, %v74_v52  ;;  %v11355_v51 = vand.u32 4294901760, %v8738_v39 }
 0x1a2   :  { %2942 = vmatpush.msrb.mxu1 %v8496_v1  ;;  %3058 = vmatpush.msrb.mxu3 %v8545_v35  ;;  %v8740_v1 = vand.u32 4294901760, %v78_v26  ;;  %v8803_v5 = vsub.f32 %v72_v0, %v8777_v19 }
 0x1a3   :  { %2914 = vmatpush.msrb.mxu0 %v8580_v21  ;;  %3019 = vmatpush.msrb.mxu2 %v2852_v23  ;;  %v70_v21 = vld [vmem:[#allocation2 + $0x78] sm:$0xff]  ;;  %v3116_v23 = vsub.f32 %v8728_v14, %v11356_v29  ;;  %v3122_v12 = vsub.f32 %v8738_v39, %v11355_v51  ;;  %v8790_v54 = vsub.f32 %v74_v52, %v8764_v60 }
 0x1a4   :  { %2944 = vmatpush.msrb.mxu1 %v8509_v4  ;;  %3060 = vmatpush.msrb.mxu3 %v8558_v58  ;;  %v8748_v4 = vsub.f32 %v80_v43, %v8730_v31  ;;  %v8762_v45 = vsub.f32 %v78_v26, %v8740_v1  ;;  %v11348_v24 = vand.u32 4294901760, %v8803_v5  ;;  %v58_v43 = vld [vmem:[#allocation2 + $0x18] sm:$0xff] }
 0x1a5   :  { %2917 = vmatmul.f32.vlgmr.msrb.gmra.mxu0 %v8604_v25  ;;  %3023 = vmatpush.msrb.mxu2 %v2858_v7  ;;  %v8775_v7 = vsub.f32 %v76_v16, %v8750_v36  ;;  %v3117_v2 = vand.u32 4294901760, %v3116_v23  ;;  %v3123_v9 = vand.u32 4294901760, %v3122_v12  ;;  %v11350_v57 = vand.u32 4294901760, %v8790_v54  ;;  %v114_v52 = vld [vmem:[#allocation2 + $0x1d8] sm:$0xff] }
 0x1a6   :  { %3263 = vmatpush.msra.mxu3 %v8703_v41  ;;  %3067 = vmatpush.msra.mxu0 %v8703_v41  ;;  %v11353_v37 = vand.u32 4294901760, %v8748_v4  ;;  %v11352_v18 = vand.u32 4294901760, %v8762_v45  ;;  %v8847_v16 = vand.u32 4294901760, %v116_v48  ;;  %v8856_v23 = vand.u32 4294901760, %v60_v30 }
 0x1a7   :  { %2946 = vmatpush.msrb.mxu1 %v8521_v15  ;;  %3210 = vmatpush.msra.mxu2 %v8718_v55  ;;  %v3110_v15 = vsub.f32 %v8718_v55, %v11357_v63  ;;  %v11351_v61 = vand.u32 4294901760, %v8775_v7  ;;  %v3146_v44 = vsub.f32 %v8790_v54, %v11350_v57  ;;  %v8863_v12 = vand.u32 4294901760, %v58_v43  ;;  %v108_v57 = vld [vmem:[#allocation2 + $0x1a8] sm:$0xff] }
 0x1a8   :  { %3265 = vmatpush.msra.mxu3 %v8710_v10  ;;  %3069 = vmatpush.msra.mxu0 %v8710_v10  ;;  %v3128_v47 = vsub.f32 %v8748_v4, %v11353_v37  ;;  %v3134_v20 = vsub.f32 %v8762_v45, %v11352_v18  ;;  %11692 = vst [vmem:[#allocation35_spill] sm:$0xff] %v8856_v23  ;;  %v8922_v29 = vand.u32 4294901760, %v108_v57 }
 0x1a9   :  { %2948 = vmatpush.msrb.mxu1 %v8533_v3  ;;  %3025 = vmatmul.f32.vlgmr.msrb.gmra.mxu2 %v8585_v42  ;;  %v8782_v3 = vand.u32 4294901760, %v70_v21  ;;  %v3111_v11 = vand.u32 4294901760, %v3110_v15  ;;  %v3140_v34 = vsub.f32 %v8775_v7, %v11351_v61  ;;  %v3152_v15 = vsub.f32 %v8803_v5, %v11348_v24  ;;  %11693 = vst [vmem:[#allocation34_spill] sm:$0xff] %v8863_v12 }
 0x1aa   :  { %3071 = vmatpush.msra.mxu0 %v8720_v40  ;;  %3213 = vmatpush.msra.mxu2 %v8728_v14  ;;  %v3129_v49 = vand.u32 4294901760, %v3128_v47  ;;  %v3135_v22 = vand.u32 4294901760, %v3134_v20  ;;  %v3147_v47 = vand.u32 4294901760, %v3146_v44  ;;  %v8873_v20 = vand.u32 4294901760, %v114_v52 }
 0x1ab   :  { %3267 = vmatpush.msra.mxu3 %v8720_v40  ;;  %2950 = vmatpush.msrb.mxu1 %v8545_v35  ;;  %v8795_v35 = vand.u32 4294901760, %v68_v53  ;;  %v8809_v62 = vsub.f32 %v70_v21, %v8782_v3  ;;  %v3141_v0 = vand.u32 4294901760, %v3140_v34  ;;  %v8887_v44 = vsub.f32 %v60_v30, %v8856_v23 }
 0x1ac   :  { %3062 = vmatmul.f32.vlgmr.msrb.gmra.mxu3 %v8585_v42  ;;  %3073 = vmatpush.msra.mxu0 %v8730_v31  ;;  %v8904_v61 = vsub.f32 %v114_v52, %v8873_v20  ;;  %v8954_v42 = vsub.f32 %v108_v57, %v8922_v29 }
 0x1ad   :  { %3216 = vmatpush.msra.mxu2 %v8738_v39  ;;  %3269 = vmatpush.msra.mxu3 %v8730_v31  ;;  %v8821_v28 = vsub.f32 %v68_v53, %v8795_v35  ;;  %v11347_v50 = vand.u32 4294901760, %v8809_v62  ;;  %v112_v53 = vld [vmem:[#allocation2 + $0x1c8] sm:$0xff] }
 0x1ae   :  { %2952 = vmatpush.msrb.mxu1 %v8558_v58  ;;  %3075 = vmatpush.msra.mxu0 %v8740_v1  ;;  %v64_v58 = vld [vmem:[#allocation2 + $0x48] sm:$0xff]  ;;  %v8883_v34 = vand.u32 4294901760, %v112_v53  ;;  %11696 = vst [vmem:[#allocation43_spill] sm:$0xff] %v8904_v61  ;;  %v11701_v57 = vand.u32 4294901760, %v8904_v61 }
 0x1af   :  { %2956 = vmatmul.f32.vlgmr.msrb.gmra.mxu1 %v8621_v8  ;;  %3219 = vmatpush.msra.mxu2 %v8748_v4  ;;  %v8827_v33 = vand.u32 4294901760, %v64_v58  ;;  %v11349_v26 = vand.u32 4294901760, %v8821_v28  ;;  %v102_v8 = vld [vmem:[#allocation2 + $0x178] sm:$0xff] }
 0x1b0   :  { %3112 = vmatpush.msra.mxu1 %v3111_v11  ;;  %3271 = vmatpush.msra.mxu3 %v8740_v1  ;;  %v3158_v11 = vsub.f32 %v8809_v62, %v11347_v50  ;;  %v8889_v50 = vand.u32 4294901760, %v56_v46  ;;  %v8912_v37 = vsub.f32 %v112_v53, %v8883_v34  ;;  %v3463_v25 = vsub.f32 %v8904_v61, %v11701_v57 }
 0x1b1   :  { %3077 = vmatpush.msra.mxu0 %v8750_v36  ;;  %3222 = vmatpush.msra.mxu2 %v8762_v45  ;;  %v8854_v21 = vsub.f32 %v64_v58, %v8827_v33  ;;  %v8870_v58 = vsub.f32 %v62_v32, %v8842_v27  ;;  %v3153_v32 = vand.u32 4294901760, %v3152_v15 }
 0x1b2   :  { %3118 = vmatpush.msra.mxu1 %v3117_v2  ;;  %3273 = vmatpush.msra.mxu3 %v8750_v36  ;;  %v8866_v2 = vsub.f32 %v118_v6, %v8833_v17  ;;  %v3164_v6 = vsub.f32 %v8821_v28, %v11349_v26  ;;  %11695 = vst [vmem:[#allocation14_spill] sm:$0xff] %v8889_v50 }
 0x1b3   :  { %3079 = vmatpush.msra.mxu0 %v8764_v60  ;;  %3225 = vmatpush.msra.mxu2 %v8775_v7  ;;  %v11358_v24 = vand.u32 4294901760, %v8854_v21  ;;  %v8895_v26 = vsub.f32 %v58_v43, %v8863_v12  ;;  %v11361_v15 = vand.u32 4294901760, %v8870_v58  ;;  %11697 = vst [vmem:[#allocation41_spill] sm:$0xff] %v8912_v37 }
 0x1b4   :  { %3124 = vmatpush.msra.mxu1 %v3123_v9  ;;  %3275 = vmatpush.msra.mxu3 %v8764_v60  ;;  %v11354_v9 = vand.u32 4294901760, %v8840_v59  ;;  %v3165_v43 = vand.u32 4294901760, %v3164_v6  ;;  %v104_v6 = vld [vmem:[#allocation2 + $0x188] sm:$0xff] }
 0x1b5   :  { %3081 = vmatpush.msra.mxu0 %v8777_v19  ;;  %3228 = vmatpush.msra.mxu2 %v8790_v54  ;;  %v3176_v52 = vsub.f32 %v8854_v21, %v11358_v24  ;;  %v3182_v24 = vsub.f32 %v8870_v58, %v11361_v15 }
 0x1b6   :  { %3130 = vmatpush.msra.mxu1 %v3129_v49  ;;  %3277 = vmatpush.msra.mxu3 %v8777_v19  ;;  %v8881_v49 = vsub.f32 %v116_v48, %v8847_v16  ;;  %v3159_v48 = vand.u32 4294901760, %v3158_v11  ;;  %v3170_v30 = vsub.f32 %v8840_v59, %v11354_v9  ;;  %v106_v11 = vld [vmem:[#allocation2 + $0x198] sm:$0xff]  ;;  %v8919_v9 = vsub.f32 %v56_v46, %v8889_v50 }
 0x1b7   :  { %3083 = vmatpush.msra.mxu0 %v8782_v3  ;;  %3231 = vmatpush.msra.mxu2 %v8803_v5  ;;  %v8930_v63 = vand.u32 4294901760, %v106_v11  ;;  %v3177_v15 = vand.u32 4294901760, %v3176_v52 }
 0x1b8   :  { %3136 = vmatpush.msra.mxu1 %v3135_v22  ;;  %3279 = vmatpush.msra.mxu3 %v8782_v3  ;;  %11694 = vst [vmem:[#allocation42_spill] sm:$0xff] %v8881_v49  ;;  %v110_v22 = vld [vmem:[#allocation2 + $0x1b8] sm:$0xff]  ;;  %v3171_v46 = vand.u32 4294901760, %v3170_v30  ;;  %v8946_v30 = vand.u32 4294901760, %v104_v6  ;;  %v11703_v13 = vand.u32 4294901760, %v8919_v9 }
 0x1b9   :  { %3085 = vmatpush.msra.mxu0 %v8795_v35  ;;  %3234 = vmatpush.msra.mxu2 %v8809_v62  ;;  %v8906_v18 = vand.u32 4294901760, %v110_v22  ;;  %v8962_v52 = vsub.f32 %v106_v11, %v8930_v63  ;;  %v11702_v11 = vand.u32 4294901760, %v8912_v37 }
 0x1ba   :  { %3142 = vmatpush.msra.mxu1 %v3141_v0  ;;  %3281 = vmatpush.msra.mxu3 %v8795_v35  ;;  %v11359_v0 = vand.u32 4294901760, %v8866_v2 }
 0x1bb   :  { %3087 = vmatpush.msra.mxu0 %v8815_v56  ;;  %3237 = vmatpush.msra.mxu2 %v8821_v28 }
 0x1bc   :  { %3148 = vmatpush.msra.mxu1 %v3147_v47  ;;  %3283 = vmatpush.msra.mxu3 %v8815_v56  ;;  %v3451_v53 = vsub.f32 %v8866_v2, %v11359_v0  ;;  %v8938_v47 = vsub.f32 %v110_v22, %v8906_v18  ;;  %v11698_v0 = vand.u32 4294901760, %v8881_v49  ;;  %v11699_v22 = vand.u32 4294901760, %v8887_v44 }
 0x1bd   :  { %3089 = vmatpush.msra.mxu0 %v8827_v33  ;;  %3240 = vmatpush.msra.mxu2 %v8840_v59 }
 0x1be   :  { %3154 = vmatpush.msra.mxu1 %v3153_v32  ;;  %3285 = vmatpush.msra.mxu3 %v8827_v33  ;;  %v3188_v51 = vsub.f32 %v8887_v44, %v11699_v22  ;;  %v11700_v32 = vand.u32 4294901760, %v8895_v26  ;;  %v3183_v22 = vand.u32 4294901760, %v3182_v24  ;;  %v98_v24 = vld [vmem:[#allocation2 + $0x158] sm:$0xff] }
 0x1bf   :  { %3091 = vmatpush.msra.mxu0 %v8842_v27  ;;  %3243 = vmatpush.msra.mxu2 %v8854_v21 }
 0x1c0   :  { %3160 = vmatpush.msra.mxu1 %v3159_v48  ;;  %3287 = vmatpush.msra.mxu3 %v8842_v27  ;;  %v3457_v48 = vsub.f32 %v8881_v49, %v11698_v0  ;;  %v3452_v0 = vand.u32 4294901760, %v3451_v53  ;;  %v3189_v57 = vand.u32 4294901760, %v3188_v51  ;;  %v8984_v49 = vand.u32 4294901760, %v100_v38 }
 0x1c1   :  { %3093 = vmatpush.msra.mxu0 %v8856_v23  ;;  %3246 = vmatpush.msra.mxu2 %v8870_v58  ;;  %v3464_v51 = vand.u32 4294901760, %v3463_v25 }
 0x1c2   :  { %3166 = vmatpush.msra.mxu1 %v3165_v43  ;;  %3289 = vmatpush.msra.mxu3 %v8856_v23  ;;  %v3194_v43 = vsub.f32 %v8895_v26, %v11700_v32  ;;  %v8969_v23 = vand.u32 4294901760, %v102_v8  ;;  %v3458_v53 = vand.u32 4294901760, %v3457_v48  ;;  %v3469_v32 = vsub.f32 %v8912_v37, %v11702_v11  ;;  %v96_v37 = vld [vmem:[#allocation2 + $0x148] sm:$0xff] }
 0x1c3   :  { %3095 = vmatpush.msra.mxu0 %v8863_v12  ;;  %3249 = vmatpush.msra.mxu2 %v8887_v44  ;;  %v11704_v48 = vand.u32 4294901760, %v8718_v55  ;;  %v11706_v55 = vand.u32 4294901760, %v8728_v14  ;;  %v11708_v14 = vand.u32 4294901760, %v8738_v39  ;;  %v11710_v39 = vand.u32 4294901760, %v8748_v4 }
 0x1c4   :  { %3172 = vmatpush.msra.mxu1 %v3171_v46  ;;  %3291 = vmatpush.msra.mxu3 %v8863_v12  ;;  %v8977_v46 = vsub.f32 %v104_v6, %v8946_v30  ;;  %v3200_v12 = vsub.f32 %v8919_v9, %v11703_v13  ;;  %v3195_v11 = vand.u32 4294901760, %v3194_v43  ;;  %v8994_v61 = vsub.f32 %v102_v8, %v8969_v23 }
 0x1c5   :  { %3097 = vmatpush.msra.mxu0 %v8889_v50  ;;  %3252 = vmatpush.msra.mxu2 %v8895_v26  ;;  %v9006_v8 = vsub.f32 %v100_v38, %v8984_v49  ;;  %v9008_v6 = vand.u32 4294901760, %v96_v37  ;;  %v11711_v4 = vand.u32 4294901760, %v8762_v45  ;;  %v11713_v45 = vand.u32 4294901760, %v8775_v7 }
 0x1c6   :  { %3178 = vmatpush.msra.mxu1 %v3177_v15  ;;  %3293 = vmatpush.msra.mxu3 %v8889_v50  ;;  %v11705_v15 = vand.u32 4294901760, %v8938_v47  ;;  %v8996_v50 = vand.u32 4294901760, %v98_v24  ;;  %v11377_v43 = vand.u32 4294901760, %v8977_v46  ;;  %v3201_v25 = vand.u32 4294901760, %v3200_v12 }
 0x1c7   :  { %3304 = vmatpush.msrb.mxu0 %v11704_v48  ;;  %3255 = vmatpush.msra.mxu2 %v8919_v9  ;;  %v11707_v48 = vand.u32 4294901760, %v8954_v42  ;;  %v11714_v7 = vand.u32 4294901760, %v8790_v54 }
 0x1c8   :  { %3453 = vmatpush.msrb.mxu3 %v3452_v0  ;;  %3184 = vmatpush.msra.mxu1 %v3183_v22  ;;  %v3475_v13 = vsub.f32 %v8938_v47, %v11705_v15  ;;  %v3470_v0 = vand.u32 4294901760, %v3469_v32  ;;  %v94_v22 = vld [vmem:[#allocation2 + $0x138] sm:$0xff]  ;;  %v11709_v32 = vand.u32 4294901760, %v8962_v52  ;;  %v9018_v38 = vsub.f32 %v98_v24, %v8996_v50 }
 0x1c9   :  { %3308 = vmatpush.msrb.mxu0 %v11706_v55  ;;  %3408 = vmatpush.msrb.mxu2 %v8833_v17  ;;  %v3481_v15 = vsub.f32 %v8954_v42, %v11707_v48  ;;  %v9020_v48 = vand.u32 4294901760, %v94_v22  ;;  %v9030_v24 = vsub.f32 %v96_v37, %v9008_v6  ;;  %v88_v55 = vld [vmem:[#allocation2 + $0x108] sm:$0xff] }
 0x1ca   :  { %3459 = vmatpush.msrb.mxu3 %v3458_v53  ;;  %3190 = vmatpush.msra.mxu1 %v3189_v57  ;;  %v3487_v53 = vsub.f32 %v8962_v52, %v11709_v32  ;;  %v92_v57 = vld [vmem:[#allocation2 + $0x128] sm:$0xff]  ;;  %v3476_v12 = vand.u32 4294901760, %v3475_v13  ;;  %v90_v32 = vld [vmem:[#allocation2 + $0x118] sm:$0xff] }
 0x1cb   :  { %3312 = vmatpush.msrb.mxu0 %v11708_v14  ;;  %3410 = vmatpush.msrb.mxu2 %v8847_v16  ;;  %v3493_v14 = vsub.f32 %v8977_v46, %v11377_v43  ;;  %v9032_v13 = vand.u32 4294901760, %v92_v57  ;;  %v9043_v37 = vsub.f32 %v94_v22, %v9020_v48  ;;  %v9045_v43 = vand.u32 4294901760, %v90_v32 }
 0x1cc   :  { %3465 = vmatpush.msrb.mxu3 %v3464_v51  ;;  %3196 = vmatpush.msra.mxu1 %v3195_v11  ;;  %v3482_v11 = vand.u32 4294901760, %v3481_v15  ;;  %v3504_v51 = vand.u32 4294901760, %v9006_v8  ;;  %v3510_v15 = vand.u32 4294901760, %v9018_v38 }
 0x1cd   :  { %3316 = vmatpush.msrb.mxu0 %v11710_v39  ;;  %3412 = vmatpush.msrb.mxu2 %v8873_v20  ;;  %v3488_v39 = vand.u32 4294901760, %v3487_v53  ;;  %v9056_v22 = vsub.f32 %v92_v57, %v9032_v13  ;;  %v9069_v57 = vsub.f32 %v90_v32, %v9045_v43  ;;  %v11716_v32 = vand.u32 4294901760, %v8809_v62 }
 0x1ce   :  { %3471 = vmatpush.msrb.mxu3 %v3470_v0  ;;  %3202 = vmatpush.msra.mxu1 %v3201_v25  ;;  %v11712_v0 = vand.u32 4294901760, %v8994_v61  ;;  %v3505_v53 = vsub.f32 %v9006_v8, %v3504_v51 }
 0x1cf   :  { %3320 = vmatpush.msrb.mxu0 %v11711_v4  ;;  %3414 = vmatpush.msrb.mxu2 %v8883_v34  ;;  %v9058_v4 = vand.u32 4294901760, %v88_v55 }
 0x1d0   :  { %3371 = vmatpush.msrb.mxu1 %v8703_v41  ;;  %3477 = vmatpush.msrb.mxu3 %v3476_v12  ;;  %v3499_v25 = vsub.f32 %v8994_v61, %v11712_v0  ;;  %v3494_v41 = vand.u32 4294901760, %v3493_v14  ;;  %v3516_v12 = vand.u32 4294901760, %v9030_v24  ;;  %v3511_v14 = vsub.f32 %v9018_v38, %v3510_v15 }
 0x1d1   :  { %3324 = vmatpush.msrb.mxu0 %v11713_v45  ;;  %3416 = vmatpush.msrb.mxu2 %v8906_v18  ;;  %v11715_v0 = vand.u32 4294901760, %v8803_v5  ;;  %v3534_v45 = vand.u32 4294901760, %v9069_v57 }
 0x1d2   :  { %3373 = vmatpush.msrb.mxu1 %v8710_v10  ;;  %3483 = vmatpush.msrb.mxu3 %v3482_v11  ;;  %v3500_v10 = vand.u32 4294901760, %v3499_v25  ;;  %v3522_v11 = vand.u32 4294901760, %v9043_v37  ;;  %v3517_v54 = vsub.f32 %v9030_v24, %v3516_v12  ;;  %v9080_v25 = vsub.f32 %v88_v55, %v9058_v4 }
 0x1d3   :  { %3328 = vmatpush.msrb.mxu0 %v11714_v7  ;;  %3418 = vmatpush.msrb.mxu2 %v8922_v29  ;;  %v11719_v7 = vand.u32 4294901760, %v8854_v21 }
 0x1d4   :  { %3375 = vmatpush.msrb.mxu1 %v8720_v40  ;;  %3489 = vmatpush.msrb.mxu3 %v3488_v39  ;;  %v3506_v40 = vand.u32 4294901760, %v3505_v53  ;;  %v3528_v39 = vand.u32 4294901760, %v9056_v22  ;;  %v3523_v5 = vsub.f32 %v9043_v37, %v3522_v11  ;;  %v3518_v62 = vand.u32 4294901760, %v3517_v54  ;;  %v11733_v54 = vld [vmem:[#allocation41_spill] sm:$0xff] }
 0x1d5   :  { %3332 = vmatpush.msrb.mxu0 %v11715_v0  ;;  %3420 = vmatpush.msrb.mxu2 %v8930_v63  ;;  %v3540_v55 = vand.u32 4294901760, %v9080_v25  ;;  %v11718_v53 = vand.u32 4294901760, %v8840_v59  ;;  %v11722_v0 = vand.u32 4294901760, %v8895_v26  ;;  %v11727_v26 = vld [vmem:[#allocation42_spill] sm:$0xff] }
 0x1d6   :  { %3377 = vmatpush.msrb.mxu1 %v8730_v31  ;;  %3495 = vmatpush.msrb.mxu3 %v3494_v41  ;;  %v3512_v31 = vand.u32 4294901760, %v3511_v14  ;;  %v11717_v41 = vand.u32 4294901760, %v8821_v28  ;;  %v3524_v28 = vand.u32 4294901760, %v3523_v5  ;;  %v11721_v14 = vand.u32 4294901760, %v8887_v44  ;;  %v11730_v44 = vld [vmem:[#allocation43_spill] sm:$0xff] }
 0x1d7   :  { %3336 = vmatpush.msrb.mxu0 %v11716_v32  ;;  %3422 = vmatpush.msrb.mxu2 %v8946_v30  ;;  %v11734_v32 = vand.u32 4294901760, %v11730_v44  ;;  %v11737_v5 = vand.u32 4294901760, %v11733_v54 }
 0x1d8   :  { %3379 = vmatpush.msrb.mxu1 %v8740_v1  ;;  %3501 = vmatpush.msrb.mxu3 %v3500_v10  ;;  %v3529_v1 = vsub.f32 %v9056_v22, %v3528_v39  ;;  %v11720_v10 = vand.u32 4294901760, %v8870_v58  ;;  %v11725_v58 = vld [vmem:[#allocation19_spill] sm:$0xff] }
 0x1d9   :  { %3340 = vmatpush.msrb.mxu0 %v11717_v41  ;;  %3424 = vmatpush.msrb.mxu2 %v8969_v23  ;;  %v11738_v41 = vand.u32 4294901760, %v8938_v47 }
 0x1da   :  { %3381 = vmatpush.msrb.mxu1 %v8750_v36  ;;  %3507 = vmatpush.msrb.mxu3 %v3506_v40  ;;  %v3535_v36 = vsub.f32 %v9069_v57, %v3534_v45  ;;  %v3530_v59 = vand.u32 4294901760, %v3529_v1  ;;  %v11731_v40 = vand.u32 4294901760, %v11727_v26  ;;  %v11740_v1 = vand.u32 4294901760, %v8954_v42 }
 0x1db   :  { %3344 = vmatpush.msrb.mxu0 %v11718_v53  ;;  %3426 = vmatpush.msrb.mxu2 %v8984_v49 }
 0x1dc   :  { %3383 = vmatpush.msrb.mxu1 %v8764_v60  ;;  %3513 = vmatpush.msrb.mxu3 %v3512_v31  ;;  %v3541_v60 = vsub.f32 %v9080_v25, %v3540_v55  ;;  %v3536_v21 = vand.u32 4294901760, %v3535_v36  ;;  %v11736_v31 = vld [vmem:[#allocation17_spill] sm:$0xff]  ;;  %v132_v36 = vld [vmem:[#allocation2 + $0x268] sm:$0xff] }
 0x1dd   :  { %3348 = vmatpush.msrb.mxu0 %v11719_v7  ;;  %3428 = vmatpush.msrb.mxu2 %v8996_v50 }
 0x1de   :  { %3385 = vmatpush.msrb.mxu1 %v8777_v19  ;;  %3519 = vmatpush.msrb.mxu3 %v3518_v62  ;;  %v3542_v19 = vand.u32 4294901760, %v3541_v60  ;;  %v11739_v62 = vld [vmem:[#allocation15_spill] sm:$0xff] }
 0x1df   :  { %3352 = vmatpush.msrb.mxu0 %v11720_v10  ;;  %3430 = vmatpush.msrb.mxu2 %v9008_v6 }
 0x1e0   :  { %3387 = vmatpush.msrb.mxu1 %v8782_v3  ;;  %3525 = vmatpush.msrb.mxu3 %v3524_v28  ;;  %v11723_v3 = vand.u32 4294901760, %v8919_v9  ;;  %v11729_v9 = vld [vmem:[#allocation35_spill] sm:$0xff] }
 0x1e1   :  { %3356 = vmatpush.msrb.mxu0 %v11721_v14  ;;  %3432 = vmatpush.msrb.mxu2 %v9020_v48 }
 0x1e2   :  { %3389 = vmatpush.msrb.mxu1 %v8795_v35  ;;  %3531 = vmatpush.msrb.mxu3 %v3530_v59  ;;  %v11724_v35 = vld [vmem:[#allocation21_spill] sm:$0xff] }
 0x1e3   :  { %3360 = vmatpush.msrb.mxu0 %v11722_v0  ;;  %3434 = vmatpush.msrb.mxu2 %v9032_v13  ;;  %v9295_v0 = vand.u32 4294901760, %v132_v36 }
 0x1e4   :  { %3391 = vmatpush.msrb.mxu1 %v8815_v56  ;;  %3537 = vmatpush.msrb.mxu3 %v3536_v21  ;;  %v11726_v56 = vld [vmem:[#allocation18_spill] sm:$0xff] }
 0x1e5   :  { %3364 = vmatpush.msrb.mxu0 %v11723_v3  ;;  %3436 = vmatpush.msrb.mxu2 %v9045_v43  ;;  %v130_v21 = vld [vmem:[#allocation2 + $0x258] sm:$0xff] }
 0x1e6   :  { %3393 = vmatpush.msrb.mxu1 %v8827_v33  ;;  %3543 = vmatpush.msrb.mxu3 %v3542_v19  ;;  %v11728_v33 = vand.u32 4294901760, %v8866_v2 }
 0x1e7   :  { %3103 = vmatmul.f32.vlgmr.msra.gmra.mxu0 %v11724_v35  ;;  %3297 = vmatmul.f32.vlgmr.msra.gmra.mxu3 %v11725_v58  ;;  %v11746_v35 = vld [vmem:[#allocation11_spill] sm:$0xff] }
 0x1e8   :  { %3551 = vmatpush.msra.mxu0 %v8866_v2  ;;  %3712 = vmatpush.msra.mxu3 %v8833_v17  ;;  %v11735_v2 = vld [vmem:[#allocation14_spill] sm:$0xff] }
 0x1e9   :  { %3395 = vmatpush.msrb.mxu1 %v8842_v27  ;;  %3438 = vmatpush.msrb.mxu2 %v9058_v4  ;;  %v11732_v27 = vld [vmem:[#allocation34_spill] sm:$0xff] }
 0x1ea   :  { %3258 = vmatmul.f32.vlgmr.msra.gmra.mxu2 %v11726_v56  ;;  %3554 = vmatpush.msra.mxu0 %v11727_v26  ;;  %v128_v56 = vld [vmem:[#allocation2 + $0x248] sm:$0xff] }
 0x1eb   :  { %3645 = vmatpush.msra.mxu2 %v11728_v33  ;;  %3714 = vmatpush.msra.mxu3 %v8847_v16  ;;  %v9307_v33 = vand.u32 4294901760, %v130_v21 }
 0x1ec   :  { %3397 = vmatpush.msrb.mxu1 %v11729_v9  ;;  %3557 = vmatpush.msra.mxu0 %v11730_v44  ;;  %v182_v44 = vld [vmem:[#allocation2 + $0x3f8] sm:$0xff] }
 0x1ed   :  { %3649 = vmatpush.msra.mxu2 %v11731_v40  ;;  %3716 = vmatpush.msra.mxu3 %v8873_v20 }
 0x1ee   :  { %3399 = vmatpush.msrb.mxu1 %v11732_v27  ;;  %3560 = vmatpush.msra.mxu0 %v11733_v54  ;;  %v126_v27 = vld [vmem:[#allocation2 + $0x238] sm:$0xff] }
 0x1ef   :  { %3653 = vmatpush.msra.mxu2 %v11734_v32  ;;  %3718 = vmatpush.msra.mxu3 %v8883_v34  ;;  %v9317_v32 = vsub.f32 %v132_v36, %v9295_v0 }
 0x1f0   :  { %3401 = vmatpush.msrb.mxu1 %v11735_v2  ;;  %3563 = vmatpush.msra.mxu0 %v8938_v47  ;;  %v144_v47 = vld [vmem:[#allocation2 + $0x2c8] sm:$0xff]  ;;  %v9319_v2 = vand.u32 4294901760, %v128_v56 }
 0x1f1   :  { %3204 = vmatmul.f32.vlgmr.msra.gmra.mxu1 %v11736_v31  ;;  %3657 = vmatpush.msra.mxu2 %v11737_v5  ;;  %v180_v5 = vld [vmem:[#allocation2 + $0x3e8] sm:$0xff] }
 0x1f2   :  { %3604 = vmatpush.msra.mxu1 %v8833_v17  ;;  %3720 = vmatpush.msra.mxu3 %v8906_v18  ;;  %v11741_v17 = vld [vmem:[#allocation20_spill] sm:$0xff] }
 0x1f3   :  { %3566 = vmatpush.msra.mxu0 %v8954_v42  ;;  %3661 = vmatpush.msra.mxu2 %v11738_v41  ;;  %v11743_v42 = vand.u32 4294901760, %v8977_v46 }
 0x1f4   :  { %3606 = vmatpush.msra.mxu1 %v8847_v16  ;;  %3722 = vmatpush.msra.mxu3 %v8922_v29  ;;  %v11742_v16 = vand.u32 4294901760, %v8962_v52 }
 0x1f5   :  { %3444 = vmatmul.f32.vlgmr.msrb.gmra.mxu2 %v11739_v62  ;;  %3569 = vmatpush.msra.mxu0 %v8962_v52  ;;  %v142_v52 = vld [vmem:[#allocation2 + $0x2b8] sm:$0xff]  ;;  %v9324_v62 = vand.u32 4294901760, %v182_v44 }
 0x1f6   :  { %3608 = vmatpush.msra.mxu1 %v8873_v20  ;;  %3665 = vmatpush.msra.mxu2 %v11740_v1  ;;  %v11744_v20 = vand.u32 4294901760, %v8994_v61 }
 0x1f7   :  { %3724 = vmatpush.msra.mxu3 %v8930_v63  ;;  %3366 = vmatmul.f32.vlgmr.msrb.gmra.mxu0 %v11736_v31 }
 0x1f8   :  { %3545 = vmatmul.f32.vlgmr.msrb.gmra.mxu3 %v11741_v17  ;;  %3572 = vmatpush.msra.mxu0 %v8977_v46  ;;  %v9216_v46 = vand.u32 4294901760, %v144_v47 }
 0x1f9   :  { %3610 = vmatpush.msra.mxu1 %v8883_v34  ;;  %3669 = vmatpush.msra.mxu2 %v11742_v16  ;;  %v150_v34 = vld [vmem:[#allocation2 + $0x2f8] sm:$0xff]  ;;  %v9333_v16 = vand.u32 4294901760, %v126_v27 }
 0x1fa   :  { %3726 = vmatpush.msra.mxu3 %v8946_v30  ;;  %3403 = vmatmul.f32.vlgmr.msrb.gmra.mxu1 %v11736_v31 }
 0x1fb   :  { %3575 = vmatpush.msra.mxu0 %v8994_v61  ;;  %3612 = vmatpush.msra.mxu1 %v8906_v18  ;;  %v9195_v18 = vand.u32 4294901760, %v150_v34 }
 0x1fc   :  { %3673 = vmatpush.msra.mxu2 %v11743_v42  ;;  %3728 = vmatpush.msra.mxu3 %v8969_v23 }
 0x1fd   :  { %3578 = vmatpush.msra.mxu0 %v9006_v8  ;;  %3614 = vmatpush.msra.mxu1 %v8922_v29  ;;  %v148_v29 = vld [vmem:[#allocation2 + $0x2e8] sm:$0xff]  ;;  %v9226_v8 = vand.u32 4294901760, %v142_v52 }
 0x1fe   :  { %3677 = vmatpush.msra.mxu2 %v11744_v20  ;;  %3730 = vmatpush.msra.mxu3 %v8984_v49  ;;  %v9202_v61 = vand.u32 4294901760, %v148_v29  ;;  %v124_v20 = vld [vmem:[#allocation2 + $0x228] sm:$0xff] }
 0x1ff   :  { %3581 = vmatpush.msra.mxu0 %v9018_v38  ;;  %3616 = vmatpush.msra.mxu1 %v8930_v63  ;;  %v146_v63 = vld [vmem:[#allocation2 + $0x2d8] sm:$0xff]  ;;  %v140_v38 = vld [vmem:[#allocation2 + $0x2a8] sm:$0xff] }
 0x200   :  { %3681 = vmatpush.msra.mxu2 %v3504_v51  ;;  %3732 = vmatpush.msra.mxu3 %v8996_v50 }
 0x201   :  { %3584 = vmatpush.msra.mxu0 %v9030_v24  ;;  %3618 = vmatpush.msra.mxu1 %v8946_v30  ;;  %v9212_v30 = vand.u32 4294901760, %v146_v63  ;;  %v11745_v24 = vld [vmem:[#allocation22_spill] sm:$0xff] }
 0x202   :  { %3685 = vmatpush.msra.mxu2 %v3510_v15  ;;  %3734 = vmatpush.msra.mxu3 %v9008_v6  ;;  %v9238_v15 = vsub.f32 %v144_v47, %v9216_v46  ;;  %v9345_v47 = vsub.f32 %v128_v56, %v9319_v2 }
 0x203   :  { %3587 = vmatpush.msra.mxu0 %v9043_v37  ;;  %3620 = vmatpush.msra.mxu1 %v8969_v23  ;;  %v9210_v23 = vsub.f32 %v150_v34, %v9195_v18  ;;  %v9242_v37 = vand.u32 4294901760, %v140_v38  ;;  %v9338_v34 = vand.u32 4294901760, %v180_v5 }
 0x204   :  { %3689 = vmatpush.msra.mxu2 %v3516_v12  ;;  %3736 = vmatpush.msra.mxu3 %v9020_v48  ;;  %v11381_v56 = vand.u32 4294901760, %v9345_v47 }
 0x205   :  { %3590 = vmatpush.msra.mxu0 %v9056_v22  ;;  %3622 = vmatpush.msra.mxu1 %v8984_v49  ;;  %v9222_v49 = vsub.f32 %v148_v29, %v9202_v61  ;;  %v11393_v51 = vand.u32 4294901760, %v9210_v23  ;;  %v9249_v22 = vsub.f32 %v142_v52, %v9226_v8  ;;  %v9268_v53 = vsub.f32 %v140_v38, %v9242_v37  ;;  %v122_v38 = vld [vmem:[#allocation2 + $0x218] sm:$0xff] }
 0x206   :  { %3693 = vmatpush.msra.mxu2 %v3522_v11  ;;  %3738 = vmatpush.msra.mxu3 %v9032_v13  ;;  %v136_v11 = vld [vmem:[#allocation2 + $0x288] sm:$0xff]  ;;  %v11379_v52 = vand.u32 4294901760, %v9317_v32 }
 0x207   :  { %3593 = vmatpush.msra.mxu0 %v9069_v57  ;;  %3624 = vmatpush.msra.mxu1 %v8996_v50  ;;  %v9232_v50 = vsub.f32 %v146_v63, %v9212_v30  ;;  %v11391_v12 = vand.u32 4294901760, %v9222_v49  ;;  %v9270_v28 = vand.u32 4294901760, %v136_v11  ;;  %v11384_v3 = vand.u32 4294901760, %v9268_v53 }
 0x208   :  { %3697 = vmatpush.msra.mxu2 %v3528_v39  ;;  %3740 = vmatpush.msra.mxu3 %v9045_v43 }
 0x209   :  { %3596 = vmatpush.msra.mxu0 %v9080_v25  ;;  %3626 = vmatpush.msra.mxu1 %v9008_v6  ;;  %v138_v6 = vld [vmem:[#allocation2 + $0x298] sm:$0xff]  ;;  %v11390_v39 = vand.u32 4294901760, %v9232_v50  ;;  %v11389_v25 = vand.u32 4294901760, %v9238_v15  ;;  %v9293_v19 = vsub.f32 %v136_v11, %v9270_v28  ;;  %v3822_v54 = vsub.f32 %v9268_v53, %v11384_v3  ;;  %v168_v3 = vld [vmem:[#allocation2 + $0x388] sm:$0xff] }
 0x20a   :  { %3701 = vmatpush.msra.mxu2 %v3534_v45  ;;  %3742 = vmatpush.msra.mxu3 %v9058_v4  ;;  %v9256_v57 = vand.u32 4294901760, %v138_v6  ;;  %v134_v45 = vld [vmem:[#allocation2 + $0x278] sm:$0xff]  ;;  %v9353_v11 = vsub.f32 %v182_v44, %v9324_v62 }
 0x20b   :  { %3599 = vmatmul.f32.vlgmr.msra.gmra.mxu0 %v11745_v24  ;;  %3628 = vmatpush.msra.mxu1 %v9020_v48  ;;  %v3792_v48 = vsub.f32 %v9210_v23, %v11393_v51  ;;  %v3804_v59 = vsub.f32 %v9232_v50, %v11390_v39  ;;  %v9283_v10 = vand.u32 4294901760, %v134_v45  ;;  %v11382_v31 = vand.u32 4294901760, %v9293_v19  ;;  %v178_v24 = vld [vmem:[#allocation2 + $0x3d8] sm:$0xff] }
 0x20c   :  { %3945 = vmatpush.msrb.mxu3 %v9195_v18  ;;  %3749 = vmatpush.msrb.mxu0 %v9195_v18  ;;  %v9281_v60 = vsub.f32 %v138_v6, %v9256_v57  ;;  %v3823_v29 = vand.u32 4294901760, %v3822_v54  ;;  %v9350_v6 = vand.u32 4294901760, %v124_v20  ;;  %v11385_v44 = vand.u32 4294901760, %v9353_v11 }
 0x20d   :  { %3705 = vmatpush.msra.mxu2 %v3540_v55  ;;  %3630 = vmatpush.msra.mxu1 %v9032_v13  ;;  %v3798_v55 = vsub.f32 %v9222_v49, %v11391_v12  ;;  %v11387_v13 = vand.u32 4294901760, %v9249_v22  ;;  %v3793_v7 = vand.u32 4294901760, %v3792_v48  ;;  %v9305_v26 = vsub.f32 %v134_v45, %v9283_v10 }
 0x20e   :  { %3947 = vmatpush.msrb.mxu3 %v9202_v61  ;;  %3751 = vmatpush.msrb.mxu0 %v9202_v61  ;;  %v11383_v9 = vand.u32 4294901760, %v9281_v60  ;;  %v3834_v63 = vsub.f32 %v9293_v19, %v11382_v31  ;;  %v9444_v39 = vand.u32 4294901760, %v168_v3 }
 0x20f   :  { %3892 = vmatpush.msrb.mxu2 %v9210_v23  ;;  %3632 = vmatpush.msra.mxu1 %v9045_v43  ;;  %v3810_v43 = vsub.f32 %v9238_v15, %v11389_v25  ;;  %v3799_v14 = vand.u32 4294901760, %v3798_v55  ;;  %v3816_v58 = vsub.f32 %v9249_v22, %v11387_v13  ;;  %v11380_v42 = vand.u32 4294901760, %v9305_v26 }
 0x210   :  { %3707 = vmatmul.f32.vlgmr.msra.gmra.mxu2 %v11741_v17  ;;  %3753 = vmatpush.msrb.mxu0 %v9212_v30  ;;  %v3828_v1 = vsub.f32 %v9281_v60, %v11383_v9  ;;  %v9360_v55 = vsub.f32 %v126_v27, %v9333_v16  ;;  %v174_v27 = vld [vmem:[#allocation2 + $0x3b8] sm:$0xff] }
 0x211   :  { %3895 = vmatpush.msrb.mxu2 %v9222_v49  ;;  %3949 = vmatpush.msrb.mxu3 %v9212_v30  ;;  %v3811_v40 = vand.u32 4294901760, %v3810_v43  ;;  %v3817_v41 = vand.u32 4294901760, %v3816_v58  ;;  %v3840_v45 = vsub.f32 %v9305_v26, %v11380_v42  ;;  %v120_v43 = vld [vmem:[#allocation2 + $0x208] sm:$0xff]  ;;  %v3846_v58 = vsub.f32 %v9317_v32, %v11379_v52  ;;  %v170_v42 = vld [vmem:[#allocation2 + $0x398] sm:$0xff] }
 0x212   :  { %3744 = vmatmul.f32.vlgmr.msra.gmra.mxu3 %v11741_v17  ;;  %3755 = vmatpush.msrb.mxu0 %v9216_v46  ;;  %v9331_v17 = vsub.f32 %v130_v21, %v9307_v33  ;;  %v3829_v48 = vand.u32 4294901760, %v3828_v1  ;;  %v9368_v21 = vsub.f32 %v180_v5, %v9338_v34  ;;  %v11386_v1 = vand.u32 4294901760, %v9360_v55 }
 0x213   :  { %3898 = vmatpush.msrb.mxu2 %v9232_v50  ;;  %3951 = vmatpush.msrb.mxu3 %v9216_v46  ;;  %v3841_v54 = vand.u32 4294901760, %v3840_v45  ;;  %v3847_v45 = vand.u32 4294901760, %v3846_v58  ;;  %v9405_v52 = vand.u32 4294901760, %v174_v27 }
 0x214   :  { %3634 = vmatpush.msra.mxu1 %v9058_v4  ;;  %3757 = vmatpush.msrb.mxu0 %v9226_v8  ;;  %v3805_v4 = vand.u32 4294901760, %v3804_v59  ;;  %v11378_v36 = vand.u32 4294901760, %v9331_v17  ;;  %v9365_v59 = vand.u32 4294901760, %v122_v38 }
 0x215   :  { %3638 = vmatmul.f32.vlgmr.msra.gmra.mxu1 %v11746_v35  ;;  %3901 = vmatpush.msrb.mxu2 %v9238_v15  ;;  %v3835_v35 = vand.u32 4294901760, %v3834_v63 }
 0x216   :  { %3794 = vmatpush.msrb.mxu1 %v3793_v7  ;;  %3953 = vmatpush.msrb.mxu3 %v9226_v8  ;;  %v176_v7 = vld [vmem:[#allocation2 + $0x3c8] sm:$0xff]  ;;  %11747 = vst [vmem:[#allocation21_spill] sm:$0xff] %v9365_v59  ;;  %v3852_v5 = vsub.f32 %v9331_v17, %v11378_v36  ;;  %v3858_v36 = vsub.f32 %v9345_v47, %v11381_v56 }
 0x217   :  { %3759 = vmatpush.msrb.mxu0 %v9242_v37  ;;  %3904 = vmatpush.msrb.mxu2 %v9249_v22  ;;  %v3864_v56 = vsub.f32 %v9360_v55, %v11386_v1  ;;  %v9436_v1 = vsub.f32 %v174_v27, %v9405_v52  ;;  %v164_v27 = vld [vmem:[#allocation2 + $0x368] sm:$0xff] }
 0x218   :  { %3800 = vmatpush.msrb.mxu1 %v3799_v14  ;;  %3955 = vmatpush.msrb.mxu3 %v9242_v37  ;;  %v9370_v14 = vand.u32 4294901760, %v178_v24  ;;  %v3853_v58 = vand.u32 4294901760, %v3852_v5 }
 0x219   :  { %3761 = vmatpush.msrb.mxu0 %v9256_v57  ;;  %3907 = vmatpush.msrb.mxu2 %v9268_v53  ;;  %11750 = vst [vmem:[#allocation42_spill] sm:$0xff] %v9436_v1 }
 0x21a   :  { %3806 = vmatpush.msrb.mxu1 %v3805_v4  ;;  %3957 = vmatpush.msrb.mxu3 %v9256_v57  ;;  %v9380_v4 = vsub.f32 %v124_v20, %v9350_v6  ;;  %v9395_v20 = vsub.f32 %v122_v38, %v9365_v59  ;;  %v9399_v63 = vsub.f32 %v178_v24, %v9370_v14 }
 0x21b   :  { %3763 = vmatpush.msrb.mxu0 %v9270_v28  ;;  %3910 = vmatpush.msrb.mxu2 %v9281_v60  ;;  %v4133_v38 = vsub.f32 %v9353_v11, %v11385_v44  ;;  %v9432_v44 = vand.u32 4294901760, %v170_v42 }
 0x21c   :  { %3812 = vmatpush.msrb.mxu1 %v3811_v40  ;;  %3959 = vmatpush.msrb.mxu3 %v9270_v28  ;;  %v9383_v40 = vand.u32 4294901760, %v176_v7  ;;  %v11392_v24 = vand.u32 4294901760, %v9380_v4  ;;  %v11396_v5 = vand.u32 4294901760, %v9395_v20 }
 0x21d   :  { %3765 = vmatpush.msrb.mxu0 %v9283_v10  ;;  %3913 = vmatpush.msrb.mxu2 %v9293_v19  ;;  %v4134_v13 = vand.u32 4294901760, %v4133_v38 }
 0x21e   :  { %3818 = vmatpush.msrb.mxu1 %v3817_v41  ;;  %3961 = vmatpush.msrb.mxu3 %v9283_v10  ;;  %v9389_v41 = vand.u32 4294901760, %v120_v43 }
 0x21f   :  { %3767 = vmatpush.msrb.mxu0 %v9295_v0  ;;  %3916 = vmatpush.msrb.mxu2 %v9305_v26 }
 0x220   :  { %3824 = vmatpush.msrb.mxu1 %v3823_v29  ;;  %3963 = vmatpush.msrb.mxu3 %v9295_v0  ;;  %11748 = vst [vmem:[#allocation19_spill] sm:$0xff] %v9389_v41  ;;  %v11388_v29 = vand.u32 4294901760, %v9368_v21  ;;  %v9421_v31 = vsub.f32 %v120_v43, %v9389_v41  ;;  %v3859_v43 = vand.u32 4294901760, %v3858_v36  ;;  %v3865_v36 = vand.u32 4294901760, %v3864_v56 }
 0x221   :  { %3769 = vmatpush.msrb.mxu0 %v9307_v33  ;;  %3919 = vmatpush.msrb.mxu2 %v9317_v32  ;;  %v9460_v56 = vsub.f32 %v170_v42, %v9432_v44  ;;  %v162_v42 = vld [vmem:[#allocation2 + $0x358] sm:$0xff] }
 0x222   :  { %3830 = vmatpush.msrb.mxu1 %v3829_v48  ;;  %3965 = vmatpush.msrb.mxu3 %v9307_v33  ;;  %v172_v48 = vld [vmem:[#allocation2 + $0x3a8] sm:$0xff] }
 0x223   :  { %3771 = vmatpush.msrb.mxu0 %v9319_v2  ;;  %3922 = vmatpush.msrb.mxu2 %v9331_v17  ;;  %v9423_v9 = vand.u32 4294901760, %v172_v48  ;;  %11752 = vst [vmem:[#allocation43_spill] sm:$0xff] %v9460_v56 }
 0x224   :  { %3836 = vmatpush.msrb.mxu1 %v3835_v35  ;;  %3967 = vmatpush.msrb.mxu3 %v9319_v2  ;;  %v9414_v35 = vsub.f32 %v176_v7, %v9383_v40  ;;  %v4139_v7 = vsub.f32 %v9368_v21, %v11388_v29  ;;  %v3870_v29 = vsub.f32 %v9380_v4, %v11392_v24 }
 0x225   :  { %3773 = vmatpush.msrb.mxu0 %v9333_v16  ;;  %3925 = vmatpush.msrb.mxu2 %v9345_v47  ;;  %v9449_v12 = vsub.f32 %v172_v48, %v9423_v9  ;;  %v11756_v48 = vand.u32 4294901760, %v9421_v31 }
 0x226   :  { %11749 = vst [vmem:[#allocation18_spill] sm:$0xff] %v9414_v35  ;;  %3842 = vmatpush.msrb.mxu1 %v3841_v54  ;;  %3969 = vmatpush.msrb.mxu3 %v9333_v16  ;;  %v11394_v54 = vand.u32 4294901760, %v9399_v63  ;;  %v4140_v38 = vand.u32 4294901760, %v4139_v7  ;;  %v11753_v7 = vld [vmem:[#allocation28_spill] sm:$0xff]  ;;  %v3871_v25 = vand.u32 4294901760, %v3870_v29 }
 0x227   :  { %3775 = vmatpush.msrb.mxu0 %v9350_v6  ;;  %3928 = vmatpush.msrb.mxu2 %v9360_v55  ;;  %11751 = vst [vmem:[#allocation35_spill] sm:$0xff] %v9449_v12 }
 0x228   :  { %3848 = vmatpush.msrb.mxu1 %v3847_v45  ;;  %3971 = vmatpush.msrb.mxu3 %v9350_v6  ;;  %v166_v45 = vld [vmem:[#allocation2 + $0x378] sm:$0xff]  ;;  %v4145_v24 = vsub.f32 %v9399_v63, %v11394_v54  ;;  %v11754_v54 = vand.u32 4294901760, %v9414_v35 }
 0x229   :  { %3777 = vmatpush.msrb.mxu0 %v9365_v59  ;;  %3931 = vmatpush.msrb.mxu2 %v9380_v4  ;;  %v9464_v51 = vand.u32 4294901760, %v166_v45 }
 0x22a   :  { %3854 = vmatpush.msrb.mxu1 %v3853_v58  ;;  %3973 = vmatpush.msrb.mxu3 %v9365_v59  ;;  %v3876_v58 = vsub.f32 %v9395_v20, %v11396_v5  ;;  %v4151_v59 = vsub.f32 %v9414_v35, %v11754_v54  ;;  %v9471_v5 = vsub.f32 %v168_v3, %v9444_v39  ;;  %v4146_v29 = vand.u32 4294901760, %v4145_v24  ;;  %v160_v35 = vld [vmem:[#allocation2 + $0x348] sm:$0xff]  ;;  %v158_v3 = vld [vmem:[#allocation2 + $0x338] sm:$0xff] }
 0x22b   :  { %3779 = vmatpush.msrb.mxu0 %v9389_v41  ;;  %3934 = vmatpush.msrb.mxu2 %v9395_v20  ;;  %v11759_v24 = vld [vmem:[#allocation16_spill] sm:$0xff] }
 0x22c   :  { %3860 = vmatpush.msrb.mxu1 %v3859_v43  ;;  %3975 = vmatpush.msrb.mxu3 %v9389_v41  ;;  %v11755_v43 = vand.u32 4294901760, %v9210_v23  ;;  %v3882_v41 = vsub.f32 %v9421_v31, %v11756_v48  ;;  %v3877_v54 = vand.u32 4294901760, %v3876_v58  ;;  %v11757_v23 = vand.u32 4294901760, %v9222_v49 }
 0x22d   :  { %3785 = vmatmul.f32.vlgmr.msrb.gmra.mxu0 %v11753_v7  ;;  %3937 = vmatpush.msrb.mxu2 %v9421_v31  ;;  %v9492_v7 = vand.u32 4294901760, %v162_v42  ;;  %v11760_v49 = vand.u32 4294901760, %v9232_v50  ;;  %v156_v50 = vld [vmem:[#allocation2 + $0x328] sm:$0xff] }
 0x22e   :  { %4135 = vmatpush.msra.mxu3 %v4134_v13  ;;  %3986 = vmatpush.msra.mxu0 %v11755_v43  ;;  %v9479_v13 = vand.u32 4294901760, %v164_v27  ;;  %v9490_v43 = vsub.f32 %v166_v45, %v9464_v51 }
 0x22f   :  { %3866 = vmatpush.msrb.mxu1 %v3865_v36  ;;  %4090 = vmatpush.msra.mxu2 %v9324_v62  ;;  %v11758_v36 = vand.u32 4294901760, %v9436_v1 }
 0x230   :  { %4141 = vmatpush.msra.mxu3 %v4140_v38  ;;  %3990 = vmatpush.msra.mxu0 %v11757_v23  ;;  %v4152_v38 = vand.u32 4294901760, %v4151_v59  ;;  %v3883_v23 = vand.u32 4294901760, %v3882_v41  ;;  %v11762_v59 = vand.u32 4294901760, %v9460_v56  ;;  %v11764_v41 = vand.u32 4294901760, %v9238_v15 }
 0x231   :  { %v4157_v48 = vsub.f32 %v9436_v1, %v11758_v36  ;;  %3872 = vmatpush.msrb.mxu1 %v3871_v25  ;;  %3940 = vmatmul.f32.vlgmr.msrb.gmra.mxu2 %v11759_v24  ;;  %v11761_v36 = vand.u32 4294901760, %v9449_v12  ;;  %v9503_v1 = vsub.f32 %v164_v27, %v9479_v13  ;;  %v9505_v25 = vand.u32 4294901760, %v160_v35 }
 0x232   :  { %3994 = vmatpush.msra.mxu0 %v11760_v49  ;;  %4092 = vmatpush.msra.mxu2 %v9338_v34  ;;  %v4169_v24 = vsub.f32 %v9460_v56, %v11762_v59  ;;  %v11763_v49 = vld [vmem:[#allocation24_spill] sm:$0xff]  ;;  %v9515_v27 = vsub.f32 %v162_v42, %v9492_v7  ;;  %v154_v59 = vld [vmem:[#allocation2 + $0x318] sm:$0xff]  ;;  %v11766_v15 = vand.u32 4294901760, %v9249_v22  ;;  %v11768_v22 = vand.u32 4294901760, %v9490_v43 }
 0x233   :  { %v4163_v45 = vsub.f32 %v9449_v12, %v11761_v36  ;;  %4147 = vmatpush.msra.mxu3 %v4146_v29  ;;  %3878 = vmatpush.msrb.mxu1 %v3877_v54  ;;  %v4158_v58 = vand.u32 4294901760, %v4157_v48  ;;  %v9517_v12 = vand.u32 4294901760, %v158_v3  ;;  %v11765_v29 = vand.u32 4294901760, %v9471_v5  ;;  %v11767_v36 = vld [vmem:[#allocation12_spill] sm:$0xff] }
 0x234   :  { %3979 = vmatmul.f32.vlgmr.msrb.gmra.mxu3 %v11763_v49  ;;  %3998 = vmatpush.msra.mxu0 %v11764_v41  ;;  %v4186_v49 = vand.u32 4294901760, %v9503_v1  ;;  %v9527_v42 = vsub.f32 %v160_v35, %v9505_v25  ;;  %v9529_v41 = vand.u32 4294901760, %v156_v50  ;;  %v152_v56 = vld [vmem:[#allocation2 + $0x308] sm:$0xff] }
 0x235   :  { %4094 = vmatpush.msra.mxu2 %v9370_v14  ;;  %4153 = vmatpush.msra.mxu3 %v4152_v38  ;;  %v4175_v54 = vsub.f32 %v9471_v5, %v11765_v29  ;;  %v4164_v48 = vand.u32 4294901760, %v4163_v45  ;;  %v4170_v38 = vand.u32 4294901760, %v4169_v24  ;;  %v4192_v45 = vand.u32 4294901760, %v9515_v27 }
 0x236   :  { %3884 = vmatpush.msrb.mxu1 %v3883_v23  ;;  %4002 = vmatpush.msra.mxu0 %v11766_v15  ;;  %v4181_v23 = vsub.f32 %v9490_v43, %v11768_v22  ;;  %v9539_v35 = vsub.f32 %v158_v3, %v9517_v12  ;;  %v9541_v29 = vand.u32 4294901760, %v154_v59  ;;  %v11769_v15 = vand.u32 4294901760, %v9268_v53 }
 0x237   :  { %3886 = vmatmul.f32.vlgmr.msrb.gmra.mxu1 %v11767_v36  ;;  %4096 = vmatpush.msra.mxu2 %v9383_v40  ;;  %v4176_v24 = vand.u32 4294901760, %v4175_v54  ;;  %v9552_v3 = vsub.f32 %v156_v50, %v9529_v41  ;;  %v9554_v22 = vand.u32 4294901760, %v152_v56  ;;  %v11770_v53 = vand.u32 4294901760, %v9281_v60 }
 0x238   :  { %4053 = vmatpush.msra.mxu1 %v9195_v18  ;;  %4159 = vmatpush.msra.mxu3 %v4158_v58  ;;  %v4187_v18 = vsub.f32 %v9503_v1, %v4186_v49  ;;  %v4198_v58 = vand.u32 4294901760, %v9527_v42  ;;  %v4193_v54 = vsub.f32 %v9515_v27, %v4192_v45  ;;  %v9565_v50 = vsub.f32 %v154_v59, %v9541_v29 }
 0x239   :  { %4006 = vmatpush.msra.mxu0 %v11769_v15  ;;  %4098 = vmatpush.msra.mxu2 %v9405_v52  ;;  %v11771_v15 = vand.u32 4294901760, %v9293_v19  ;;  %v11772_v59 = vand.u32 4294901760, %v9305_v26 }
 0x23a   :  { %4055 = vmatpush.msra.mxu1 %v9202_v61  ;;  %4165 = vmatpush.msra.mxu3 %v4164_v48  ;;  %v4182_v61 = vand.u32 4294901760, %v4181_v23  ;;  %v4204_v48 = vand.u32 4294901760, %v9539_v35  ;;  %v4199_v60 = vsub.f32 %v9527_v42, %v4198_v58  ;;  %v9576_v23 = vsub.f32 %v152_v56, %v9554_v22 }
 0x23b   :  { %4010 = vmatpush.msra.mxu0 %v11770_v53  ;;  %4100 = vmatpush.msra.mxu2 %v9423_v9  ;;  %v11774_v53 = vand.u32 4294901760, %v9331_v17 }
 0x23c   :  { %4057 = vmatpush.msra.mxu1 %v9212_v30  ;;  %4171 = vmatpush.msra.mxu3 %v4170_v38  ;;  %v4188_v30 = vand.u32 4294901760, %v4187_v18  ;;  %v4210_v38 = vand.u32 4294901760, %v9552_v3  ;;  %v4205_v19 = vsub.f32 %v9539_v35, %v4204_v48  ;;  %v11773_v18 = vand.u32 4294901760, %v9317_v32 }
 0x23d   :  { %4014 = vmatpush.msra.mxu0 %v11771_v15  ;;  %4102 = vmatpush.msra.mxu2 %v9432_v44  ;;  %v4200_v26 = vand.u32 4294901760, %v4199_v60  ;;  %v4222_v56 = vand.u32 4294901760, %v9576_v23  ;;  %v11777_v15 = vand.u32 4294901760, %v9380_v4  ;;  %v11788_v4 = vld [vmem:[#allocation42_spill] sm:$0xff]  ;;  %v11792_v60 = vld [vmem:[#allocation43_spill] sm:$0xff] }
 0x23e   :  { %4059 = vmatpush.msra.mxu1 %v9216_v46  ;;  %4177 = vmatpush.msra.mxu3 %v4176_v24  ;;  %v4194_v46 = vand.u32 4294901760, %v4193_v54  ;;  %v4216_v24 = vand.u32 4294901760, %v9565_v50  ;;  %v4206_v32 = vand.u32 4294901760, %v4205_v19  ;;  %v198_v19 = vld [vmem:[#allocation2 + $0x478] sm:$0xff] }
 0x23f   :  { %4018 = vmatpush.msra.mxu0 %v11772_v59  ;;  %4104 = vmatpush.msra.mxu2 %v9444_v39  ;;  %v4223_v54 = vsub.f32 %v9576_v23, %v4222_v56 }
 0x240   :  { %4061 = vmatpush.msra.mxu1 %v9226_v8  ;;  %4183 = vmatpush.msra.mxu3 %v4182_v61  ;;  %v4211_v8 = vsub.f32 %v9552_v3, %v4210_v38  ;;  %v11775_v61 = vand.u32 4294901760, %v9345_v47 }
 0x241   :  { %4022 = vmatpush.msra.mxu0 %v11773_v18  ;;  %4106 = vmatpush.msra.mxu2 %v9464_v51 }
 0x242   :  { %4063 = vmatpush.msra.mxu1 %v9242_v37  ;;  %4189 = vmatpush.msra.mxu3 %v4188_v30  ;;  %v4217_v37 = vsub.f32 %v9565_v50, %v4216_v24  ;;  %v4212_v17 = vand.u32 4294901760, %v4211_v8  ;;  %v11778_v30 = vand.u32 4294901760, %v9395_v20  ;;  %v11790_v20 = vld [vmem:[#allocation35_spill] sm:$0xff] }
 0x243   :  { %4026 = vmatpush.msra.mxu0 %v11774_v53  ;;  %4108 = vmatpush.msra.mxu2 %v9479_v13  ;;  %v196_v8 = vld [vmem:[#allocation2 + $0x468] sm:$0xff] }
 0x244   :  { %4065 = vmatpush.msra.mxu1 %v9256_v57  ;;  %4195 = vmatpush.msra.mxu3 %v4194_v46  ;;  %v11776_v57 = vand.u32 4294901760, %v9360_v55  ;;  %v4218_v47 = vand.u32 4294901760, %v4217_v37  ;;  %v11785_v55 = vld [vmem:[#allocation18_spill] sm:$0xff]  ;;  %v9775_v37 = vand.u32 4294901760, %v198_v19 }
 0x245   :  { %4030 = vmatpush.msra.mxu0 %v11775_v61  ;;  %4110 = vmatpush.msra.mxu2 %v9492_v7  ;;  %v194_v61 = vld [vmem:[#allocation2 + $0x458] sm:$0xff] }
 0x246   :  { %4067 = vmatpush.msra.mxu1 %v9270_v28  ;;  %4201 = vmatpush.msra.mxu3 %v4200_v26  ;;  %v4224_v28 = vand.u32 4294901760, %v4223_v54 }
 0x247   :  { %4034 = vmatpush.msra.mxu0 %v11776_v57  ;;  %4112 = vmatpush.msra.mxu2 %v9505_v25  ;;  %v9787_v57 = vand.u32 4294901760, %v196_v8 }
 0x248   :  { %4069 = vmatpush.msra.mxu1 %v9283_v10  ;;  %4207 = vmatpush.msra.mxu3 %v4206_v32  ;;  %v11779_v10 = vand.u32 4294901760, %v9421_v31  ;;  %v11783_v31 = vld [vmem:[#allocation21_spill] sm:$0xff] }
 0x249   :  { %4038 = vmatpush.msra.mxu0 %v11777_v15  ;;  %4114 = vmatpush.msra.mxu2 %v9517_v12  ;;  %v11798_v15 = vld [vmem:[#allocation31_spill] sm:$0xff] }
 0x24a   :  { %4071 = vmatpush.msra.mxu1 %v9295_v0  ;;  %4213 = vmatpush.msra.mxu3 %v4212_v17  ;;  %v11780_v0 = vand.u32 4294901760, %v9353_v11 }
 0x24b   :  { %4042 = vmatpush.msra.mxu0 %v11778_v30  ;;  %4116 = vmatpush.msra.mxu2 %v9529_v41  ;;  %v192_v30 = vld [vmem:[#allocation2 + $0x448] sm:$0xff] }
 0x24c   :  { %4073 = vmatpush.msra.mxu1 %v9307_v33  ;;  %4219 = vmatpush.msra.mxu3 %v4218_v47  ;;  %v11781_v33 = vld [vmem:[#allocation32_spill] sm:$0xff] }
 0x24d   :  { %4046 = vmatpush.msra.mxu0 %v11779_v10  ;;  %4118 = vmatpush.msra.mxu2 %v9541_v29  ;;  %v9797_v10 = vsub.f32 %v198_v19, %v9775_v37 }
 0x24e   :  { %4075 = vmatpush.msra.mxu1 %v9319_v2  ;;  %4225 = vmatpush.msra.mxu3 %v4224_v28  ;;  %v11782_v2 = vand.u32 4294901760, %v9368_v21 }
 0x24f   :  { %4048 = vmatmul.f32.vlgmr.msra.gmra.mxu0 %v11767_v36  ;;  %4120 = vmatpush.msra.mxu2 %v9554_v22 }
 0x250   :  { %4394 = vmatpush.msrb.mxu3 %v9324_v62  ;;  %4233 = vmatpush.msrb.mxu0 %v9353_v11  ;;  %v11786_v11 = vand.u32 4294901760, %v9399_v63 }
 0x251   :  { %4077 = vmatpush.msra.mxu1 %v9333_v16  ;;  %4327 = vmatpush.msrb.mxu2 %v11780_v0  ;;  %v11784_v16 = vld [vmem:[#allocation29_spill] sm:$0xff]  ;;  %v9799_v0 = vand.u32 4294901760, %v194_v61 }
 0x252   :  { %4396 = vmatpush.msrb.mxu3 %v9338_v34  ;;  %4236 = vmatpush.msrb.mxu0 %v9368_v21  ;;  %v11789_v21 = vand.u32 4294901760, %v11785_v55 }
 0x253   :  { %4079 = vmatpush.msra.mxu1 %v9350_v6  ;;  %4126 = vmatmul.f32.vlgmr.msra.gmra.mxu2 %v11781_v33  ;;  %v11787_v6 = vld [vmem:[#allocation19_spill] sm:$0xff] }
 0x254   :  { %4239 = vmatpush.msrb.mxu0 %v9399_v63  ;;  %4331 = vmatpush.msrb.mxu2 %v11782_v2  ;;  %v11791_v63 = vand.u32 4294901760, %v11788_v4  ;;  %v246_v2 = vld [vmem:[#allocation2 + $0x5f8] sm:$0xff] }
 0x255   :  { %4398 = vmatpush.msrb.mxu3 %v9370_v14  ;;  %4081 = vmatpush.msra.mxu1 %v11783_v31 }
 0x256   :  { %4227 = vmatmul.f32.vlgmr.msra.gmra.mxu3 %v11784_v16  ;;  %4242 = vmatpush.msrb.mxu0 %v11785_v55 }
 0x257   :  { %4335 = vmatpush.msrb.mxu2 %v11786_v11  ;;  %4400 = vmatpush.msrb.mxu3 %v9383_v40  ;;  %v9809_v11 = vsub.f32 %v196_v8, %v9787_v57 }
 0x258   :  { %4083 = vmatpush.msra.mxu1 %v11787_v6  ;;  %4245 = vmatpush.msrb.mxu0 %v11788_v4  ;;  %v9811_v6 = vand.u32 4294901760, %v192_v30 }
 0x259   :  { %4085 = vmatmul.f32.vlgmr.msra.gmra.mxu1 %v11767_v36  ;;  %4339 = vmatpush.msrb.mxu2 %v11789_v21  ;;  %v11793_v36 = vand.u32 4294901760, %v11790_v20  ;;  %v244_v21 = vld [vmem:[#allocation2 + $0x5e8] sm:$0xff] }
 0x25a   :  { %4286 = vmatpush.msrb.mxu1 %v9324_v62  ;;  %4402 = vmatpush.msrb.mxu3 %v9405_v52  ;;  %v11794_v62 = vand.u32 4294901760, %v11792_v60 }
 0x25b   :  { %4248 = vmatpush.msrb.mxu0 %v11790_v20  ;;  %4343 = vmatpush.msrb.mxu2 %v11791_v63  ;;  %v9816_v63 = vand.u32 4294901760, %v246_v2 }
 0x25c   :  { %4288 = vmatpush.msrb.mxu1 %v9338_v34  ;;  %4404 = vmatpush.msrb.mxu3 %v9423_v9  ;;  %v11795_v34 = vand.u32 4294901760, %v9471_v5 }
 0x25d   :  { %4251 = vmatpush.msrb.mxu0 %v11792_v60  ;;  %4347 = vmatpush.msrb.mxu2 %v11793_v36  ;;  %v9823_v36 = vsub.f32 %v194_v61, %v9799_v0 }
 0x25e   :  { %4290 = vmatpush.msrb.mxu1 %v9370_v14  ;;  %4406 = vmatpush.msrb.mxu3 %v9432_v44  ;;  %v11796_v14 = vand.u32 4294901760, %v9490_v43 }
 0x25f   :  { %4254 = vmatpush.msrb.mxu0 %v9471_v5  ;;  %4351 = vmatpush.msrb.mxu2 %v11794_v62  ;;  %v208_v5 = vld [vmem:[#allocation2 + $0x4c8] sm:$0xff]  ;;  %v11406_v8 = vand.u32 4294901760, %v9823_v36 }
 0x260   :  { %4292 = vmatpush.msrb.mxu1 %v9383_v40  ;;  %4408 = vmatpush.msrb.mxu3 %v9444_v39  ;;  %v214_v40 = vld [vmem:[#allocation2 + $0x4f8] sm:$0xff] }
 0x261   :  { %4257 = vmatpush.msrb.mxu0 %v9490_v43  ;;  %4355 = vmatpush.msrb.mxu2 %v11795_v34  ;;  %v11408_v34 = vand.u32 4294901760, %v9797_v10 }
 0x262   :  { %4294 = vmatpush.msrb.mxu1 %v9405_v52  ;;  %4410 = vmatpush.msrb.mxu3 %v9464_v51  ;;  %v212_v52 = vld [vmem:[#allocation2 + $0x4e8] sm:$0xff] }
 0x263   :  { %4260 = vmatpush.msrb.mxu0 %v9503_v1  ;;  %4359 = vmatpush.msrb.mxu2 %v11796_v14  ;;  %v9694_v1 = vand.u32 4294901760, %v212_v52  ;;  %v188_v14 = vld [vmem:[#allocation2 + $0x428] sm:$0xff]  ;;  %v4522_v19 = vsub.f32 %v9797_v10, %v11408_v34  ;;  %v234_v34 = vld [vmem:[#allocation2 + $0x598] sm:$0xff] }
 0x264   :  { %4296 = vmatpush.msrb.mxu1 %v9423_v9  ;;  %4412 = vmatpush.msrb.mxu3 %v9479_v13  ;;  %v9687_v9 = vand.u32 4294901760, %v214_v40 }
 0x265   :  { %4263 = vmatpush.msrb.mxu0 %v9515_v27  ;;  %4363 = vmatpush.msrb.mxu2 %v4186_v49  ;;  %v9709_v27 = vand.u32 4294901760, %v208_v5 }
 0x266   :  { %4298 = vmatpush.msrb.mxu1 %v9432_v44  ;;  %4414 = vmatpush.msrb.mxu3 %v9492_v7  ;;  %v210_v44 = vld [vmem:[#allocation2 + $0x4d8] sm:$0xff] }
 0x267   :  { %4266 = vmatpush.msrb.mxu0 %v9527_v42  ;;  %4367 = vmatpush.msrb.mxu2 %v4192_v45  ;;  %v9704_v43 = vand.u32 4294901760, %v210_v44  ;;  %v204_v42 = vld [vmem:[#allocation2 + $0x4a8] sm:$0xff] }
 0x268   :  { %4300 = vmatpush.msrb.mxu1 %v9444_v39  ;;  %4416 = vmatpush.msrb.mxu3 %v9505_v25  ;;  %v9702_v39 = vsub.f32 %v214_v40, %v9687_v9  ;;  %v9830_v40 = vand.u32 4294901760, %v244_v21 }
 0x269   :  { %4269 = vmatpush.msrb.mxu0 %v9539_v35  ;;  %4371 = vmatpush.msrb.mxu2 %v4198_v58  ;;  %v9724_v45 = vsub.f32 %v210_v44, %v9704_v43  ;;  %v11797_v35 = vld [vmem:[#allocation30_spill] sm:$0xff]  ;;  %v9730_v58 = vsub.f32 %v208_v5, %v9709_v27  ;;  %v9837_v5 = vsub.f32 %v192_v30, %v9811_v6 }
 0x26a   :  { %4302 = vmatpush.msrb.mxu1 %v9464_v51  ;;  %4418 = vmatpush.msrb.mxu3 %v9517_v12  ;;  %v206_v51 = vld [vmem:[#allocation2 + $0x4b8] sm:$0xff]  ;;  %v9860_v61 = vsub.f32 %v244_v21, %v9830_v40  ;;  %v4534_v21 = vsub.f32 %v9823_v36, %v11406_v8 }
 0x26b   :  { %4272 = vmatpush.msrb.mxu0 %v9552_v3  ;;  %4375 = vmatpush.msrb.mxu2 %v4204_v48  ;;  %v9719_v49 = vand.u32 4294901760, %v206_v51  ;;  %v202_v3 = vld [vmem:[#allocation2 + $0x498] sm:$0xff]  ;;  %v11418_v46 = vand.u32 4294901760, %v9724_v45  ;;  %v11409_v30 = vand.u32 4294901760, %v9837_v5 }
 0x26c   :  { %4304 = vmatpush.msrb.mxu1 %v9479_v13  ;;  %4420 = vmatpush.msrb.mxu3 %v9529_v41  ;;  %v9714_v13 = vsub.f32 %v212_v52, %v9694_v1  ;;  %v9748_v59 = vand.u32 4294901760, %v202_v3 }
 0x26d   :  { %4275 = vmatpush.msrb.mxu0 %v9565_v50  ;;  %4379 = vmatpush.msrb.mxu2 %v4210_v38  ;;  %v9741_v50 = vsub.f32 %v206_v51, %v9719_v49  ;;  %v200_v38 = vld [vmem:[#allocation2 + $0x488] sm:$0xff]  ;;  %v4486_v53 = vsub.f32 %v9724_v45, %v11418_v46  ;;  %v11407_v51 = vand.u32 4294901760, %v9809_v11  ;;  %v4540_v8 = vsub.f32 %v9837_v5, %v11409_v30 }
 0x26e   :  { %4306 = vmatpush.msrb.mxu1 %v9492_v7  ;;  %4422 = vmatpush.msrb.mxu3 %v9541_v29  ;;  %v11421_v7 = vand.u32 4294901760, %v9702_v39  ;;  %v11419_v48 = vand.u32 4294901760, %v9714_v13  ;;  %v9762_v26 = vand.u32 4294901760, %v200_v38  ;;  %v9773_v32 = vsub.f32 %v202_v3, %v9748_v59 }
 0x26f   :  { %4278 = vmatpush.msrb.mxu0 %v9576_v23  ;;  %4383 = vmatpush.msrb.mxu2 %v4216_v24  ;;  %v11417_v23 = vand.u32 4294901760, %v9730_v58  ;;  %v9842_v3 = vand.u32 4294901760, %v188_v14 }
 0x270   :  { %4308 = vmatpush.msrb.mxu1 %v9505_v25  ;;  %4424 = vmatpush.msrb.mxu3 %v9554_v22  ;;  %v9734_v25 = vand.u32 4294901760, %v204_v42  ;;  %v4480_v24 = vsub.f32 %v9714_v13, %v11419_v48  ;;  %v9785_v54 = vsub.f32 %v200_v38, %v9762_v26  ;;  %v11411_v33 = vand.u32 4294901760, %v9773_v32 }
 0x271   :  { %4281 = vmatmul.f32.vlgmr.msrb.gmra.mxu0 %v11797_v35  ;;  %4387 = vmatpush.msrb.mxu2 %v4222_v56  ;;  %v242_v35 = vld [vmem:[#allocation2 + $0x5d8] sm:$0xff]  ;;  %v9845_v38 = vsub.f32 %v246_v2, %v9816_v63 }
 0x272   :  { %4627 = vmatpush.msra.mxu3 %v9687_v9  ;;  %4431 = vmatpush.msra.mxu0 %v9687_v9  ;;  %v9760_v18 = vsub.f32 %v204_v42, %v9734_v25  ;;  %v4481_v17 = vand.u32 4294901760, %v4480_v24  ;;  %v11410_v4 = vand.u32 4294901760, %v9785_v54  ;;  %v4510_v60 = vsub.f32 %v9773_v32, %v11411_v33  ;;  %v186_v42 = vld [vmem:[#allocation2 + $0x418] sm:$0xff] }
 0x273   :  { %4310 = vmatpush.msrb.mxu1 %v9517_v12  ;;  %4574 = vmatpush.msra.mxu2 %v9702_v39  ;;  %v4474_v12 = vsub.f32 %v9702_v39, %v11421_v7  ;;  %v11413_v2 = vand.u32 4294901760, %v9845_v38 }
 0x274   :  { %4629 = vmatpush.msra.mxu3 %v9694_v1  ;;  %4433 = vmatpush.msra.mxu0 %v9694_v1  ;;  %v11412_v47 = vand.u32 4294901760, %v9760_v18  ;;  %v4516_v44 = vsub.f32 %v9785_v54, %v11410_v4 }
 0x275   :  { %4312 = vmatpush.msrb.mxu1 %v9529_v41  ;;  %4389 = vmatmul.f32.vlgmr.msrb.gmra.mxu2 %v11784_v16  ;;  %v11415_v41 = vand.u32 4294901760, %v9741_v50  ;;  %v4475_v56 = vand.u32 4294901760, %v4474_v12  ;;  %v4511_v12 = vand.u32 4294901760, %v4510_v60 }
 0x276   :  { %4435 = vmatpush.msra.mxu0 %v9704_v43  ;;  %4577 = vmatpush.msra.mxu2 %v9714_v13  ;;  %v4504_v55 = vsub.f32 %v9760_v18, %v11412_v47  ;;  %v232_v47 = vld [vmem:[#allocation2 + $0x588] sm:$0xff] }
 0x277   :  { %4631 = vmatpush.msra.mxu3 %v9704_v43  ;;  %4314 = vmatpush.msrb.mxu1 %v9541_v29  ;;  %v4492_v29 = vsub.f32 %v9730_v58, %v11417_v23  ;;  %v4498_v28 = vsub.f32 %v9741_v50, %v11415_v41  ;;  %v9936_v46 = vand.u32 4294901760, %v232_v47 }
 0x278   :  { %4426 = vmatmul.f32.vlgmr.msrb.gmra.mxu3 %v11784_v16  ;;  %4437 = vmatpush.msra.mxu0 %v9709_v27  ;;  %v190_v16 = vld [vmem:[#allocation2 + $0x438] sm:$0xff]  ;;  %v4505_v52 = vand.u32 4294901760, %v4504_v55  ;;  %v4523_v55 = vand.u32 4294901760, %v4522_v19 }
 0x279   :  { %4580 = vmatpush.msra.mxu2 %v9724_v45  ;;  %4633 = vmatpush.msra.mxu3 %v9709_v27  ;;  %v4493_v31 = vand.u32 4294901760, %v4492_v29  ;;  %v4499_v20 = vand.u32 4294901760, %v4498_v28  ;;  %v9825_v62 = vand.u32 4294901760, %v190_v16  ;;  %v184_v29 = vld [vmem:[#allocation2 + $0x408] sm:$0xff]  ;;  %v4528_v28 = vsub.f32 %v9809_v11, %v11407_v51 }
 0x27a   :  { %4316 = vmatpush.msrb.mxu1 %v9554_v22  ;;  %4439 = vmatpush.msra.mxu0 %v9719_v49  ;;  %v4487_v22 = vand.u32 4294901760, %v4486_v53  ;;  %v9857_v53 = vand.u32 4294901760, %v186_v42 }
 0x27b   :  { %4320 = vmatmul.f32.vlgmr.msrb.gmra.mxu1 %v11798_v15  ;;  %4583 = vmatpush.msra.mxu2 %v9730_v58  ;;  %v9852_v24 = vsub.f32 %v190_v16, %v9825_v62  ;;  %v4517_v15 = vand.u32 4294901760, %v4516_v44  ;;  %v238_v16 = vld [vmem:[#allocation2 + $0x5b8] sm:$0xff]  ;;  %v4529_v19 = vand.u32 4294901760, %v4528_v28  ;;  %v4535_v28 = vand.u32 4294901760, %v4534_v21 }
 0x27c   :  { %4476 = vmatpush.msra.mxu1 %v4475_v56  ;;  %4635 = vmatpush.msra.mxu3 %v9719_v49  ;;  %v240_v56 = vld [vmem:[#allocation2 + $0x5c8] sm:$0xff]  ;;  %11799 = vst [vmem:[#allocation34_spill] sm:$0xff] %v9857_v53  ;;  %v9897_v51 = vand.u32 4294901760, %v238_v16 }
 0x27d   :  { %4441 = vmatpush.msra.mxu0 %v9734_v25  ;;  %4586 = vmatpush.msra.mxu2 %v9741_v50  ;;  %v11414_v60 = vand.u32 4294901760, %v9852_v24 }
 0x27e   :  { %4482 = vmatpush.msra.mxu1 %v4481_v17  ;;  %4637 = vmatpush.msra.mxu3 %v9734_v25  ;;  %v9862_v17 = vand.u32 4294901760, %v242_v35 }
 0x27f   :  { %4443 = vmatpush.msra.mxu0 %v9748_v59  ;;  %4589 = vmatpush.msra.mxu2 %v9760_v18  ;;  %v4546_v30 = vsub.f32 %v9852_v24, %v11414_v60  ;;  %v9928_v60 = vsub.f32 %v238_v16, %v9897_v51  ;;  %v228_v16 = vld [vmem:[#allocation2 + $0x568] sm:$0xff] }
 0x280   :  { %4488 = vmatpush.msra.mxu1 %v4487_v22  ;;  %4639 = vmatpush.msra.mxu3 %v9748_v59  ;;  %v9872_v22 = vsub.f32 %v188_v14, %v9842_v3  ;;  %v9887_v14 = vsub.f32 %v186_v42, %v9857_v53  ;;  %v9891_v44 = vsub.f32 %v242_v35, %v9862_v17 }
 0x281   :  { %4445 = vmatpush.msra.mxu0 %v9762_v26  ;;  %4592 = vmatpush.msra.mxu2 %v9773_v32  ;;  %v4815_v42 = vsub.f32 %v9845_v38, %v11413_v2  ;;  %v9924_v2 = vand.u32 4294901760, %v234_v34  ;;  %11802 = vst [vmem:[#allocation17_spill] sm:$0xff] %v9928_v60 }
 0x282   :  { %4494 = vmatpush.msra.mxu1 %v4493_v31  ;;  %4641 = vmatpush.msra.mxu3 %v9762_v26  ;;  %v9875_v31 = vand.u32 4294901760, %v240_v56  ;;  %v11420_v35 = vand.u32 4294901760, %v9872_v22  ;;  %v11424_v21 = vand.u32 4294901760, %v9887_v14 }
 0x283   :  { %4447 = vmatpush.msra.mxu0 %v9775_v37  ;;  %4595 = vmatpush.msra.mxu2 %v9785_v54  ;;  %v4816_v41 = vand.u32 4294901760, %v4815_v42 }
 0x284   :  { %4500 = vmatpush.msra.mxu1 %v4499_v20  ;;  %4643 = vmatpush.msra.mxu3 %v9775_v37  ;;  %v9881_v20 = vand.u32 4294901760, %v184_v29 }
 0x285   :  { %4449 = vmatpush.msra.mxu0 %v9787_v57  ;;  %4598 = vmatpush.msra.mxu2 %v9797_v10 }
 0x286   :  { %4506 = vmatpush.msra.mxu1 %v4505_v52  ;;  %4645 = vmatpush.msra.mxu3 %v9787_v57  ;;  %11800 = vst [vmem:[#allocation41_spill] sm:$0xff] %v9881_v20  ;;  %v11416_v52 = vand.u32 4294901760, %v9860_v61  ;;  %v9913_v4 = vsub.f32 %v184_v29, %v9881_v20  ;;  %v4541_v29 = vand.u32 4294901760, %v4540_v8  ;;  %v4547_v8 = vand.u32 4294901760, %v4546_v30 }
 0x287   :  { %4451 = vmatpush.msra.mxu0 %v9799_v0  ;;  %4601 = vmatpush.msra.mxu2 %v9809_v11  ;;  %v9952_v30 = vsub.f32 %v234_v34, %v9924_v2  ;;  %v226_v34 = vld [vmem:[#allocation2 + $0x558] sm:$0xff] }
 0x288   :  { %4512 = vmatpush.msra.mxu1 %v4511_v12  ;;  %4647 = vmatpush.msra.mxu3 %v9799_v0  ;;  %v236_v12 = vld [vmem:[#allocation2 + $0x5a8] sm:$0xff] }
 0x289   :  { %4453 = vmatpush.msra.mxu0 %v9811_v6  ;;  %4604 = vmatpush.msra.mxu2 %v9823_v36  ;;  %v9915_v33 = vand.u32 4294901760, %v236_v12  ;;  %11804 = vst [vmem:[#allocation20_spill] sm:$0xff] %v9952_v30 }
 0x28a   :  { %4518 = vmatpush.msra.mxu1 %v4517_v15  ;;  %4649 = vmatpush.msra.mxu3 %v9811_v6  ;;  %v9906_v15 = vsub.f32 %v240_v56, %v9875_v31  ;;  %v4821_v56 = vsub.f32 %v9860_v61, %v11416_v52  ;;  %v4552_v52 = vsub.f32 %v9872_v22, %v11420_v35 }
 0x28b   :  { %4455 = vmatpush.msra.mxu0 %v9825_v62  ;;  %4607 = vmatpush.msra.mxu2 %v9837_v5  ;;  %v9941_v48 = vsub.f32 %v236_v12, %v9915_v33  ;;  %v11808_v12 = vand.u32 4294901760, %v9913_v4 }
 0x28c   :  { %11801 = vst [vmem:[#allocation14_spill] sm:$0xff] %v9906_v15  ;;  %4524 = vmatpush.msra.mxu1 %v4523_v55  ;;  %4651 = vmatpush.msra.mxu3 %v9825_v62  ;;  %v11422_v55 = vand.u32 4294901760, %v9891_v44  ;;  %v4822_v42 = vand.u32 4294901760, %v4821_v56  ;;  %v11805_v56 = vld [vmem:[#allocation36_spill] sm:$0xff]  ;;  %v4553_v23 = vand.u32 4294901760, %v4552_v52 }
 0x28d   :  { %4457 = vmatpush.msra.mxu0 %v9842_v3  ;;  %4610 = vmatpush.msra.mxu2 %v9852_v24  ;;  %11803 = vst [vmem:[#allocation15_spill] sm:$0xff] %v9941_v48 }
 0x28e   :  { %4530 = vmatpush.msra.mxu1 %v4529_v19  ;;  %4653 = vmatpush.msra.mxu3 %v9842_v3  ;;  %v230_v19 = vld [vmem:[#allocation2 + $0x578] sm:$0xff]  ;;  %v4827_v35 = vsub.f32 %v9891_v44, %v11422_v55  ;;  %v11806_v55 = vand.u32 4294901760, %v9906_v15 }
 0x28f   :  { %4459 = vmatpush.msra.mxu0 %v9857_v53  ;;  %4613 = vmatpush.msra.mxu2 %v9872_v22  ;;  %v9956_v7 = vand.u32 4294901760, %v230_v19 }
 0x290   :  { %4536 = vmatpush.msra.mxu1 %v4535_v28  ;;  %4655 = vmatpush.msra.mxu3 %v9857_v53  ;;  %v4558_v28 = vsub.f32 %v9887_v14, %v11424_v21  ;;  %v4833_v53 = vsub.f32 %v9906_v15, %v11806_v55  ;;  %v9963_v21 = vsub.f32 %v232_v47, %v9936_v46  ;;  %v4828_v52 = vand.u32 4294901760, %v4827_v35  ;;  %v224_v15 = vld [vmem:[#allocation2 + $0x548] sm:$0xff]  ;;  %v11811_v35 = vld [vmem:[#allocation13_spill] sm:$0xff] }
 0x291   :  { %4461 = vmatpush.msra.mxu0 %v9881_v20  ;;  %4616 = vmatpush.msra.mxu2 %v9887_v14  ;;  %v222_v47 = vld [vmem:[#allocation2 + $0x538] sm:$0xff] }
 0x292   :  { %4542 = vmatpush.msra.mxu1 %v4541_v29  ;;  %4657 = vmatpush.msra.mxu3 %v9881_v20  ;;  %v11807_v29 = vand.u32 4294901760, %v9702_v39  ;;  %v4564_v20 = vsub.f32 %v9913_v4, %v11808_v12  ;;  %v4559_v55 = vand.u32 4294901760, %v4558_v28  ;;  %v11809_v39 = vand.u32 4294901760, %v9714_v13 }
 0x293   :  { %4467 = vmatmul.f32.vlgmr.msra.gmra.mxu0 %v11805_v56  ;;  %4619 = vmatpush.msra.mxu2 %v9913_v4  ;;  %v9984_v56 = vand.u32 4294901760, %v226_v34  ;;  %v11812_v13 = vand.u32 4294901760, %v9724_v45  ;;  %v220_v45 = vld [vmem:[#allocation2 + $0x528] sm:$0xff] }
 0x294   :  { %4817 = vmatpush.msrb.mxu3 %v4816_v41  ;;  %4668 = vmatpush.msrb.mxu0 %v11807_v29  ;;  %v9971_v41 = vand.u32 4294901760, %v228_v16  ;;  %v9982_v29 = vsub.f32 %v230_v19, %v9956_v7 }
 0x295   :  { %4548 = vmatpush.msra.mxu1 %v4547_v8  ;;  %4772 = vmatpush.msrb.mxu2 %v9816_v63  ;;  %v11810_v8 = vand.u32 4294901760, %v9928_v60 }
 0x296   :  { %4823 = vmatpush.msrb.mxu3 %v4822_v42  ;;  %4672 = vmatpush.msrb.mxu0 %v11809_v39  ;;  %v4834_v42 = vand.u32 4294901760, %v4833_v53  ;;  %v4565_v39 = vand.u32 4294901760, %v4564_v20  ;;  %v11814_v53 = vand.u32 4294901760, %v9952_v30  ;;  %v11816_v20 = vand.u32 4294901760, %v9730_v58 }
 0x297   :  { %v4839_v12 = vsub.f32 %v9928_v60, %v11810_v8  ;;  %4554 = vmatpush.msra.mxu1 %v4553_v23  ;;  %4622 = vmatmul.f32.vlgmr.msra.gmra.mxu2 %v11811_v35  ;;  %v11813_v8 = vand.u32 4294901760, %v9941_v48  ;;  %v9995_v60 = vsub.f32 %v228_v16, %v9971_v41  ;;  %v9997_v23 = vand.u32 4294901760, %v224_v15 }
 0x298   :  { %4676 = vmatpush.msrb.mxu0 %v11812_v13  ;;  %4774 = vmatpush.msrb.mxu2 %v9830_v40  ;;  %v4851_v35 = vsub.f32 %v9952_v30, %v11814_v53  ;;  %v11815_v13 = vld [vmem:[#allocation25_spill] sm:$0xff]  ;;  %v10007_v16 = vsub.f32 %v226_v34, %v9984_v56  ;;  %v11818_v58 = vand.u32 4294901760, %v9741_v50  ;;  %v216_v30 = vld [vmem:[#allocation2 + $0x508] sm:$0xff]  ;;  %v11820_v50 = vand.u32 4294901760, %v9982_v29 }
 0x299   :  { %v4845_v19 = vsub.f32 %v9941_v48, %v11813_v8  ;;  %4829 = vmatpush.msrb.mxu3 %v4828_v52  ;;  %4560 = vmatpush.msra.mxu1 %v4559_v55  ;;  %v4840_v28 = vand.u32 4294901760, %v4839_v12  ;;  %v10009_v48 = vand.u32 4294901760, %v222_v47  ;;  %v11817_v52 = vand.u32 4294901760, %v9963_v21  ;;  %v218_v53 = vld [vmem:[#allocation2 + $0x518] sm:$0xff]  ;;  %v11819_v8 = vld [vmem:[#allocation23_spill] sm:$0xff] }
 0x29a   :  { %4661 = vmatmul.f32.vlgmr.msra.gmra.mxu3 %v11815_v13  ;;  %4680 = vmatpush.msrb.mxu0 %v11816_v20  ;;  %v4868_v13 = vand.u32 4294901760, %v9995_v60  ;;  %v10019_v34 = vsub.f32 %v224_v15, %v9997_v23  ;;  %v10021_v20 = vand.u32 4294901760, %v220_v45 }
 0x29b   :  { %4776 = vmatpush.msrb.mxu2 %v9862_v17  ;;  %4835 = vmatpush.msrb.mxu3 %v4834_v42  ;;  %v4857_v55 = vsub.f32 %v9963_v21, %v11817_v52  ;;  %v4846_v12 = vand.u32 4294901760, %v4845_v19  ;;  %v4852_v42 = vand.u32 4294901760, %v4851_v35  ;;  %v4874_v19 = vand.u32 4294901760, %v10007_v16 }
 0x29c   :  { %4566 = vmatpush.msra.mxu1 %v4565_v39  ;;  %4684 = vmatpush.msrb.mxu0 %v11818_v58  ;;  %v4863_v39 = vsub.f32 %v9982_v29, %v11820_v50  ;;  %v10031_v15 = vsub.f32 %v222_v47, %v10009_v48  ;;  %v10033_v52 = vand.u32 4294901760, %v218_v53  ;;  %v11821_v58 = vand.u32 4294901760, %v9760_v18 }
 0x29d   :  { %4568 = vmatmul.f32.vlgmr.msra.gmra.mxu1 %v11819_v8  ;;  %4778 = vmatpush.msrb.mxu2 %v9875_v31  ;;  %v4858_v35 = vand.u32 4294901760, %v4857_v55  ;;  %v10044_v47 = vsub.f32 %v220_v45, %v10021_v20  ;;  %v10046_v50 = vand.u32 4294901760, %v216_v30  ;;  %v11822_v18 = vand.u32 4294901760, %v9773_v32 }
 0x29e   :  { %4735 = vmatpush.msrb.mxu1 %v9687_v9  ;;  %4841 = vmatpush.msrb.mxu3 %v4840_v28  ;;  %v4869_v9 = vsub.f32 %v9995_v60, %v4868_v13  ;;  %v4880_v28 = vand.u32 4294901760, %v10019_v34  ;;  %v4875_v55 = vsub.f32 %v10007_v16, %v4874_v19  ;;  %v10057_v45 = vsub.f32 %v218_v53, %v10033_v52 }
 0x29f   :  { %4688 = vmatpush.msrb.mxu0 %v11821_v58  ;;  %4780 = vmatpush.msrb.mxu2 %v9897_v51  ;;  %v11823_v58 = vand.u32 4294901760, %v9785_v54  ;;  %v11824_v53 = vand.u32 4294901760, %v9797_v10  ;;  %v311_v10 = vld [vmem:[%s11212_s2] sm:$0x3] }
 0x2a0   :  { %4737 = vmatpush.msrb.mxu1 %v9694_v1  ;;  %4847 = vmatpush.msrb.mxu3 %v4846_v12  ;;  %v4864_v1 = vand.u32 4294901760, %v4863_v39  ;;  %v4886_v12 = vand.u32 4294901760, %v10031_v15  ;;  %v4881_v32 = vsub.f32 %v10019_v34, %v4880_v28  ;;  %v10068_v39 = vsub.f32 %v216_v30, %v10046_v50 }
 0x2a1   :  { %4692 = vmatpush.msrb.mxu0 %v11822_v18  ;;  %4782 = vmatpush.msrb.mxu2 %v9915_v33 }
 0x2a2   :  { %4739 = vmatpush.msrb.mxu1 %v9704_v43  ;;  %4853 = vmatpush.msrb.mxu3 %v4852_v42  ;;  %v4870_v43 = vand.u32 4294901760, %v4869_v9  ;;  %v4892_v42 = vand.u32 4294901760, %v10044_v47  ;;  %v4887_v54 = vsub.f32 %v10031_v15, %v4886_v12  ;;  %v11825_v9 = vand.u32 4294901760, %v9809_v11 }
 0x2a3   :  { %4696 = vmatpush.msrb.mxu0 %v11823_v58  ;;  %4784 = vmatpush.msrb.mxu2 %v9924_v2  ;;  %v4904_v18 = vand.u32 4294901760, %v10068_v39  ;;  %v11827_v58 = vand.u32 4294901760, %v9837_v5 }
 0x2a4   :  { %4741 = vmatpush.msrb.mxu1 %v9709_v27  ;;  %4859 = vmatpush.msrb.mxu3 %v4858_v35  ;;  %v4876_v27 = vand.u32 4294901760, %v4875_v55  ;;  %v4898_v35 = vand.u32 4294901760, %v10057_v45  ;;  %v4893_v30 = vsub.f32 %v10044_v47, %v4892_v42  ;;  %v4888_v11 = vand.u32 4294901760, %v4887_v54 }
 0x2a5   :  { %4700 = vmatpush.msrb.mxu0 %v11824_v53  ;;  %4786 = vmatpush.msrb.mxu2 %v9936_v46  ;;  %v313_v55 = vperm.slane %v311_v10, 0  ;;  %v11835_v10 = vld [vmem:[#allocation34_spill] sm:$0xff] }
 0x2a6   :  { %4743 = vmatpush.msrb.mxu1 %v9719_v49  ;;  %4865 = vmatpush.msrb.mxu3 %v4864_v1  ;;  %v4882_v49 = vand.u32 4294901760, %v4881_v32  ;;  %v11826_v1 = vand.u32 4294901760, %v9823_v36  ;;  %v4894_v36 = vand.u32 4294901760, %v4893_v30  ;;  %v11828_v32 = vand.u32 4294901760, %v9852_v24  ;;  %v11836_v30 = vld [vmem:[#allocation37_spill] sm:$0xff] }
 0x2a7   :  { %4704 = vmatpush.msrb.mxu0 %v11825_v9  ;;  %4788 = vmatpush.msrb.mxu2 %v9956_v7  ;;  %v11830_v24 = vand.u32 4294901760, %v9887_v14  ;;  %v11831_v9 = vand.u32 4294901760, %v9913_v4  ;;  %v11832_v4 = vand.u32 4294901760, %v9845_v38  ;;  %v11834_v14 = vand.u32 4294901760, %v9860_v61 }
 0x2a8   :  { %4745 = vmatpush.msrb.mxu1 %v9734_v25  ;;  %4871 = vmatpush.msrb.mxu3 %v4870_v43  ;;  %v4899_v25 = vsub.f32 %v10057_v45, %v4898_v35  ;;  %v376_v43 = vpop.f32.mrf.mxu0 }
 0x2a9   :  { %4708 = vmatpush.msrb.mxu0 %v11826_v1  ;;  %4790 = vmatpush.msrb.mxu2 %v9971_v41  ;;  %v377_v53 = vadd.f32 %v376_v43, %v313_v55  ;;  %v11837_v1 = vld [vmem:[#allocation14_spill] sm:$0xff] }
 0x2aa   :  { %4747 = vmatpush.msrb.mxu1 %v9748_v59  ;;  %4877 = vmatpush.msrb.mxu3 %v4876_v27  ;;  %v4905_v59 = vsub.f32 %v10068_v39, %v4904_v18  ;;  %v4900_v5 = vand.u32 4294901760, %v4899_v25  ;;  %v11829_v27 = vand.u32 4294901760, %v9872_v22  ;;  %v531_v22 = vpop.f32.mrf.mxu2  ;;  %v11841_v25 = vand.u32 4294901760, %v11837_v1 }
 0x2ab   :  { %4712 = vmatpush.msrb.mxu0 %v11827_v58  ;;  %4792 = vmatpush.msrb.mxu2 %v9984_v56  ;;  %v11842_v58 = vld [vmem:[#allocation15_spill] sm:$0xff] }
 0x2ac   :  { %4749 = vmatpush.msrb.mxu1 %v9762_v26  ;;  %4883 = vmatpush.msrb.mxu3 %v4882_v49  ;;  %v477_v26 = vpop.f32.mrf.mxu1  ;;  %v4906_v54 = vand.u32 4294901760, %v4905_v59 }
 0x2ad   :  { %4716 = vmatpush.msrb.mxu0 %v11828_v32  ;;  %4794 = vmatpush.msrb.mxu2 %v9997_v23  ;;  %v11847_v32 = vand.u32 4294901760, %v9963_v21 }
 0x2ae   :  { %4751 = vmatpush.msrb.mxu1 %v9775_v37  ;;  %4889 = vmatpush.msrb.mxu3 %v4888_v11  ;;  %v478_v37 = vadd.f32 %v477_v26, %v377_v53  ;;  %v11840_v11 = vld [vmem:[#allocation17_spill] sm:$0xff] }
 0x2af   :  { %4720 = vmatpush.msrb.mxu0 %v11829_v27  ;;  %4796 = vmatpush.msrb.mxu2 %v10009_v48 }
 0x2b0   :  { %4753 = vmatpush.msrb.mxu1 %v9787_v57  ;;  %4895 = vmatpush.msrb.mxu3 %v4894_v36  ;;  %v532_v57 = vadd.f32 %v531_v22, %v478_v37  ;;  %v639_v49 = vpop.f32.mrf.mxu0  ;;  %v11844_v36 = vld [vmem:[#allocation20_spill] sm:$0xff]  ;;  %v11849_v37 = vld [vmem:[#allocation38_spill] sm:$0xff] }
 0x2b1   :  { %4724 = vmatpush.msrb.mxu0 %v11830_v24  ;;  %4798 = vmatpush.msrb.mxu2 %v10021_v20 }
 0x2b2   :  { %4755 = vmatpush.msrb.mxu1 %v9799_v0  ;;  %4901 = vmatpush.msrb.mxu3 %v4900_v5  ;;  %v570_v0 = vpop.f32.mrf.mxu3  ;;  %v717_v59 = vpop.f32.mrf.mxu2 }
 0x2b3   :  { %4728 = vmatpush.msrb.mxu0 %v11831_v9  ;;  %4800 = vmatpush.msrb.mxu2 %v10033_v52 }
 0x2b4   :  { %4757 = vmatpush.msrb.mxu1 %v9811_v6  ;;  %4907 = vmatpush.msrb.mxu3 %v4906_v54  ;;  %v11833_v6 = vld [vmem:[#allocation40_spill] sm:$0xff]  ;;  %v676_v55 = vpop.f32.mrf.mxu1 }
 0x2b5   :  { %4730 = vmatmul.f32.vlgmr.msrb.gmra.mxu0 %v11819_v8  ;;  %4802 = vmatpush.msrb.mxu2 %v10046_v50  ;;  %v268_v54 = vld [vmem:[#allocation2 + $0x6a8] sm:$0xff] }
 0x2b6   :  { %5076 = vmatpush.msra.mxu3 %v9816_v63  ;;  %4915 = vmatpush.msra.mxu0 %v9845_v38  ;;  %v11838_v38 = vand.u32 4294901760, %v9891_v44 }
 0x2b7   :  { %4759 = vmatpush.msrb.mxu1 %v9825_v62  ;;  %5009 = vmatpush.msra.mxu2 %v11832_v4  ;;  %v571_v62 = vadd.f32 %v570_v0, %v532_v57  ;;  %v264_v4 = vld [vmem:[#allocation2 + $0x688] sm:$0xff] }
 0x2b8   :  { %5078 = vmatpush.msra.mxu3 %v9830_v40  ;;  %4918 = vmatpush.msra.mxu0 %v9860_v61  ;;  %v872_v53 = vpop.f32.mrf.mxu0 }
 0x2b9   :  { %4761 = vmatpush.msrb.mxu1 %v9842_v3  ;;  %4808 = vmatmul.f32.vlgmr.msrb.gmra.mxu2 %v11833_v6  ;;  %v11839_v3 = vld [vmem:[#allocation41_spill] sm:$0xff]  ;;  %v640_v61 = vadd.f32 %v639_v49, %v571_v62 }
 0x2ba   :  { %4921 = vmatpush.msra.mxu0 %v9891_v44  ;;  %5013 = vmatpush.msra.mxu2 %v11834_v14  ;;  %v11843_v44 = vand.u32 4294901760, %v11840_v11  ;;  %v818_v5 = vpop.f32.mrf.mxu3  ;;  %v262_v62 = vld [vmem:[#allocation2 + $0x678] sm:$0xff] }
 0x2bb   :  { %5080 = vmatpush.msra.mxu3 %v9862_v17  ;;  %4763 = vmatpush.msrb.mxu1 %v11835_v10  ;;  %v677_v43 = vadd.f32 %v676_v55, %v640_v61  ;;  %v10270_v55 = vand.u32 4294901760, %v262_v62 }
 0x2bc   :  { %4909 = vmatmul.f32.vlgmr.msrb.gmra.mxu3 %v11836_v30  ;;  %4924 = vmatpush.msra.mxu0 %v11837_v1 }
 0x2bd   :  { %5017 = vmatpush.msra.mxu2 %v11838_v38  ;;  %5082 = vmatpush.msra.mxu3 %v9875_v31  ;;  %v10257_v38 = vand.u32 4294901760, %v264_v4 }
 0x2be   :  { %4765 = vmatpush.msrb.mxu1 %v11839_v3  ;;  %4927 = vmatpush.msra.mxu0 %v11840_v11  ;;  %v260_v3 = vld [vmem:[#allocation2 + $0x668] sm:$0xff] }
 0x2bf   :  { %4767 = vmatmul.f32.vlgmr.msrb.gmra.mxu1 %v11819_v8  ;;  %5021 = vmatpush.msra.mxu2 %v11841_v25  ;;  %v11845_v8 = vand.u32 4294901760, %v11842_v58 }
 0x2c0   :  { %4968 = vmatpush.msra.mxu1 %v9816_v63  ;;  %5084 = vmatpush.msra.mxu3 %v9897_v51  ;;  %v11846_v63 = vand.u32 4294901760, %v11844_v36 }
 0x2c1   :  { %4930 = vmatpush.msra.mxu0 %v11842_v58  ;;  %5025 = vmatpush.msra.mxu2 %v11843_v44 }
 0x2c2   :  { %4970 = vmatpush.msra.mxu1 %v9830_v40  ;;  %5086 = vmatpush.msra.mxu3 %v9915_v33  ;;  %v718_v40 = vadd.f32 %v717_v59, %v677_v43 }
 0x2c3   :  { %4933 = vmatpush.msra.mxu0 %v11844_v36  ;;  %5029 = vmatpush.msra.mxu2 %v11845_v8  ;;  %v10280_v36 = vsub.f32 %v264_v4, %v10257_v38  ;;  %v10282_v8 = vand.u32 4294901760, %v260_v3 }
 0x2c4   :  { %4972 = vmatpush.msra.mxu1 %v9862_v17  ;;  %5088 = vmatpush.msra.mxu3 %v9924_v2  ;;  %v11848_v17 = vand.u32 4294901760, %v9982_v29 }
 0x2c5   :  { %4936 = vmatpush.msra.mxu0 %v9963_v21  ;;  %5033 = vmatpush.msra.mxu2 %v11846_v63  ;;  %v278_v21 = vld [vmem:[#allocation2 + $0x6f8] sm:$0xff]  ;;  %v11850_v63 = vld [vmem:[#allocation39_spill] sm:$0xff] }
 0x2c6   :  { %4974 = vmatpush.msra.mxu1 %v9875_v31  ;;  %5090 = vmatpush.msra.mxu3 %v9936_v46  ;;  %v819_v31 = vadd.f32 %v818_v5, %v718_v40 }
 0x2c7   :  { %4939 = vmatpush.msra.mxu0 %v9982_v29  ;;  %5037 = vmatpush.msra.mxu2 %v11847_v32  ;;  %v10182_v29 = vand.u32 4294901760, %v278_v21  ;;  %v256_v32 = vld [vmem:[#allocation2 + $0x648] sm:$0xff] }
 0x2c8   :  { %4976 = vmatpush.msra.mxu1 %v9897_v51  ;;  %5092 = vmatpush.msra.mxu3 %v9956_v7  ;;  %v911_v51 = vpop.f32.mrf.mxu1  ;;  %v873_v27 = vadd.f32 %v872_v53, %v819_v31 }
 0x2c9   :  { %4942 = vmatpush.msra.mxu0 %v9995_v60  ;;  %5041 = vmatpush.msra.mxu2 %v11848_v17  ;;  %v10292_v17 = vsub.f32 %v262_v62, %v10270_v55 }
 0x2ca   :  { %4978 = vmatpush.msra.mxu1 %v9915_v33  ;;  %5094 = vmatpush.msra.mxu3 %v9971_v41  ;;  %v276_v33 = vld [vmem:[#allocation2 + $0x6e8] sm:$0xff]  ;;  %v912_v60 = vadd.f32 %v911_v51, %v873_v27 }
 0x2cb   :  { %4945 = vmatpush.msra.mxu0 %v10007_v16  ;;  %5045 = vmatpush.msra.mxu2 %v4868_v13  ;;  %v980_v13 = vpop.f32.mrf.mxu2  ;;  %v10189_v16 = vand.u32 4294901760, %v276_v33 }
 0x2cc   :  { %4980 = vmatpush.msra.mxu1 %v9924_v2  ;;  %5096 = vmatpush.msra.mxu3 %v9984_v56  ;;  %v274_v2 = vld [vmem:[#allocation2 + $0x6d8] sm:$0xff] }
 0x2cd   :  { %4948 = vmatpush.msra.mxu0 %v10019_v34  ;;  %5049 = vmatpush.msra.mxu2 %v4874_v19  ;;  %v272_v19 = vld [vmem:[#allocation2 + $0x6c8] sm:$0xff]  ;;  %v10199_v34 = vand.u32 4294901760, %v274_v2 }
 0x2ce   :  { %4982 = vmatpush.msra.mxu1 %v9936_v46  ;;  %5098 = vmatpush.msra.mxu3 %v9997_v23  ;;  %v10197_v46 = vsub.f32 %v278_v21, %v10182_v29  ;;  %v10204_v26 = vand.u32 4294901760, %v272_v19  ;;  %v310_v21 = vld [vmem:[#allocation2 + $0x7f8] sm:$0xff] }
 0x2cf   :  { %4951 = vmatpush.msra.mxu0 %v10031_v15  ;;  %5053 = vmatpush.msra.mxu2 %v4880_v28  ;;  %v981_v28 = vadd.f32 %v980_v13, %v912_v60  ;;  %v1017_v15 = vpop.f32.mrf.mxu3  ;;  %v10304_v13 = vsub.f32 %v260_v3, %v10282_v8 }
 0x2d0   :  { %4984 = vmatpush.msra.mxu1 %v9956_v7  ;;  %5100 = vmatpush.msra.mxu3 %v10009_v48  ;;  %v270_v7 = vld [vmem:[#allocation2 + $0x6b8] sm:$0xff]  ;;  %v1159_v9 = vpop.f32.mrf.mxu1 }
 0x2d1   :  { %4954 = vmatpush.msra.mxu0 %v10044_v47  ;;  %5057 = vmatpush.msra.mxu2 %v4886_v12  ;;  %v10214_v12 = vand.u32 4294901760, %v270_v7  ;;  %v1058_v47 = vpop.f32.mrf.mxu0  ;;  %v1018_v24 = vadd.f32 %v1017_v15, %v981_v28  ;;  %v308_v28 = vld [vmem:[#allocation2 + $0x7e8] sm:$0xff]  ;;  %v11434_v3 = vand.u32 4294901760, %v10304_v13 }
 0x2d2   :  { %4986 = vmatpush.msra.mxu1 %v9971_v41  ;;  %5102 = vmatpush.msra.mxu3 %v10021_v20  ;;  %v10209_v41 = vsub.f32 %v276_v33, %v10189_v16  ;;  %v254_v33 = vld [vmem:[#allocation2 + $0x638] sm:$0xff] }
 0x2d3   :  { %4957 = vmatpush.msra.mxu0 %v10057_v45  ;;  %5061 = vmatpush.msra.mxu2 %v4892_v42  ;;  %v11448_v42 = vand.u32 4294901760, %v10197_v46  ;;  %v10225_v45 = vsub.f32 %v272_v19, %v10204_v26  ;;  %v1059_v57 = vadd.f32 %v1058_v47, %v1018_v24  ;;  %v10236_v0 = vsub.f32 %v270_v7, %v10214_v12  ;;  %v1213_v10 = vpop.f32.mrf.mxu2 }
 0x2d4   :  { %4988 = vmatpush.msra.mxu1 %v9984_v56  ;;  %5104 = vmatpush.msra.mxu3 %v10033_v52  ;;  %v10219_v56 = vsub.f32 %v274_v2, %v10199_v34  ;;  %v11446_v22 = vand.u32 4294901760, %v10209_v41  ;;  %v10306_v19 = vand.u32 4294901760, %v256_v32  ;;  %v11436_v7 = vand.u32 4294901760, %v10280_v36 }
 0x2d5   :  { %4960 = vmatpush.msra.mxu0 %v10068_v39  ;;  %5065 = vmatpush.msra.mxu2 %v4898_v35  ;;  %v266_v35 = vld [vmem:[#allocation2 + $0x698] sm:$0xff]  ;;  %v1160_v39 = vadd.f32 %v1159_v9, %v1059_v57  ;;  %v10311_v47 = vand.u32 4294901760, %v310_v21  ;;  %v11435_v9 = vand.u32 4294901760, %v10292_v17  ;;  %v252_v57 = vld [vmem:[#allocation2 + $0x628] sm:$0xff] }
 0x2d6   :  { %4990 = vmatpush.msra.mxu1 %v9997_v23  ;;  %5106 = vmatpush.msra.mxu3 %v10046_v50  ;;  %v10229_v23 = vand.u32 4294901760, %v268_v54  ;;  %v10243_v6 = vand.u32 4294901760, %v266_v35  ;;  %v11445_v14 = vand.u32 4294901760, %v10219_v56  ;;  %v5162_v49 = vsub.f32 %v10209_v41, %v11446_v22 }
 0x2d7   :  { %4963 = vmatmul.f32.vlgmr.msra.gmra.mxu0 %v11849_v37  ;;  %5069 = vmatpush.msra.mxu2 %v4904_v18  ;;  %v11442_v18 = vand.u32 4294901760, %v10225_v45  ;;  %v1214_v58 = vadd.f32 %v1213_v10, %v1160_v39  ;;  %v1252_v44 = vpop.f32.mrf.mxu3  ;;  %v5198_v10 = vsub.f32 %v10280_v36, %v11436_v7  ;;  %v300_v7 = vld [vmem:[#allocation2 + $0x7a8] sm:$0xff] }
 0x2d8   :  { %5309 = vmatpush.msrb.mxu3 %v10182_v29  ;;  %5113 = vmatpush.msrb.mxu0 %v10182_v29  ;;  %v10255_v1 = vsub.f32 %v268_v54, %v10229_v23  ;;  %v5168_v61 = vsub.f32 %v10219_v56, %v11445_v14  ;;  %v10268_v25 = vsub.f32 %v266_v35, %v10243_v6  ;;  %v5163_v43 = vand.u32 4294901760, %v5162_v49  ;;  %v1358_v60 = vpop.f32.mrf.mxu1 }
 0x2d9   :  { %4992 = vmatpush.msra.mxu1 %v10009_v48  ;;  %5256 = vmatpush.msrb.mxu2 %v10197_v46  ;;  %v5156_v48 = vsub.f32 %v10197_v46, %v11448_v42  ;;  %v1253_v51 = vadd.f32 %v1252_v44, %v1214_v58  ;;  %v10320_v35 = vand.u32 4294901760, %v254_v33  ;;  %v10332_v49 = vsub.f32 %v256_v32, %v10306_v19 }
 0x2da   :  { %5311 = vmatpush.msrb.mxu3 %v10189_v16  ;;  %5115 = vmatpush.msrb.mxu0 %v10189_v16  ;;  %v11439_v59 = vand.u32 4294901760, %v10255_v1  ;;  %v5169_v5 = vand.u32 4294901760, %v5168_v61  ;;  %v11438_v31 = vand.u32 4294901760, %v10268_v25  ;;  %v306_v61 = vld [vmem:[#allocation2 + $0x7d8] sm:$0xff]  ;;  %v10337_v58 = vand.u32 4294901760, %v252_v57 }
 0x2db   :  { %4994 = vmatpush.msra.mxu1 %v10021_v20  ;;  %5071 = vmatmul.f32.vlgmr.msra.gmra.mxu2 %v11836_v30  ;;  %v11441_v20 = vand.u32 4294901760, %v10236_v0  ;;  %v5157_v11 = vand.u32 4294901760, %v5156_v48  ;;  %11851 = vst [vmem:[#allocation22_spill] sm:$0xff] %v10320_v35  ;;  %v10325_v48 = vand.u32 4294901760, %v308_v28  ;;  %v1399_v39 = vpop.f32.mrf.mxu2  ;;  %v5204_v44 = vsub.f32 %v10292_v17, %v11435_v9 }
 0x2dc   :  { %5117 = vmatpush.msrb.mxu0 %v10199_v34  ;;  %5259 = vmatpush.msrb.mxu2 %v10209_v41  ;;  %v5186_v2 = vsub.f32 %v10255_v1, %v11439_v59  ;;  %v5192_v24 = vsub.f32 %v10268_v25, %v11438_v31  ;;  %11852 = vst [vmem:[#allocation11_spill] sm:$0xff] %v10337_v58  ;;  %v298_v31 = vld [vmem:[#allocation2 + $0x798] sm:$0xff] }
 0x2dd   :  { %5313 = vmatpush.msrb.mxu3 %v10199_v34  ;;  %4996 = vmatpush.msra.mxu1 %v10033_v52  ;;  %v5174_v52 = vsub.f32 %v10225_v45, %v11442_v18  ;;  %v5180_v40 = vsub.f32 %v10236_v0, %v11441_v20  ;;  %v10410_v20 = vand.u32 4294901760, %v300_v7  ;;  %v296_v18 = vld [vmem:[#allocation2 + $0x788] sm:$0xff] }
 0x2de   :  { %5108 = vmatmul.f32.vlgmr.msra.gmra.mxu3 %v11836_v30  ;;  %5119 = vmatpush.msrb.mxu0 %v10204_v26  ;;  %v258_v30 = vld [vmem:[#allocation2 + $0x658] sm:$0xff]  ;;  %v5187_v62 = vand.u32 4294901760, %v5186_v2  ;;  %v11440_v2 = vand.u32 4294901760, %v10332_v49 }
 0x2df   :  { %5262 = vmatpush.msrb.mxu2 %v10219_v56  ;;  %5315 = vmatpush.msrb.mxu3 %v10204_v26  ;;  %v10294_v53 = vand.u32 4294901760, %v258_v30  ;;  %v5175_v27 = vand.u32 4294901760, %v5174_v52  ;;  %v5181_v54 = vand.u32 4294901760, %v5180_v40  ;;  %v10340_v52 = vsub.f32 %v310_v21, %v10311_v47  ;;  %v304_v40 = vld [vmem:[#allocation2 + $0x7c8] sm:$0xff] }
 0x2e0   :  { %4998 = vmatpush.msra.mxu1 %v10046_v50  ;;  %5121 = vmatpush.msrb.mxu0 %v10214_v12  ;;  %v1321_v50 = vpop.f32.mrf.mxu0  ;;  %v10355_v21 = vsub.f32 %v308_v28, %v10325_v48  ;;  %v10367_v28 = vsub.f32 %v252_v57, %v10337_v58 }
 0x2e1   :  { %5002 = vmatmul.f32.vlgmr.msra.gmra.mxu1 %v11850_v63  ;;  %5265 = vmatpush.msrb.mxu2 %v10225_v45  ;;  %v1322_v15 = vadd.f32 %v1321_v50, %v1253_v51  ;;  %v10318_v37 = vsub.f32 %v258_v30, %v10294_v53  ;;  %v5193_v30 = vand.u32 4294901760, %v5192_v24  ;;  %v10357_v51 = vand.u32 4294901760, %v306_v61  ;;  %v302_v24 = vld [vmem:[#allocation2 + $0x7b8] sm:$0xff] }
 0x2e2   :  { %5158 = vmatpush.msrb.mxu1 %v5157_v11  ;;  %5317 = vmatpush.msrb.mxu3 %v10214_v12  ;;  %v250_v11 = vld [vmem:[#allocation2 + $0x618] sm:$0xff]  ;;  %11854 = vst [vmem:[#allocation16_spill] sm:$0xff] %v10355_v21 }
 0x2e3   :  { %5123 = vmatpush.msrb.mxu0 %v10229_v23  ;;  %5268 = vmatpush.msrb.mxu2 %v10236_v0  ;;  %v1359_v4 = vadd.f32 %v1358_v60, %v1322_v15  ;;  %v11437_v63 = vand.u32 4294901760, %v10318_v37  ;;  %v10352_v50 = vand.u32 4294901760, %v250_v11  ;;  %v5210_v60 = vsub.f32 %v10304_v13, %v11434_v3 }
 0x2e4   :  { %5164 = vmatpush.msrb.mxu1 %v5163_v43  ;;  %5319 = vmatpush.msrb.mxu3 %v10229_v23  ;;  %v10347_v43 = vsub.f32 %v254_v33, %v10320_v35  ;;  %v5199_v33 = vand.u32 4294901760, %v5198_v10  ;;  %v11443_v15 = vand.u32 4294901760, %v10340_v52 }
 0x2e5   :  { %5125 = vmatpush.msrb.mxu0 %v10243_v6  ;;  %5271 = vmatpush.msrb.mxu2 %v10255_v1  ;;  %v1400_v32 = vadd.f32 %v1399_v39, %v1359_v4  ;;  %11853 = vst [vmem:[#allocation28_spill] sm:$0xff] %v10352_v50  ;;  %v5205_v39 = vand.u32 4294901760, %v5204_v44  ;;  %v10382_v9 = vsub.f32 %v250_v11, %v10352_v50  ;;  %v1593_v11 = vpop.f32.mrf.mxu1 }
 0x2e6   :  { %5170 = vmatpush.msrb.mxu1 %v5169_v5  ;;  %5321 = vmatpush.msrb.mxu3 %v10243_v6  ;;  %v248_v5 = vld [vmem:[#allocation2 + $0x608] sm:$0xff]  ;;  %v11444_v3 = vand.u32 4294901760, %v10347_v43  ;;  %v10386_v44 = vsub.f32 %v306_v61, %v10357_v51  ;;  %v5497_v61 = vsub.f32 %v10340_v52, %v11443_v15  ;;  %v10419_v15 = vand.u32 4294901760, %v298_v31 }
 0x2e7   :  { %5127 = vmatpush.msrb.mxu0 %v10257_v38  ;;  %5274 = vmatpush.msrb.mxu2 %v10268_v25  ;;  %v10376_v10 = vand.u32 4294901760, %v248_v5  ;;  %v11860_v42 = vand.u32 4294901760, %v10382_v9 }
 0x2e8   :  { %5176 = vmatpush.msrb.mxu1 %v5175_v27  ;;  %5323 = vmatpush.msrb.mxu3 %v10257_v38  ;;  %v1500_v27 = vpop.f32.mrf.mxu3  ;;  %v1554_v4 = vpop.f32.mrf.mxu0  ;;  %11856 = vst [vmem:[#allocation12_spill] sm:$0xff] %v10386_v44  ;;  %v5498_v22 = vand.u32 4294901760, %v5497_v61 }
 0x2e9   :  { %5129 = vmatpush.msrb.mxu0 %v10270_v55  ;;  %5277 = vmatpush.msrb.mxu2 %v10280_v36  ;;  %11855 = vst [vmem:[#allocation24_spill] sm:$0xff] %v10376_v10  ;;  %v1501_v57 = vadd.f32 %v1500_v27, %v1400_v32  ;;  %v5222_v32 = vsub.f32 %v10332_v49, %v11440_v2  ;;  %v10392_v27 = vand.u32 4294901760, %v302_v24 }
 0x2ea   :  { %5182 = vmatpush.msrb.mxu1 %v5181_v54  ;;  %5325 = vmatpush.msrb.mxu3 %v10270_v55  ;;  %v10370_v54 = vand.u32 4294901760, %v304_v40 }
 0x2eb   :  { %5131 = vmatpush.msrb.mxu0 %v10282_v8  ;;  %5280 = vmatpush.msrb.mxu2 %v10292_v17  ;;  %v1555_v59 = vadd.f32 %v1554_v4, %v1501_v57  ;;  %v5228_v4 = vsub.f32 %v10347_v43, %v11444_v3  ;;  %v10408_v57 = vsub.f32 %v248_v5, %v10376_v10  ;;  %v5223_v5 = vand.u32 4294901760, %v5222_v32  ;;  %v292_v32 = vld [vmem:[#allocation2 + $0x768] sm:$0xff] }
 0x2ec   :  { %5188 = vmatpush.msrb.mxu1 %v5187_v62  ;;  %5327 = vmatpush.msrb.mxu3 %v10282_v8  ;;  %v5216_v62 = vsub.f32 %v10318_v37, %v11437_v63  ;;  %v5211_v63 = vand.u32 4294901760, %v5210_v60  ;;  %v10401_v60 = vsub.f32 %v304_v40, %v10370_v54  ;;  %v10423_v14 = vsub.f32 %v302_v24, %v10392_v27 }
 0x2ed   :  { %5133 = vmatpush.msrb.mxu0 %v10294_v53  ;;  %5283 = vmatpush.msrb.mxu2 %v10304_v13  ;;  %v1594_v3 = vadd.f32 %v1593_v11, %v1555_v59  ;;  %v294_v59 = vld [vmem:[#allocation2 + $0x778] sm:$0xff]  ;;  %v5229_v24 = vand.u32 4294901760, %v5228_v4  ;;  %v10436_v11 = vsub.f32 %v300_v7, %v10410_v20  ;;  %v10447_v4 = vsub.f32 %v298_v31, %v10419_v15 }
 0x2ee   :  { %5194 = vmatpush.msrb.mxu1 %v5193_v30  ;;  %5329 = vmatpush.msrb.mxu3 %v10294_v53  ;;  %v11447_v30 = vand.u32 4294901760, %v10355_v21  ;;  %11857 = vst [vmem:[#allocation32_spill] sm:$0xff] %v10401_v60  ;;  %v5217_v2 = vand.u32 4294901760, %v5216_v62  ;;  %v10431_v62 = vand.u32 4294901760, %v296_v18  ;;  %v11864_v7 = vand.u32 4294901760, %v10408_v57 }
 0x2ef   :  { %5135 = vmatpush.msrb.mxu0 %v10306_v19  ;;  %5286 = vmatpush.msrb.mxu2 %v10318_v37  ;;  %11858 = vst [vmem:[#allocation21_spill] sm:$0xff] %v10423_v14 }
 0x2f0   :  { %5200 = vmatpush.msrb.mxu1 %v5199_v33  ;;  %5331 = vmatpush.msrb.mxu3 %v10306_v19  ;;  %v11449_v33 = vand.u32 4294901760, %v10367_v28  ;;  %v5503_v40 = vsub.f32 %v10355_v21, %v11447_v30  ;;  %11859 = vst [vmem:[#allocation29_spill] sm:$0xff] %v10436_v11  ;;  %v10458_v31 = vsub.f32 %v296_v18, %v10431_v62  ;;  %v290_v21 = vld [vmem:[#allocation2 + $0x758] sm:$0xff] }
 0x2f1   :  { %5137 = vmatpush.msrb.mxu0 %v10320_v35  ;;  %5289 = vmatpush.msrb.mxu2 %v10332_v49 }
 0x2f2   :  { %5206 = vmatpush.msrb.mxu1 %v5205_v39  ;;  %5333 = vmatpush.msrb.mxu3 %v10320_v35  ;;  %v11452_v39 = vand.u32 4294901760, %v10386_v44  ;;  %v5234_v30 = vsub.f32 %v10367_v28, %v11449_v33  ;;  %v5504_v61 = vand.u32 4294901760, %v5503_v40  ;;  %v11868_v35 = vand.u32 4294901760, %v10219_v56 }
 0x2f3   :  { %5139 = vmatpush.msrb.mxu0 %v10337_v58  ;;  %5292 = vmatpush.msrb.mxu2 %v10347_v43 }
 0x2f4   :  { %5212 = vmatpush.msrb.mxu1 %v5211_v63  ;;  %5335 = vmatpush.msrb.mxu3 %v10337_v58  ;;  %v1662_v63 = vpop.f32.mrf.mxu2  ;;  %v5509_v33 = vsub.f32 %v10386_v44, %v11452_v39  ;;  %v11861_v58 = vld [vmem:[#allocation44_spill] sm:$0xff]  ;;  %v5235_v39 = vand.u32 4294901760, %v5234_v30  ;;  %v11862_v44 = vand.u32 4294901760, %v10401_v60 }
 0x2f5   :  { %5141 = vmatpush.msrb.mxu0 %v10352_v50  ;;  %5295 = vmatpush.msrb.mxu2 %v10367_v28  ;;  %v1663_v40 = vadd.f32 %v1662_v63, %v1594_v3  ;;  %v5246_v3 = vsub.f32 %v10408_v57, %v11864_v7  ;;  %v288_v63 = vld [vmem:[#allocation2 + $0x748] sm:$0xff] }
 0x2f6   :  { %5218 = vmatpush.msrb.mxu1 %v5217_v2  ;;  %5337 = vmatpush.msrb.mxu3 %v10352_v50  ;;  %v5240_v2 = vsub.f32 %v10382_v9, %v11860_v42  ;;  %v10451_v50 = vand.u32 4294901760, %v294_v59  ;;  %v5515_v42 = vsub.f32 %v10401_v60, %v11862_v44  ;;  %v5510_v30 = vand.u32 4294901760, %v5509_v33  ;;  %v1740_v60 = vpop.f32.mrf.mxu0 }
 0x2f7   :  { %5143 = vmatpush.msrb.mxu0 %v10376_v10  ;;  %5298 = vmatpush.msrb.mxu2 %v10382_v9 }
 0x2f8   :  { %5224 = vmatpush.msrb.mxu1 %v5223_v5  ;;  %5339 = vmatpush.msrb.mxu3 %v10376_v10  ;;  %v1699_v5 = vpop.f32.mrf.mxu3  ;;  %v11863_v10 = vand.u32 4294901760, %v10197_v46  ;;  %v5241_v18 = vand.u32 4294901760, %v5240_v2  ;;  %v11865_v46 = vand.u32 4294901760, %v10209_v41  ;;  %v10477_v7 = vsub.f32 %v294_v59, %v10451_v50  ;;  %v286_v41 = vld [vmem:[#allocation2 + $0x738] sm:$0xff] }
 0x2f9   :  { %5149 = vmatmul.f32.vlgmr.msrb.gmra.mxu0 %v11861_v58  ;;  %v10466_v58 = vand.u32 4294901760, %v292_v32  ;;  %5301 = vmatpush.msrb.mxu2 %v10408_v57  ;;  %v1700_v33 = vadd.f32 %v1699_v5, %v1663_v40  ;;  %v5516_v2 = vand.u32 4294901760, %v5515_v42  ;;  %v11869_v59 = vand.u32 4294901760, %v10436_v11 }
 0x2fa   :  { %5499 = vmatpush.msra.mxu3 %v5498_v22  ;;  %5350 = vmatpush.msra.mxu0 %v11863_v10  ;;  %v11866_v10 = vand.u32 4294901760, %v10423_v14  ;;  %v10479_v22 = vand.u32 4294901760, %v290_v21  ;;  %v11870_v5 = vand.u32 4294901760, %v10447_v4 }
 0x2fb   :  { %5230 = vmatpush.msrb.mxu1 %v5229_v24  ;;  %5454 = vmatpush.msra.mxu2 %v10311_v47  ;;  %v10490_v40 = vsub.f32 %v292_v32, %v10466_v58  ;;  %v1741_v42 = vadd.f32 %v1740_v60, %v1700_v33  ;;  %v282_v33 = vld [vmem:[#allocation2 + $0x718] sm:$0xff] }
 0x2fc   :  { %5505 = vmatpush.msra.mxu3 %v5504_v61  ;;  %5354 = vmatpush.msra.mxu0 %v11865_v46  ;;  %v5521_v24 = vsub.f32 %v10423_v14, %v11866_v10  ;;  %v11867_v61 = vld [vmem:[#allocation26_spill] sm:$0xff]  ;;  %v1841_v46 = vpop.f32.mrf.mxu1  ;;  %v5247_v10 = vand.u32 4294901760, %v5246_v3  ;;  %v5527_v14 = vsub.f32 %v10436_v11, %v11869_v59  ;;  %v5533_v56 = vsub.f32 %v10447_v4, %v11870_v5  ;;  %v1895_v5 = vpop.f32.mrf.mxu2 }
 0x2fd   :  { %5236 = vmatpush.msrb.mxu1 %v5235_v39  ;;  %5304 = vmatmul.f32.vlgmr.msrb.gmra.mxu2 %v11867_v61  ;;  %v10492_v39 = vand.u32 4294901760, %v288_v63  ;;  %v11871_v61 = vld [vmem:[#allocation33_spill] sm:$0xff]  ;;  %v11872_v3 = vand.u32 4294901760, %v10225_v45  ;;  %v11465_v59 = vand.u32 4294901760, %v10477_v7  ;;  %v10502_v32 = vsub.f32 %v290_v21, %v10479_v22 }
 0x2fe   :  { %5358 = vmatpush.msra.mxu0 %v11868_v35  ;;  %5456 = vmatpush.msra.mxu2 %v10325_v48  ;;  %v284_v35 = vld [vmem:[#allocation2 + $0x728] sm:$0xff]  ;;  %v5522_v44 = vand.u32 4294901760, %v5521_v24  ;;  %v10504_v11 = vand.u32 4294901760, %v286_v41  ;;  %v1842_v60 = vadd.f32 %v1841_v46, %v1741_v42  ;;  %v11874_v45 = vand.u32 4294901760, %v10236_v0 }
 0x2ff   :  { %5511 = vmatpush.msra.mxu3 %v5510_v30  ;;  %5242 = vmatpush.msrb.mxu1 %v5241_v18  ;;  %v11873_v30 = vand.u32 4294901760, %v10458_v31  ;;  %v5528_v24 = vand.u32 4294901760, %v5527_v14  ;;  %v5550_v21 = vand.u32 4294901760, %v10490_v40  ;;  %v10516_v46 = vand.u32 4294901760, %v284_v35  ;;  %v11875_v42 = vld [vmem:[#allocation27_spill] sm:$0xff] }
 0x300   :  { %5343 = vmatmul.f32.vlgmr.msrb.gmra.mxu3 %v11871_v61  ;;  %5362 = vmatpush.msra.mxu0 %v11872_v3  ;;  %v10514_v61 = vsub.f32 %v288_v63, %v10492_v39  ;;  %v280_v3 = vld [vmem:[#allocation2 + $0x708] sm:$0xff]  ;;  %v5545_v0 = vsub.f32 %v10477_v7, %v11465_v59  ;;  %v5556_v14 = vand.u32 4294901760, %v10502_v32  ;;  %v10526_v63 = vsub.f32 %v286_v41, %v10504_v11 }
 0x301   :  { %5458 = vmatpush.msra.mxu2 %v10357_v51  ;;  %5517 = vmatpush.msra.mxu3 %v5516_v2  ;;  %v5539_v18 = vsub.f32 %v10458_v31, %v11873_v30  ;;  %v5534_v2 = vand.u32 4294901760, %v5533_v56  ;;  %v1896_v30 = vadd.f32 %v1895_v5, %v1842_v60  ;;  %v10539_v59 = vsub.f32 %v284_v35, %v10516_v46 }
 0x302   :  { %5248 = vmatpush.msrb.mxu1 %v5247_v10  ;;  %5366 = vmatpush.msra.mxu0 %v11874_v45  ;;  %v10528_v10 = vand.u32 4294901760, %v282_v33  ;;  %v11876_v45 = vand.u32 4294901760, %v10255_v1  ;;  %v5562_v41 = vand.u32 4294901760, %v10514_v61  ;;  %v10541_v60 = vand.u32 4294901760, %v280_v3 }
 0x303   :  { %5250 = vmatmul.f32.vlgmr.msrb.gmra.mxu1 %v11875_v42  ;;  %5460 = vmatpush.msra.mxu2 %v10370_v54  ;;  %v5540_v56 = vand.u32 4294901760, %v5539_v18  ;;  %v11877_v1 = vand.u32 4294901760, %v10268_v25  ;;  %v2003_v18 = vpop.f32.mrf.mxu0  ;;  %v5557_v5 = vsub.f32 %v10502_v32, %v5556_v14  ;;  %v11878_v25 = vand.u32 4294901760, %v10280_v36 }
 0x304   :  { %5417 = vmatpush.msra.mxu1 %v10182_v29  ;;  %5523 = vmatpush.msra.mxu3 %v5522_v44  ;;  %v1934_v29 = vpop.f32.mrf.mxu3  ;;  %v5551_v44 = vsub.f32 %v10490_v40, %v5550_v21  ;;  %v10552_v35 = vsub.f32 %v282_v33, %v10528_v10  ;;  %v10563_v33 = vsub.f32 %v280_v3, %v10541_v60  ;;  %v11879_v36 = vand.u32 4294901760, %v10292_v17  ;;  %v2081_v17 = vpop.f32.mrf.mxu2 }
 0x305   :  { %5370 = vmatpush.msra.mxu0 %v11876_v45  ;;  %5462 = vmatpush.msra.mxu2 %v10392_v27  ;;  %v1935_v45 = vadd.f32 %v1934_v29, %v1896_v30  ;;  %v11880_v3 = vand.u32 4294901760, %v10304_v13 }
 0x306   :  { %5419 = vmatpush.msra.mxu1 %v10189_v16  ;;  %5529 = vmatpush.msra.mxu3 %v5528_v24  ;;  %v5546_v16 = vand.u32 4294901760, %v5545_v0  ;;  %v5568_v24 = vand.u32 4294901760, %v10526_v63  ;;  %v5574_v0 = vand.u32 4294901760, %v10539_v59  ;;  %v5580_v29 = vand.u32 4294901760, %v10552_v35 }
 0x307   :  { %5374 = vmatpush.msra.mxu0 %v11877_v1  ;;  %5464 = vmatpush.msra.mxu2 %v10410_v20  ;;  %v2040_v1 = vpop.f32.mrf.mxu1  ;;  %v2004_v30 = vadd.f32 %v2003_v18, %v1935_v45 }
 0x308   :  { %5421 = vmatpush.msra.mxu1 %v10199_v34  ;;  %5535 = vmatpush.msra.mxu3 %v5534_v2  ;;  %v5552_v34 = vand.u32 4294901760, %v5551_v44  ;;  %v5563_v2 = vsub.f32 %v10514_v61, %v5562_v41 }
 0x309   :  { %5378 = vmatpush.msra.mxu0 %v11878_v25  ;;  %5466 = vmatpush.msra.mxu2 %v10419_v15  ;;  %v2041_v44 = vadd.f32 %v2040_v1, %v2004_v30  ;;  %v11882_v25 = vand.u32 4294901760, %v10332_v49 }
 0x30a   :  { %5423 = vmatpush.msra.mxu1 %v10204_v26  ;;  %5541 = vmatpush.msra.mxu3 %v5540_v56  ;;  %v5558_v26 = vand.u32 4294901760, %v5557_v5  ;;  %v5569_v56 = vsub.f32 %v10526_v63, %v5568_v24  ;;  %v5564_v18 = vand.u32 4294901760, %v5563_v2  ;;  %v11881_v5 = vand.u32 4294901760, %v10318_v37 }
 0x30b   :  { %5382 = vmatpush.msra.mxu0 %v11879_v36  ;;  %5468 = vmatpush.msra.mxu2 %v10431_v62  ;;  %v2082_v45 = vadd.f32 %v2081_v17, %v2041_v44  ;;  %v2236_v2 = vpop.f32.mrf.mxu0  ;;  %v11884_v36 = vand.u32 4294901760, %v10367_v28  ;;  %v11886_v28 = vand.u32 4294901760, %v10408_v57  ;;  %v11890_v17 = vld [vmem:[#allocation11_spill] sm:$0xff] }
 0x30c   :  { %5425 = vmatpush.msra.mxu1 %v10214_v12  ;;  %5547 = vmatpush.msra.mxu3 %v5546_v16  ;;  %v5575_v12 = vsub.f32 %v10539_v59, %v5574_v0  ;;  %v5586_v16 = vand.u32 4294901760, %v10563_v33  ;;  %v5570_v13 = vand.u32 4294901760, %v5569_v56  ;;  %v2182_v1 = vpop.f32.mrf.mxu3  ;;  %v11885_v56 = vand.u32 4294901760, %v10382_v9  ;;  %v2344_v44 = vpop.f32.mrf.mxu2  ;;  %v11887_v9 = vld [vmem:[#allocation22_spill] sm:$0xff] }
 0x30d   :  { %5386 = vmatpush.msra.mxu0 %v11880_v3  ;;  %5470 = vmatpush.msra.mxu2 %v10451_v50  ;;  %v2183_v30 = vadd.f32 %v2182_v1, %v2082_v45  ;;  %v11888_v3 = vld [vmem:[#allocation16_spill] sm:$0xff] }
 0x30e   :  { %5427 = vmatpush.msra.mxu1 %v10229_v23  ;;  %5553 = vmatpush.msra.mxu3 %v5552_v34  ;;  %v5581_v23 = vsub.f32 %v10552_v35, %v5580_v29  ;;  %v5576_v37 = vand.u32 4294901760, %v5575_v12  ;;  %v11883_v34 = vand.u32 4294901760, %v10347_v43  ;;  %v11894_v45 = vld [vmem:[#allocation28_spill] sm:$0xff] }
 0x30f   :  { %5390 = vmatpush.msra.mxu0 %v11881_v5  ;;  %5472 = vmatpush.msra.mxu2 %v10466_v58  ;;  %v2237_v43 = vadd.f32 %v2236_v2, %v2183_v30  ;;  %v11892_v5 = vld [vmem:[#allocation12_spill] sm:$0xff] }
 0x310   :  { %5429 = vmatpush.msra.mxu1 %v10243_v6  ;;  %5559 = vmatpush.msra.mxu3 %v5558_v26  ;;  %v5587_v6 = vsub.f32 %v10563_v33, %v5586_v16  ;;  %v5582_v49 = vand.u32 4294901760, %v5581_v23  ;;  %v11896_v1 = vld [vmem:[#allocation32_spill] sm:$0xff] }
 0x311   :  { %5394 = vmatpush.msra.mxu0 %v11882_v25  ;;  %5474 = vmatpush.msra.mxu2 %v10479_v22  ;;  %v11895_v25 = vld [vmem:[#allocation45_spill] sm:$0xff]  ;;  %v11898_v2 = vld [vmem:[#allocation24_spill] sm:$0xff] }
 0x312   :  { %5431 = vmatpush.msra.mxu1 %v10257_v38  ;;  %5565 = vmatpush.msra.mxu3 %v5564_v18  ;;  %v2275_v38 = vpop.f32.mrf.mxu1  ;;  %v5588_v26 = vand.u32 4294901760, %v5587_v6  ;;  %v11891_v18 = vld [vmem:[#allocation48_spill] sm:$0xff] }
 0x313   :  { %5398 = vmatpush.msra.mxu0 %v11883_v34  ;;  %5476 = vmatpush.msra.mxu2 %v10492_v39 }
 0x314   :  { %5433 = vmatpush.msra.mxu1 %v10270_v55  ;;  %5571 = vmatpush.msra.mxu3 %v5570_v13  ;;  %v2276_v55 = vadd.f32 %v2275_v38, %v2237_v43  ;;  %v2381_v57 = vpop.f32.mrf.mxu3  ;;  %v11893_v13 = vand.u32 4294901760, %v11888_v3  ;;  %v2577_v6 = vpop.f32.mrf.mxu2  ;;  %v11901_v38 = vld [vmem:[#allocation29_spill] sm:$0xff] }
 0x315   :  { %5402 = vmatpush.msra.mxu0 %v11884_v36  ;;  %5478 = vmatpush.msra.mxu2 %v10504_v11  ;;  %v11900_v36 = vand.u32 4294901760, %v11896_v1 }
 0x316   :  { %5435 = vmatpush.msra.mxu1 %v10282_v8  ;;  %5577 = vmatpush.msra.mxu3 %v5576_v37  ;;  %v2422_v8 = vpop.f32.mrf.mxu0  ;;  %v11897_v37 = vand.u32 4294901760, %v11892_v5 }
 0x317   :  { %5406 = vmatpush.msra.mxu0 %v11885_v56  ;;  %5480 = vmatpush.msra.mxu2 %v10516_v46 }
 0x318   :  { %5437 = vmatpush.msra.mxu1 %v10294_v53  ;;  %5583 = vmatpush.msra.mxu3 %v5582_v49  ;;  %v2345_v53 = vadd.f32 %v2344_v44, %v2276_v55  ;;  %v11899_v49 = vld [vmem:[#allocation21_spill] sm:$0xff] }
 0x319   :  { %5410 = vmatpush.msra.mxu0 %v11886_v28  ;;  %5482 = vmatpush.msra.mxu2 %v10528_v10 }
 0x31a   :  { %5439 = vmatpush.msra.mxu1 %v10306_v19  ;;  %5589 = vmatpush.msra.mxu3 %v5588_v26  ;;  %v11889_v19 = vand.u32 4294901760, %v10340_v52  ;;  %v2523_v12 = vpop.f32.mrf.mxu1  ;;  %v2382_v23 = vadd.f32 %v2381_v57, %v2345_v53  ;;  %v11902_v26 = vand.u32 4294901760, %v11899_v49 }
 0x31b   :  { %5412 = vmatmul.f32.vlgmr.msra.gmra.mxu0 %v11875_v42  ;;  %5484 = vmatpush.msra.mxu2 %v10541_v60 }
 0x31c   :  { %5758 = vmatpush.msrb.mxu3 %v10311_v47  ;;  %5597 = vmatpush.msrb.mxu0 %v10340_v52  ;;  %v2423_v52 = vadd.f32 %v2422_v8, %v2382_v23  ;;  %v2616_v43 = vpop.f32.mrf.mxu3  ;;  %v2763_v28 = vpop.f32.mrf.mxu2  ;;  %v11905_v8 = vand.u32 4294901760, %v10458_v31 }
 0x31d   :  { %5441 = vmatpush.msra.mxu1 %v11887_v9  ;;  %5691 = vmatpush.msrb.mxu2 %v11889_v19 }
 0x31e   :  { %5760 = vmatpush.msrb.mxu3 %v10325_v48  ;;  %5600 = vmatpush.msrb.mxu0 %v11888_v3  ;;  %v2685_v34 = vpop.f32.mrf.mxu0  ;;  %v2524_v30 = vadd.f32 %v2523_v12, %v2423_v52 }
 0x31f   :  { %5443 = vmatpush.msra.mxu1 %v11890_v17  ;;  %5490 = vmatmul.f32.vlgmr.msra.gmra.mxu2 %v11891_v18 }
 0x320   :  { %5603 = vmatpush.msrb.mxu0 %v11892_v5  ;;  %5695 = vmatpush.msrb.mxu2 %v11893_v13  ;;  %v2578_v55 = vadd.f32 %v2577_v6, %v2524_v30  ;;  %v5804_v6 = vld [vmem:[#allocation5 + $0x40] sm:$0xff]  ;;  %v5803_v30 = vld [vmem:[#allocation5 + $0x38] sm:$0xff] }
 0x321   :  { %5762 = vmatpush.msrb.mxu3 %v10357_v51  ;;  %5445 = vmatpush.msra.mxu1 %v11894_v45  ;;  %v11907_v45 = vld [vmem:[#allocation46_spill] sm:$0xff] }
 0x322   :  { %5591 = vmatmul.f32.vlgmr.msra.gmra.mxu3 %v11895_v25  ;;  %5606 = vmatpush.msrb.mxu0 %v11896_v1  ;;  %v2722_v56 = vpop.f32.mrf.mxu1 }
 0x323   :  { %5699 = vmatpush.msrb.mxu2 %v11897_v37  ;;  %5764 = vmatpush.msrb.mxu3 %v10370_v54 }
 0x324   :  { %5447 = vmatpush.msra.mxu1 %v11898_v2  ;;  %5609 = vmatpush.msrb.mxu0 %v11899_v49  ;;  %v2864_v9 = vpop.f32.mrf.mxu3  ;;  %v3026_v57 = vpop.f32.mrf.mxu2 }
 0x325   :  { %5449 = vmatmul.f32.vlgmr.msra.gmra.mxu1 %v11875_v42  ;;  %5703 = vmatpush.msrb.mxu2 %v11900_v36  ;;  %v11903_v42 = vand.u32 4294901760, %v11901_v38 }
 0x326   :  { %5650 = vmatpush.msrb.mxu1 %v10311_v47  ;;  %5766 = vmatpush.msrb.mxu3 %v10392_v27  ;;  %v11904_v47 = vand.u32 4294901760, %v10447_v4  ;;  %v2918_v44 = vpop.f32.mrf.mxu0 }
 0x327   :  { %5612 = vmatpush.msrb.mxu0 %v11901_v38  ;;  %5707 = vmatpush.msrb.mxu2 %v11902_v26  ;;  %v10754_v26 = vand.u32 4294901760, %v5804_v6 }
 0x328   :  { %5652 = vmatpush.msrb.mxu1 %v10325_v48  ;;  %5768 = vmatpush.msrb.mxu3 %v10410_v20  ;;  %v2617_v48 = vadd.f32 %v2616_v43, %v2578_v55 }
 0x329   :  { %5615 = vmatpush.msrb.mxu0 %v10447_v4  ;;  %5711 = vmatpush.msrb.mxu2 %v11903_v42  ;;  %v11906_v4 = vand.u32 4294901760, %v10477_v7 }
 0x32a   :  { %5654 = vmatpush.msrb.mxu1 %v10357_v51  ;;  %5770 = vmatpush.msrb.mxu3 %v10419_v15  ;;  %v2686_v51 = vadd.f32 %v2685_v34, %v2617_v48  ;;  %v5801_v48 = vld [vmem:[#allocation5 + $0x28] sm:$0xff] }
 0x32b   :  { %5618 = vmatpush.msrb.mxu0 %v10458_v31  ;;  %5715 = vmatpush.msrb.mxu2 %v11904_v47  ;;  %v6541_v31 = vld [vmem:[%s11212_s2] sm:$0x3] }
 0x32c   :  { %5656 = vmatpush.msrb.mxu1 %v10370_v54  ;;  %5772 = vmatpush.msrb.mxu3 %v10431_v62  ;;  %v2957_v54 = vpop.f32.mrf.mxu1  ;;  %v2723_v53 = vadd.f32 %v2722_v56, %v2686_v51  ;;  %v5802_v56 = vld [vmem:[#allocation5 + $0x30] sm:$0xff]  ;;  %v10780_v51 = vsub.f32 %v5804_v6, %v10754_v26 }
 0x32d   :  { %5621 = vmatpush.msrb.mxu0 %v10477_v7  ;;  %5719 = vmatpush.msrb.mxu2 %v11905_v8  ;;  %v314_v7 = vperm.slane %v6541_v31, 1 }
 0x32e   :  { %5658 = vmatpush.msrb.mxu1 %v10392_v27  ;;  %5774 = vmatpush.msrb.mxu3 %v10451_v50  ;;  %v5811_v27 = vld [vmem:[#allocation5 + $0x78] sm:$0xff]  ;;  %v3104_v3 = vpop.f32.mrf.mxu0 }
 0x32f   :  { %5624 = vmatpush.msrb.mxu0 %v10490_v40  ;;  %5723 = vmatpush.msrb.mxu2 %v11906_v4  ;;  %v2764_v40 = vadd.f32 %v2763_v28, %v2723_v53  ;;  %v3105_v19 = vadd.f32 %v3104_v3, %v314_v7  ;;  %v10782_v4 = vand.u32 4294901760, %v5802_v56  ;;  %v11908_v53 = vld [vmem:[#allocation47_spill] sm:$0xff] }
 0x330   :  { %5660 = vmatpush.msrb.mxu1 %v10410_v20  ;;  %5776 = vmatpush.msrb.mxu3 %v10466_v58  ;;  %v5810_v20 = vld [vmem:[#allocation5 + $0x70] sm:$0xff] }
 0x331   :  { %5627 = vmatpush.msrb.mxu0 %v10502_v32  ;;  %5727 = vmatpush.msrb.mxu2 %v5550_v21  ;;  %v5809_v21 = vld [vmem:[#allocation5 + $0x68] sm:$0xff]  ;;  %v10684_v32 = vand.u32 4294901760, %v5810_v20  ;;  %v2865_v18 = vadd.f32 %v2864_v9, %v2764_v40 }
 0x332   :  { %5662 = vmatpush.msrb.mxu1 %v10419_v15  ;;  %5778 = vmatpush.msrb.mxu3 %v10479_v22  ;;  %v10677_v15 = vand.u32 4294901760, %v5811_v27 }
 0x333   :  { %5630 = vmatpush.msrb.mxu0 %v10514_v61  ;;  %5731 = vmatpush.msrb.mxu2 %v5556_v14  ;;  %v5808_v14 = vld [vmem:[#allocation5 + $0x60] sm:$0xff]  ;;  %v10696_v61 = vand.u32 4294901760, %v5809_v21 }
 0x334   :  { %5664 = vmatpush.msrb.mxu1 %v10431_v62  ;;  %5780 = vmatpush.msrb.mxu3 %v10492_v39  ;;  %v10689_v62 = vpop.f32.mrf.mxu3  ;;  %v3205_v17 = vpop.f32.mrf.mxu1 }
 0x335   :  { %5633 = vmatpush.msrb.mxu0 %v10526_v63  ;;  %5735 = vmatpush.msrb.mxu2 %v5562_v41  ;;  %v5807_v41 = vld [vmem:[#allocation5 + $0x58] sm:$0xff]  ;;  %v10701_v63 = vand.u32 4294901760, %v5808_v14  ;;  %v3206_v12 = vadd.f32 %v3205_v17, %v3105_v19 }
 0x336   :  { %5666 = vmatpush.msrb.mxu1 %v10451_v50  ;;  %5782 = vmatpush.msrb.mxu3 %v10504_v11  ;;  %v10694_v50 = vsub.f32 %v5811_v27, %v10677_v15  ;;  %v10711_v5 = vand.u32 4294901760, %v5807_v41  ;;  %v3367_v55 = vpop.f32.mrf.mxu0 }
 0x337   :  { %5636 = vmatpush.msrb.mxu0 %v10539_v59  ;;  %5739 = vmatpush.msrb.mxu2 %v5568_v24  ;;  %v2919_v24 = vadd.f32 %v2918_v44, %v2865_v18  ;;  %v5806_v59 = vld [vmem:[#allocation5 + $0x50] sm:$0xff]  ;;  %v10767_v44 = vand.u32 4294901760, %v5803_v30 }
 0x338   :  { %5668 = vmatpush.msrb.mxu1 %v10466_v58  ;;  %5784 = vmatpush.msrb.mxu3 %v10516_v46  ;;  %v10706_v58 = vsub.f32 %v5810_v20, %v10684_v32  ;;  %v5875_v13 = vand.u32 4294901760, %v10694_v50  ;;  %v10733_v37 = vsub.f32 %v5807_v41, %v10711_v5  ;;  %v5917_v41 = vand.u32 4294901760, %v10780_v51 }
 0x339   :  { %5639 = vmatpush.msrb.mxu0 %v10552_v35  ;;  %5743 = vmatpush.msrb.mxu2 %v5574_v0  ;;  %v3259_v0 = vpop.f32.mrf.mxu2  ;;  %v2958_v23 = vadd.f32 %v2957_v54, %v2919_v24  ;;  %v10722_v35 = vsub.f32 %v5808_v14, %v10701_v63  ;;  %v10792_v20 = vsub.f32 %v5803_v30, %v10767_v44  ;;  %v5799_v14 = vld [vmem:[#allocation5 + $0x18] sm:$0xff]  ;;  %v5797_v30 = vld [vmem:[#allocation5 + $0x8] sm:$0xff] }
 0x33a   :  { %5670 = vmatpush.msrb.mxu1 %v10479_v22  ;;  %5786 = vmatpush.msrb.mxu3 %v10528_v10  ;;  %v10716_v22 = vsub.f32 %v5809_v21, %v10696_v61  ;;  %v5881_v1 = vand.u32 4294901760, %v10706_v58  ;;  %v3260_v52 = vadd.f32 %v3259_v0, %v3206_v12 }
 0x33b   :  { %5642 = vmatpush.msrb.mxu0 %v10563_v33  ;;  %5747 = vmatpush.msrb.mxu2 %v5580_v29  ;;  %v5805_v29 = vld [vmem:[#allocation5 + $0x48] sm:$0xff]  ;;  %v5893_v49 = vand.u32 4294901760, %v10722_v35 }
 0x33c   :  { %5672 = vmatpush.msrb.mxu1 %v10492_v39  ;;  %5788 = vmatpush.msrb.mxu3 %v10541_v60  ;;  %v10726_v39 = vand.u32 4294901760, %v5806_v59  ;;  %v3298_v34 = vpop.f32.mrf.mxu3  ;;  %v10740_v2 = vand.u32 4294901760, %v5805_v29  ;;  %v5887_v33 = vand.u32 4294901760, %v10716_v22  ;;  %v5882_v36 = vsub.f32 %v10706_v58, %v5881_v1  ;;  %v3404_v31 = vpop.f32.mrf.mxu1 }
 0x33d   :  { %5645 = vmatmul.f32.vlgmr.msrb.gmra.mxu0 %v11907_v45  ;;  %5751 = vmatpush.msrb.mxu2 %v5586_v16  ;;  %v3027_v16 = vadd.f32 %v3026_v57, %v2958_v23  ;;  %v3299_v43 = vadd.f32 %v3298_v34, %v3260_v52  ;;  %v10794_v57 = vand.u32 4294901760, %v5801_v48  ;;  %v10819_v23 = vand.u32 4294901760, %v5799_v14 }
 0x33e   :  { %6029 = vmatpush.msra.mxu3 %v10677_v15  ;;  %5833 = vmatpush.msra.mxu0 %v10677_v15  ;;  %v10752_v38 = vsub.f32 %v5806_v59, %v10726_v39  ;;  %v5888_v47 = vsub.f32 %v10716_v22, %v5887_v33  ;;  %v10765_v28 = vsub.f32 %v5805_v29, %v10740_v2  ;;  %v5883_v8 = vand.u32 4294901760, %v5882_v36  ;;  %v5798_v29 = vld [vmem:[#allocation5 + $0x10] sm:$0xff] }
 0x33f   :  { %5674 = vmatpush.msrb.mxu1 %v10504_v11  ;;  %5976 = vmatpush.msra.mxu2 %v10694_v50  ;;  %v5876_v11 = vsub.f32 %v10694_v50, %v5875_v13  ;;  %v3368_v54 = vadd.f32 %v3367_v55, %v3299_v43  ;;  %v10817_v0 = vsub.f32 %v5801_v48, %v10794_v57  ;;  %v5923_v45 = vand.u32 4294901760, %v10792_v20 }
 0x340   :  { %6031 = vmatpush.msra.mxu3 %v10684_v32  ;;  %5835 = vmatpush.msra.mxu0 %v10684_v32  ;;  %v5905_v9 = vand.u32 4294901760, %v10752_v38  ;;  %v5889_v7 = vand.u32 4294901760, %v5888_v47  ;;  %v5911_v3 = vand.u32 4294901760, %v10765_v28  ;;  %v5918_v34 = vsub.f32 %v10780_v51, %v5917_v41 }
 0x341   :  { %5676 = vmatpush.msrb.mxu1 %v10516_v46  ;;  %5753 = vmatmul.f32.vlgmr.msrb.gmra.mxu2 %v11895_v25  ;;  %v5899_v46 = vand.u32 4294901760, %v10733_v37  ;;  %v5877_v42 = vand.u32 4294901760, %v5876_v11  ;;  %v3405_v18 = vadd.f32 %v3404_v31, %v3368_v54  ;;  %v3445_v12 = vpop.f32.mrf.mxu2  ;;  %v10836_v43 = vand.u32 4294901760, %v5798_v29  ;;  %v3600_v54 = vpop.f32.mrf.mxu0 }
 0x342   :  { %5837 = vmatpush.msra.mxu0 %v10696_v61  ;;  %5979 = vmatpush.msra.mxu2 %v10706_v58  ;;  %v5906_v19 = vsub.f32 %v10752_v38, %v5905_v9  ;;  %v5912_v59 = vsub.f32 %v10765_v28, %v5911_v3  ;;  %v10843_v47 = vsub.f32 %v5799_v14, %v10819_v23  ;;  %v5827_v58 = vld [vmem:[#allocation5 + $0xf8] sm:$0xff] }
 0x343   :  { %6033 = vmatpush.msra.mxu3 %v10696_v61  ;;  %5678 = vmatpush.msrb.mxu1 %v10528_v10  ;;  %v10770_v10 = vadd.f32 %v10689_v62, %v3027_v16  ;;  %v5900_v27 = vsub.f32 %v10733_v37, %v5899_v46  ;;  %v10805_v62 = vsub.f32 %v5802_v56, %v10782_v4 }
 0x344   :  { %5790 = vmatmul.f32.vlgmr.msrb.gmra.mxu3 %v11895_v25  ;;  %5839 = vmatpush.msra.mxu0 %v10701_v63  ;;  %v5894_v25 = vsub.f32 %v10722_v35, %v5893_v49  ;;  %v5907_v6 = vand.u32 4294901760, %v5906_v19  ;;  %v3446_v36 = vadd.f32 %v3445_v12, %v3405_v18  ;;  %v3546_v56 = vpop.f32.mrf.mxu3  ;;  %v5913_v55 = vand.u32 4294901760, %v5912_v59 }
 0x345   :  { %5982 = vmatpush.msra.mxu2 %v10716_v22  ;;  %6035 = vmatpush.msra.mxu3 %v10701_v63  ;;  %v5794_v40 = vmax.f32 %v10770_v10, 0.0  ;;  %v5901_v24 = vand.u32 4294901760, %v5900_v27  ;;  %v5929_v16 = vand.u32 4294901760, %v10805_v62  ;;  %v5935_v10 = vand.u32 4294901760, %v10817_v0 }
 0x346   :  { %5680 = vmatpush.msrb.mxu1 %v10541_v60  ;;  %5841 = vmatpush.msra.mxu0 %v10711_v5  ;;  %v5800_v60 = vld [vmem:[#allocation5 + $0x20] sm:$0xff]  ;;  %v5895_v21 = vand.u32 4294901760, %v5894_v25  ;;  %v3547_v31 = vadd.f32 %v3546_v56, %v3446_v36  ;;  %v5947_v18 = vand.u32 4294901760, %v10843_v47 }
 0x347   :  { %5684 = vmatmul.f32.vlgmr.msrb.gmra.mxu1 %v11908_v53  ;;  %5985 = vmatpush.msra.mxu2 %v10722_v35  ;;  %v10807_v17 = vand.u32 4294901760, %v5800_v60  ;;  %v10822_v52 = vand.u32 4294901760, %v5794_v40  ;;  %v5796_v25 = vld [vmem:[#allocation5] sm:$0xff]  ;;  %v5919_v53 = vand.u32 4294901760, %v5918_v34  ;;  %v5930_v27 = vsub.f32 %v10805_v62, %v5929_v16 }
 0x348   :  { %5878 = vmatpush.msra.mxu1 %v5877_v42  ;;  %6037 = vmatpush.msra.mxu3 %v10711_v5  ;;  %v5924_v42 = vsub.f32 %v10792_v20, %v5923_v45  ;;  %v5936_v19 = vsub.f32 %v10817_v0, %v5935_v10  ;;  %v3601_v12 = vadd.f32 %v3600_v54, %v3547_v31 }
 0x349   :  { %5843 = vmatpush.msra.mxu0 %v10726_v39  ;;  %5988 = vmatpush.msra.mxu2 %v10733_v37  ;;  %v10831_v11 = vsub.f32 %v5800_v60, %v10807_v17  ;;  %v10847_v48 = vsub.f32 %v5794_v40, %v10822_v52  ;;  %v10863_v40 = vand.u32 4294901760, %v5796_v25 }
 0x34a   :  { %5884 = vmatpush.msra.mxu1 %v5883_v8  ;;  %6039 = vmatpush.msra.mxu3 %v10726_v39  ;;  %v10851_v8 = vand.u32 4294901760, %v5797_v30  ;;  %v5925_v14 = vand.u32 4294901760, %v5924_v42  ;;  %v5948_v42 = vsub.f32 %v10843_v47, %v5947_v18 }
 0x34b   :  { %5845 = vmatpush.msra.mxu0 %v10740_v2  ;;  %5991 = vmatpush.msra.mxu2 %v10752_v38  ;;  %v5941_v60 = vand.u32 4294901760, %v10831_v11  ;;  %v10883_v36 = vsub.f32 %v5796_v25, %v10863_v40 }
 0x34c   :  { %5890 = vmatpush.msra.mxu1 %v5889_v7  ;;  %6041 = vmatpush.msra.mxu3 %v10740_v2  ;;  %v10861_v7 = vsub.f32 %v5798_v29, %v10836_v43  ;;  %v10874_v59 = vsub.f32 %v5797_v30, %v10851_v8  ;;  %v5931_v29 = vand.u32 4294901760, %v5930_v27  ;;  %v3708_v30 = vpop.f32.mrf.mxu2 }
 0x34d   :  { %5847 = vmatpush.msra.mxu0 %v10754_v26  ;;  %5994 = vmatpush.msra.mxu2 %v10765_v28 }
 0x34e   :  { %5896 = vmatpush.msra.mxu1 %v5895_v21  ;;  %6043 = vmatpush.msra.mxu3 %v10754_v26  ;;  %v3639_v21 = vpop.f32.mrf.mxu1  ;;  %v5953_v56 = vand.u32 4294901760, %v10861_v7  ;;  %v11466_v25 = vand.u32 4294901760, %v10874_v59 }
 0x34f   :  { %5849 = vmatpush.msra.mxu0 %v10767_v44  ;;  %5997 = vmatpush.msra.mxu2 %v10780_v51  ;;  %v3640_v34 = vadd.f32 %v3639_v21, %v3601_v12  ;;  %v5965_v21 = vand.u32 4294901760, %v10883_v36 }
 0x350   :  { %5902 = vmatpush.msra.mxu1 %v5901_v24  ;;  %6045 = vmatpush.msra.mxu3 %v10767_v44  ;;  %v5866_v24 = vand.u32 4294901760, %v10847_v48  ;;  %v5954_v31 = vsub.f32 %v10861_v7, %v5953_v56 }
 0x351   :  { %5851 = vmatpush.msra.mxu0 %v10782_v4  ;;  %6000 = vmatpush.msra.mxu2 %v10792_v20  ;;  %v3709_v27 = vadd.f32 %v3708_v30, %v3640_v34  ;;  %v5825_v20 = vld [vmem:[#allocation5 + $0xe8] sm:$0xff] }
 0x352   :  { %5908 = vmatpush.msra.mxu1 %v5907_v6  ;;  %6047 = vmatpush.msra.mxu3 %v10782_v4  ;;  %v5942_v6 = vsub.f32 %v10831_v11, %v5941_v60  ;;  %v5867_v54 = vsub.f32 %v10847_v48, %v5866_v24  ;;  %v5955_v30 = vand.u32 4294901760, %v5954_v31 }
 0x353   :  { %5853 = vmatpush.msra.mxu0 %v10794_v57  ;;  %6003 = vmatpush.msra.mxu2 %v10805_v62 }
 0x354   :  { %5914 = vmatpush.msra.mxu1 %v5913_v55  ;;  %6049 = vmatpush.msra.mxu3 %v10794_v57  ;;  %v5937_v55 = vand.u32 4294901760, %v5936_v19  ;;  %v5949_v19 = vand.u32 4294901760, %v5948_v42  ;;  %v5868_v12 = vand.u32 4294901760, %v5867_v54 }
 0x355   :  { %5855 = vmatpush.msra.mxu0 %v10807_v17  ;;  %6006 = vmatpush.msra.mxu2 %v10817_v0 }
 0x356   :  { %5920 = vmatpush.msra.mxu1 %v5919_v53  ;;  %6051 = vmatpush.msra.mxu3 %v10807_v17  ;;  %v5943_v53 = vand.u32 4294901760, %v5942_v6  ;;  %v3786_v6 = vpop.f32.mrf.mxu0  ;;  %v3887_v42 = vpop.f32.mrf.mxu1 }
 0x357   :  { %5857 = vmatpush.msra.mxu0 %v10819_v23  ;;  %6009 = vmatpush.msra.mxu2 %v10831_v11  ;;  %v5823_v11 = vld [vmem:[#allocation5 + $0xd8] sm:$0xff] }
 0x358   :  { %5926 = vmatpush.msra.mxu1 %v5925_v14  ;;  %6053 = vmatpush.msra.mxu3 %v10819_v23  ;;  %v3745_v14 = vpop.f32.mrf.mxu3 }
 0x359   :  { %5859 = vmatpush.msra.mxu0 %v10836_v43  ;;  %6012 = vmatpush.msra.mxu2 %v10843_v47  ;;  %v3746_v34 = vadd.f32 %v3745_v14, %v3709_v27  ;;  %v3941_v27 = vpop.f32.mrf.mxu2 }
 0x35a   :  { %5932 = vmatpush.msra.mxu1 %v5931_v29  ;;  %6055 = vmatpush.msra.mxu3 %v10836_v43  ;;  %v5960_v29 = vsub.f32 %v10874_v59, %v11466_v25 }
 0x35b   :  { %5861 = vmatpush.msra.mxu0 %v10851_v8  ;;  %6015 = vmatpush.msra.mxu2 %v10861_v7  ;;  %v3787_v54 = vadd.f32 %v3786_v6, %v3746_v34 }
 0x35c   :  { %5938 = vmatpush.msra.mxu1 %v5937_v55  ;;  %6057 = vmatpush.msra.mxu3 %v10851_v8  ;;  %v5966_v55 = vsub.f32 %v10883_v36, %v5965_v21  ;;  %v5961_v25 = vand.u32 4294901760, %v5960_v29 }
 0x35d   :  { %5863 = vmatpush.msra.mxu0 %v10863_v40  ;;  %6018 = vmatpush.msra.mxu2 %v10874_v59 }
 0x35e   :  { %5944 = vmatpush.msra.mxu1 %v5943_v53  ;;  %6059 = vmatpush.msra.mxu3 %v10863_v40  ;;  %v5967_v53 = vand.u32 4294901760, %v5966_v55 }
 0x35f   :  { %5869 = vmatmul.f32.vlgmr.msra.gmra.mxu0 %v5868_v12  ;;  %6063 = vmatmul.f32.vlgmr.msra.gmra.mxu3 %v5866_v24  ;;  %v3888_v24 = vadd.f32 %v3887_v42, %v3787_v54 }
 0x360   :  { %6070 = vmatpush.msrb.mxu0 %v5875_v13  ;;  %5950 = vmatpush.msra.mxu1 %v5949_v19  ;;  %v3980_v13 = vpop.f32.mrf.mxu3  ;;  %v11909_v19 = vand.u32 4294901760, %v10874_v59 }
 0x361   :  { %6021 = vmatpush.msra.mxu2 %v10883_v36  ;;  %v3942_v50 = vadd.f32 %v3941_v27, %v3888_v24  ;;  %v5820_v36 = vld [vmem:[#allocation5 + $0xc0] sm:$0xff]  ;;  %v5819_v27 = vld [vmem:[#allocation5 + $0xb8] sm:$0xff] }
 0x362   :  { %6024 = vmatmul.f32.vlgmr.msra.gmra.mxu2 %v10847_v48  ;;  %6074 = vmatpush.msrb.mxu0 %v5881_v1  ;;  %v5826_v1 = vld [vmem:[#allocation5 + $0xf0] sm:$0xff]  ;;  %v10925_v48 = vand.u32 4294901760, %v5827_v58 }
 0x363   :  { %5956 = vmatpush.msra.mxu1 %v5955_v30  ;;  %v10927_v22 = vand.u32 4294901760, %v5826_v1  ;;  %v3981_v35 = vadd.f32 %v3980_v13, %v3942_v50 }
 0x364   :  { %6078 = vmatpush.msrb.mxu0 %v5887_v33  ;;  %v4049_v33 = vpop.f32.mrf.mxu0  ;;  %6174 = vmatpush.msrb.mxu2 %v10925_v48 }
 0x365   :  { %5962 = vmatpush.msra.mxu1 %v5961_v25  ;;  %v10936_v37 = vsub.f32 %v5826_v1, %v10927_v22 }
 0x366   :  { %6082 = vmatpush.msrb.mxu0 %v5893_v49  ;;  %v10933_v49 = vsub.f32 %v5827_v58, %v10925_v48  ;;  %6176 = vmatpush.msrb.mxu2 %v10927_v22 }
 0x367   :  { %5968 = vmatpush.msra.mxu1 %v5967_v53  ;;  %v11021_v53 = vand.u32 4294901760, %v5820_v36 }
 0x368   :  { %5970 = vmatmul.f32.vlgmr.msra.gmra.mxu1 %v10822_v52  ;;  %6086 = vmatpush.msrb.mxu0 %v5899_v46  ;;  %v4050_v46 = vadd.f32 %v4049_v33, %v3981_v35  ;;  %v6216_v38 = vand.u32 4294901760, %v10933_v49  ;;  %v11032_v33 = vand.u32 4294901760, %v5819_v27 }
 0x369   :  { %6137 = vmatpush.msrb.mxu1 %v10677_v15  ;;  %v4086_v15 = vpop.f32.mrf.mxu1  ;;  %v11030_v1 = vsub.f32 %v5820_v36, %v11021_v53 }
 0x36a   :  { %6090 = vmatpush.msrb.mxu0 %v5905_v9  ;;  %v6222_v9 = vand.u32 4294901760, %v10936_v37  ;;  %v6217_v28 = vsub.f32 %v10933_v49, %v6216_v38 }
 0x36b   :  { %6139 = vmatpush.msrb.mxu1 %v10684_v32  ;;  %v4087_v32 = vadd.f32 %v4086_v15, %v4050_v46  ;;  %v5818_v15 = vld [vmem:[#allocation5 + $0xb0] sm:$0xff] }
 0x36c   :  { %6094 = vmatpush.msrb.mxu0 %v5911_v3  ;;  %v4127_v3 = vpop.f32.mrf.mxu2  ;;  %v6218_v25 = vand.u32 4294901760, %v6217_v28  ;;  %v11040_v28 = vsub.f32 %v5819_v27, %v11032_v33 }
 0x36d   :  { %6141 = vmatpush.msrb.mxu1 %v10696_v61  ;;  %v6223_v61 = vsub.f32 %v10936_v37, %v6222_v9 }
 0x36e   :  { %6098 = vmatpush.msrb.mxu0 %v5917_v41  ;;  %6219 = vmatpush.msrb.mxu3 %v6218_v25  ;;  %v4228_v41 = vpop.f32.mrf.mxu3  ;;  %v5817_v25 = vld [vmem:[#allocation5 + $0xa8] sm:$0xff] }
 0x36f   :  { %6143 = vmatpush.msrb.mxu1 %v10701_v63  ;;  %v6224_v51 = vand.u32 4294901760, %v6223_v61  ;;  %v4128_v63 = vadd.f32 %v4127_v3, %v4087_v32  ;;  %v6258_v32 = vand.u32 4294901760, %v11030_v1  ;;  %v11042_v61 = vand.u32 4294901760, %v5818_v15 }
 0x370   :  { %6102 = vmatpush.msrb.mxu0 %v5923_v45  ;;  %v4282_v45 = vpop.f32.mrf.mxu0 }
 0x371   :  { %6145 = vmatpush.msrb.mxu1 %v10711_v5  ;;  %6225 = vmatpush.msrb.mxu3 %v6224_v51  ;;  %v10965_v5 = vand.u32 4294901760, %v5825_v20  ;;  %v4229_v62 = vadd.f32 %v4228_v41, %v4128_v63  ;;  %v6259_v51 = vsub.f32 %v11030_v1, %v6258_v32  ;;  %v6264_v63 = vand.u32 4294901760, %v11040_v28 }
 0x372   :  { %6106 = vmatpush.msrb.mxu0 %v5929_v16  ;;  %v5824_v16 = vld [vmem:[#allocation5 + $0xe0] sm:$0xff]  ;;  %v11055_v41 = vsub.f32 %v5818_v15, %v11042_v61 }
 0x373   :  { %6147 = vmatpush.msrb.mxu1 %v10726_v39  ;;  %v4321_v39 = vpop.f32.mrf.mxu1  ;;  %v10971_v0 = vsub.f32 %v5825_v20, %v10965_v5  ;;  %6178 = vmatpush.msrb.mxu2 %v10965_v5  ;;  %v11057_v20 = vand.u32 4294901760, %v5817_v25 }
 0x374   :  { %6110 = vmatpush.msrb.mxu0 %v5935_v10  ;;  %v4283_v10 = vadd.f32 %v4282_v45, %v4229_v62  ;;  %v5816_v62 = vld [vmem:[#allocation5 + $0xa0] sm:$0xff] }
 0x375   :  { %6149 = vmatpush.msrb.mxu1 %v10740_v2  ;;  %v10973_v2 = vand.u32 4294901760, %v5824_v16 }
 0x376   :  { %6114 = vmatpush.msrb.mxu0 %v5941_v60  ;;  %v5822_v60 = vld [vmem:[#allocation5 + $0xd0] sm:$0xff]  ;;  %v4322_v14 = vadd.f32 %v4321_v39, %v4283_v10  ;;  %v6260_v10 = vand.u32 4294901760, %v6259_v51 }
 0x377   :  { %6151 = vmatpush.msrb.mxu1 %v10754_v26  ;;  %v6228_v26 = vand.u32 4294901760, %v10971_v0  ;;  %v10981_v47 = vsub.f32 %v5824_v16, %v10973_v2  ;;  %v10985_v31 = vand.u32 4294901760, %v5822_v60  ;;  %6180 = vmatpush.msrb.mxu2 %v10973_v2  ;;  %v5815_v16 = vld [vmem:[#allocation5 + $0x98] sm:$0xff]  ;;  %v5814_v39 = vld [vmem:[#allocation5 + $0x90] sm:$0xff] }
 0x378   :  { %6118 = vmatpush.msrb.mxu0 %v5947_v18  ;;  %v10983_v18 = vand.u32 4294901760, %v5823_v11  ;;  %v4468_v50 = vpop.f32.mrf.mxu0 }
 0x379   :  { %6153 = vmatpush.msrb.mxu1 %v10767_v44  ;;  %v4390_v44 = vpop.f32.mrf.mxu2  ;;  %v6229_v7 = vsub.f32 %v10971_v0, %v6228_v26  ;;  %v10999_v29 = vsub.f32 %v5822_v60, %v10985_v31  ;;  %v6270_v60 = vand.u32 4294901760, %v11055_v41 }
 0x37a   :  { %6122 = vmatpush.msrb.mxu0 %v5953_v56  ;;  %v6234_v56 = vand.u32 4294901760, %v10981_v47  ;;  %v10996_v12 = vsub.f32 %v5823_v11, %v10983_v18  ;;  %6182 = vmatpush.msrb.mxu2 %v10983_v18  ;;  %v4391_v55 = vadd.f32 %v4390_v44, %v4322_v14  ;;  %v6265_v11 = vsub.f32 %v11040_v28, %v6264_v63  ;;  %v5813_v44 = vld [vmem:[#allocation5 + $0x88] sm:$0xff] }
 0x37b   :  { %6155 = vmatpush.msrb.mxu1 %v10782_v4  ;;  %v5821_v4 = vld [vmem:[#allocation5 + $0xc8] sm:$0xff]  ;;  %v6230_v59 = vand.u32 4294901760, %v6229_v7  ;;  %v6246_v30 = vand.u32 4294901760, %v10999_v29  ;;  %v4569_v46 = vpop.f32.mrf.mxu1  ;;  %v11068_v14 = vsub.f32 %v5817_v25, %v11057_v20  ;;  %v11071_v7 = vand.u32 4294901760, %v5816_v62 }
 0x37c   :  { %6126 = vmatpush.msrb.mxu0 %v11909_v19  ;;  %v6235_v6 = vsub.f32 %v10981_v47, %v6234_v56  ;;  %v6240_v34 = vand.u32 4294901760, %v10996_v12  ;;  %6184 = vmatpush.msrb.mxu2 %v10985_v31 }
 0x37d   :  { %6157 = vmatpush.msrb.mxu1 %v10794_v57  ;;  %v11013_v57 = vand.u32 4294901760, %v5821_v4  ;;  %6231 = vmatpush.msrb.mxu3 %v6230_v59  ;;  %v6247_v24 = vsub.f32 %v10999_v29, %v6246_v30  ;;  %v11078_v59 = vand.u32 4294901760, %v5813_v44  ;;  %v6276_v36 = vand.u32 4294901760, %v11068_v14 }
 0x37e   :  { %6130 = vmatpush.msrb.mxu0 %v5965_v21  ;;  %v4427_v21 = vpop.f32.mrf.mxu3  ;;  %v6236_v42 = vand.u32 4294901760, %v6235_v6  ;;  %v6241_v54 = vsub.f32 %v10996_v12, %v6240_v34  ;;  %v6266_v6 = vand.u32 4294901760, %v6265_v11 }
 0x37f   :  { %6159 = vmatpush.msrb.mxu1 %v10807_v17  ;;  %6132 = vmatmul.f32.vlgmr.msrb.gmra.mxu0 %v10822_v52  ;;  %v11026_v17 = vsub.f32 %v5821_v4, %v11013_v57  ;;  %v6248_v58 = vand.u32 4294901760, %v6247_v24  ;;  %v4428_v35 = vadd.f32 %v4427_v21, %v4391_v55  ;;  %v11073_v4 = vand.u32 4294901760, %v5815_v16 }
 0x380   :  { %6317 = vmatpush.msra.mxu0 %v10933_v49  ;;  %6186 = vmatpush.msrb.mxu2 %v11013_v57  ;;  %v6242_v13 = vand.u32 4294901760, %v6241_v54  ;;  %v6271_v55 = vsub.f32 %v11055_v41, %v6270_v60  ;;  %v11098_v27 = vsub.f32 %v5813_v44, %v11078_v59 }
 0x381   :  { %6161 = vmatpush.msrb.mxu1 %v10819_v23  ;;  %6237 = vmatpush.msrb.mxu3 %v6236_v42  ;;  %v6252_v23 = vand.u32 4294901760, %v11026_v17  ;;  %v4469_v3 = vadd.f32 %v4468_v50, %v4428_v35  ;;  %v4623_v19 = vpop.f32.mrf.mxu2  ;;  %v11089_v42 = vsub.f32 %v5816_v62, %v11071_v7  ;;  %v11092_v54 = vsub.f32 %v5815_v16, %v11073_v4 }
 0x382   :  { %6320 = vmatpush.msra.mxu0 %v10936_v37  ;;  %6188 = vmatpush.msrb.mxu2 %v11021_v53 }
 0x383   :  { %6163 = vmatpush.msrb.mxu1 %v10836_v43  ;;  %6243 = vmatpush.msrb.mxu3 %v6242_v13  ;;  %v6253_v43 = vsub.f32 %v11026_v17, %v6252_v23  ;;  %v6272_v13 = vand.u32 4294901760, %v6271_v55  ;;  %v6282_v15 = vand.u32 4294901760, %v11089_v42 }
 0x384   :  { %6323 = vmatpush.msra.mxu0 %v10971_v0  ;;  %6190 = vmatpush.msrb.mxu2 %v11032_v33 }
 0x385   :  { %6165 = vmatpush.msrb.mxu1 %v10851_v8  ;;  %6249 = vmatpush.msrb.mxu3 %v6248_v58  ;;  %v4570_v8 = vadd.f32 %v4569_v46, %v4469_v3  ;;  %v6254_v45 = vand.u32 4294901760, %v6253_v43  ;;  %v6277_v58 = vsub.f32 %v11068_v14, %v6276_v36  ;;  %v6288_v46 = vand.u32 4294901760, %v11092_v54 }
 0x386   :  { %6326 = vmatpush.msra.mxu0 %v10981_v47  ;;  %6192 = vmatpush.msrb.mxu2 %v11042_v61  ;;  %v6300_v43 = vand.u32 4294901760, %v11098_v27  ;;  %v4662_v25 = vpop.f32.mrf.mxu3 }
 0x387   :  { %6167 = vmatpush.msrb.mxu1 %v10863_v40  ;;  %v5812_v40 = vld [vmem:[#allocation5 + $0x80] sm:$0xff]  ;;  %6255 = vmatpush.msrb.mxu3 %v6254_v45  ;;  %v4624_v50 = vadd.f32 %v4623_v19, %v4570_v8  ;;  %v6278_v51 = vand.u32 4294901760, %v6277_v58  ;;  %v6283_v8 = vsub.f32 %v11089_v42, %v6282_v15  ;;  %v6289_v45 = vsub.f32 %v11092_v54, %v6288_v46  ;;  %v4768_v19 = vpop.f32.mrf.mxu1 }
 0x388   :  { %6169 = vmatmul.f32.vlgmr.msrb.gmra.mxu1 %v10822_v52  ;;  %6329 = vmatpush.msra.mxu0 %v10996_v12  ;;  %v11075_v52 = vand.u32 4294901760, %v5814_v39  ;;  %v11085_v21 = vand.u32 4294901760, %v5812_v40 }
 0x389   :  { %6370 = vmatpush.msra.mxu1 %v10925_v48  ;;  %6194 = vmatpush.msrb.mxu2 %v11057_v20  ;;  %v6284_v11 = vand.u32 4294901760, %v6283_v8  ;;  %v6290_v44 = vand.u32 4294901760, %v6289_v45 }
 0x38a   :  { %6332 = vmatpush.msra.mxu0 %v10999_v29  ;;  %6261 = vmatpush.msrb.mxu3 %v6260_v10  ;;  %v11095_v24 = vsub.f32 %v5814_v39, %v11075_v52  ;;  %v11106_v35 = vsub.f32 %v5812_v40, %v11085_v21  ;;  %v4731_v39 = vpop.f32.mrf.mxu0  ;;  %v4663_v10 = vadd.f32 %v4662_v25, %v4624_v50  ;;  %v4809_v25 = vpop.f32.mrf.mxu2 }
 0x38b   :  { %6372 = vmatpush.msra.mxu1 %v10927_v22  ;;  %6196 = vmatpush.msrb.mxu2 %v11071_v7  ;;  %v6301_v40 = vsub.f32 %v11098_v27, %v6300_v43 }
 0x38c   :  { %6267 = vmatpush.msrb.mxu3 %v6266_v6  ;;  %v6294_v3 = vand.u32 4294901760, %v11095_v24  ;;  %6335 = vmatpush.msra.mxu0 %v11026_v17  ;;  %v6306_v16 = vand.u32 4294901760, %v11106_v35  ;;  %v4732_v6 = vadd.f32 %v4731_v39, %v4663_v10 }
 0x38d   :  { %6374 = vmatpush.msra.mxu1 %v10965_v5  ;;  %6198 = vmatpush.msrb.mxu2 %v11073_v4  ;;  %v6302_v58 = vand.u32 4294901760, %v6301_v40 }
 0x38e   :  { %6273 = vmatpush.msrb.mxu3 %v6272_v13  ;;  %v6295_v62 = vsub.f32 %v11095_v24, %v6294_v3  ;;  %6338 = vmatpush.msra.mxu0 %v11030_v1  ;;  %v6307_v50 = vsub.f32 %v11106_v35, %v6306_v16  ;;  %v4769_v13 = vadd.f32 %v4768_v19, %v4732_v6  ;;  %v4910_v49 = vpop.f32.mrf.mxu3 }
 0x38f   :  { %6376 = vmatpush.msra.mxu1 %v10973_v2  ;;  %6200 = vmatpush.msrb.mxu2 %v11075_v52 }
 0x390   :  { %6279 = vmatpush.msrb.mxu3 %v6278_v51  ;;  %v6296_v55 = vand.u32 4294901760, %v6295_v62  ;;  %6341 = vmatpush.msra.mxu0 %v11040_v28  ;;  %v6308_v51 = vand.u32 4294901760, %v6307_v50  ;;  %v4810_v8 = vadd.f32 %v4809_v25, %v4769_v13 }
 0x391   :  { %6378 = vmatpush.msra.mxu1 %v10983_v18  ;;  %6202 = vmatpush.msrb.mxu2 %v11078_v59 }
 0x392   :  { %6285 = vmatpush.msrb.mxu3 %v6284_v11  ;;  %6344 = vmatpush.msra.mxu0 %v11055_v41  ;;  %v4964_v37 = vpop.f32.mrf.mxu0 }
 0x393   :  { %6380 = vmatpush.msra.mxu1 %v10985_v31  ;;  %6204 = vmatpush.msrb.mxu2 %v11085_v21 }
 0x394   :  { %6291 = vmatpush.msrb.mxu3 %v6290_v44  ;;  %6347 = vmatpush.msra.mxu0 %v11068_v14 }
 0x395   :  { %6411 = vmatpush.msra.mxu2 %v6216_v38  ;;  %6382 = vmatpush.msra.mxu1 %v11013_v57  ;;  %v4911_v38 = vadd.f32 %v4910_v49, %v4810_v8 }
 0x396   :  { %6297 = vmatpush.msrb.mxu3 %v6296_v55  ;;  %6350 = vmatpush.msra.mxu0 %v11089_v42 }
 0x397   :  { %6415 = vmatpush.msra.mxu2 %v6222_v9  ;;  %6384 = vmatpush.msra.mxu1 %v11021_v53  ;;  %v5003_v9 = vpop.f32.mrf.mxu1  ;;  %v4965_v0 = vadd.f32 %v4964_v37, %v4911_v38 }
 0x398   :  { %6303 = vmatpush.msrb.mxu3 %v6302_v58  ;;  %6353 = vmatpush.msra.mxu0 %v11092_v54 }
 0x399   :  { %6419 = vmatpush.msra.mxu2 %v6228_v26  ;;  %6386 = vmatpush.msra.mxu1 %v11032_v33  ;;  %v5072_v26 = vpop.f32.mrf.mxu2 }
 0x39a   :  { %6309 = vmatpush.msrb.mxu3 %v6308_v51  ;;  %6356 = vmatpush.msra.mxu0 %v11095_v24  ;;  %v6540_v24 = vld [vmem:[%s11214_s4] ss:$0 sm:$0xff]  ;;  %s6626_s4 = smov [#allocation7]  }
 0x39b   :  { %6423 = vmatpush.msra.mxu2 %v6234_v56  ;;  %6388 = vmatpush.msra.mxu1 %v11042_v61  ;;  %s6520_s13 = sshll.u32 %s6626_s4, 4  ;;  %s6521_s13 = int_to_ptr.vmem [resolvable:$true] %s6520_s13 }
 0x39c   :  { %6478 = vmatpush.msra.mxu3 %v10925_v48  ;;  %v5004_v48 = vadd.f32 %v5003_v9, %v4965_v0  ;;  %6359 = vmatpush.msra.mxu0 %v11098_v27 }
 0x39d   :  { %6427 = vmatpush.msra.mxu2 %v6240_v34  ;;  %6390 = vmatpush.msra.mxu1 %v11057_v20 }
 0x39e   :  { %6480 = vmatpush.msra.mxu3 %v10927_v22  ;;  %6362 = vmatpush.msra.mxu0 %v11106_v35  ;;  %v5073_v22 = vadd.f32 %v5072_v26, %v5004_v48 }
 0x39f   :  { %6431 = vmatpush.msra.mxu2 %v6246_v30  ;;  %6392 = vmatpush.msra.mxu1 %v11071_v7 }
 0x3a0   :  { %6482 = vmatpush.msra.mxu3 %v10965_v5  ;;  %v5109_v5 = vpop.f32.mrf.mxu3 }
 0x3a1   :  { %6435 = vmatpush.msra.mxu2 %v6252_v23  ;;  %6394 = vmatpush.msra.mxu1 %v11073_v4  ;;  %v5110_v47 = vadd.f32 %v5109_v5, %v5073_v22  ;;  %v5305_v12 = vpop.f32.mrf.mxu2 }
 0x3a2   :  { %6484 = vmatpush.msra.mxu3 %v10973_v2  ;;  %v5150_v2 = vpop.f32.mrf.mxu0 }
 0x3a3   :  { %6439 = vmatpush.msra.mxu2 %v6258_v32  ;;  %6396 = vmatpush.msra.mxu1 %v11075_v52  ;;  %v5151_v56 = vadd.f32 %v5150_v2, %v5110_v47 }
 0x3a4   :  { %6486 = vmatpush.msra.mxu3 %v10983_v18  ;;  %v5251_v18 = vpop.f32.mrf.mxu1 }
 0x3a5   :  { %6443 = vmatpush.msra.mxu2 %v6264_v63  ;;  %6398 = vmatpush.msra.mxu1 %v11078_v59 }
 0x3a6   :  { %6488 = vmatpush.msra.mxu3 %v10985_v31  ;;  %v5252_v31 = vadd.f32 %v5251_v18, %v5151_v56 }
 0x3a7   :  { %6447 = vmatpush.msra.mxu2 %v6270_v60  ;;  %6400 = vmatpush.msra.mxu1 %v11085_v21 }
 0x3a8   :  { %6490 = vmatpush.msra.mxu3 %v11013_v57  ;;  %v5306_v29 = vadd.f32 %v5305_v12, %v5252_v31  ;;  %v5344_v34 = vpop.f32.mrf.mxu3 }
 0x3a9   :  { %6451 = vmatpush.msra.mxu2 %v6276_v36 }
 0x3aa   :  { %6492 = vmatpush.msra.mxu3 %v11021_v53  ;;  %v5413_v30 = vpop.f32.mrf.mxu0  ;;  %v5345_v57 = vadd.f32 %v5344_v34, %v5306_v29 }
 0x3ab   :  { %6455 = vmatpush.msra.mxu2 %v6282_v15 }
 0x3ac   :  { %6494 = vmatpush.msra.mxu3 %v11032_v33  ;;  %v5450_v53 = vpop.f32.mrf.mxu1  ;;  %v5414_v17 = vadd.f32 %v5413_v30, %v5345_v57  ;;  %v5491_v33 = vpop.f32.mrf.mxu2 }
 0x3ad   :  { %6459 = vmatpush.msra.mxu2 %v6288_v46 }
 0x3ae   :  { %6496 = vmatpush.msra.mxu3 %v11042_v61  ;;  %v5451_v1 = vadd.f32 %v5450_v53, %v5414_v17 }
 0x3af   :  { %6463 = vmatpush.msra.mxu2 %v6294_v3 }
 0x3b0   :  { %6498 = vmatpush.msra.mxu3 %v11057_v20  ;;  %v5492_v23 = vadd.f32 %v5491_v33, %v5451_v1  ;;  %v5592_v32 = vpop.f32.mrf.mxu3 }
 0x3b1   :  { %6467 = vmatpush.msra.mxu2 %v6300_v43 }
 0x3b2   :  { %6500 = vmatpush.msra.mxu3 %v11071_v7  ;;  %v5593_v61 = vadd.f32 %v5592_v32, %v5492_v23 }
 0x3b3   :  { %6471 = vmatpush.msra.mxu2 %v6306_v16 }
 0x3b4   :  { %6502 = vmatpush.msra.mxu3 %v11073_v4 }
 0x3b6   :  { %6504 = vmatpush.msra.mxu3 %v11075_v52 }
 0x3b8   :  { %6506 = vmatpush.msra.mxu3 %v11078_v59 }
 0x3ba   :  { %6508 = vmatpush.msra.mxu3 %v11085_v21  ;;  %v5646_v28 = vpop.f32.mrf.mxu0 }
 0x3bb   :  { %v5647_v63 = vadd.f32 %v5646_v28, %v5593_v61 }
 0x3c4   :  { %v5685_v41 = vpop.f32.mrf.mxu1  ;;  %v5754_v20 = vpop.f32.mrf.mxu2 }
 0x3c5   :  { %v5686_v60 = vadd.f32 %v5685_v41, %v5647_v63 }
 0x3c7   :  { %v5755_v14 = vadd.f32 %v5754_v20, %v5686_v60  ;;  %v5791_v7 = vpop.f32.mrf.mxu3 }
 0x3c9   :  { %v5792_v4 = vadd.f32 %v5791_v7, %v5755_v14 }
 0x3cb   :  { %v5795_v36 = vmax.f32 %v5792_v4, 0.0 }
 0x3cd   :  { %v6205_v52 = vand.u32 4294901760, %v5795_v36 }
 0x3cf   :  { %v6206_v42 = vsub.f32 %v5795_v36, %v6205_v52  ;;  %6311 = vmatmul.f32.vlgmr.msrb.gmra.mxu3 %v6205_v52 }
 0x3d1   :  { %v6207_v59 = vand.u32 4294901760, %v6206_v42  ;;  %6365 = vmatmul.f32.vlgmr.msra.gmra.mxu0 %v6206_v42 }
 0x3d3   :  { %v6208_v54 = vsub.f32 %v6206_v42, %v6207_v59  ;;  %6404 = vmatmul.f32.vlgmr.msra.gmra.mxu1 %v6207_v59 }
 0x3d5   :  { %v6209_v21 = vand.u32 4294901760, %v6208_v54 }
 0x3d7   :  { %6210 = vmatmul.f32.vlgmr.msrb.gmra.mxu2 %v6209_v21  ;;  %6510 = vmatmul.f32.vlgmr.msra.gmra.mxu3 %v6205_v52 }
 0x3dc   :  { %v5870_v27 = vpop.f32.mrf.mxu0 }
 0x3dd   :  { %v5871_v15 = vadd.f32 %v6540_v24, %v5870_v27 }
 0x3df   :  { %6473 = vmatmul.f32.vlgmr.msra.gmra.mxu2 %v6205_v52 }
 0x3e2   :  { %v6064_v45 = vpop.f32.mrf.mxu3 }
 0x3e5   :  { %v5971_v35 = vpop.f32.mrf.mxu1  ;;  %v6025_v3 = vpop.f32.mrf.mxu2 }
 0x3e6   :  { %v5972_v46 = vadd.f32 %v5971_v35, %v5871_v15 }
 0x3e8   :  { %v6026_v43 = vadd.f32 %v6025_v3, %v5972_v46 }
 0x3ea   :  { %v6065_v16 = vadd.f32 %v6064_v45, %v6026_v43 }
 0x3fc   :  { %v6133_v62 = vpop.f32.mrf.mxu0 }
 0x3fd   :  { %v6134_v10 = vadd.f32 %v6133_v62, %v6065_v16 }
 0x405   :  { %v6170_v39 = vpop.f32.mrf.mxu1 }
 0x406   :  { %v6171_v11 = vadd.f32 %v6170_v39, %v6134_v10 }
 0x44e   :  { %v6366_v55 = vpop.f32.mrf.mxu0 }
 0x450   :  { %v6405_v13 = vpop.f32.mrf.mxu1 }
 0x452   :  { %v6312_v44 = vpop.f32.mrf.mxu3 }
 0x45a   :  { %v6211_v40 = vpop.f32.mrf.mxu2  ;;  %v6511_v8 = vpop.f32.mrf.mxu3 }
 0x45b   :  { %v6212_v19 = vadd.f32 %v6211_v40, %v6171_v11 }
 0x45d   :  { %v6313_v6 = vadd.f32 %v6312_v44, %v6212_v19 }
 0x45f   :  { %v6367_v50 = vadd.f32 %v6366_v55, %v6313_v6 }
 0x461   :  { %v6406_v58 = vadd.f32 %v6405_v13, %v6367_v50 }
 0x462   :  { %v6474_v25 = vpop.f32.mrf.mxu2 }
 0x463   :  { %v6475_v51 = vadd.f32 %v6474_v25, %v6406_v58 }
 0x465   :  { %v6512_v49 = vadd.f32 %v6511_v8, %v6475_v51 }
 0x467   :  { %6514 = vst [vmem:[#allocation7] sm:$0x3] %v6512_v49 }
 0x468   :  { %6525 = dma.vmem_to_hbm [thread:$0]  %s6521_s13, 32, %s6523_s16, [#allocation4]  }
 0x469   :  { %6618 = dma.done.wait [#allocation4], 32  }
 0x46a   :  { %6619 = vsyncadd [#allocation4], 4294967264 }
 0x46b   :  { %6530 = vsyncpa [#allocation3], 1 }
 0x46c   :  { %6531 = vsyncpa [#allocation6], 1 }
 0x46d   :  { %6532 = vsyncpa [#allocation4], 1 }

</bundles_post_ra>
